<compile_context>
chip_gen: v6e
topology: v6e:2x2x1
jax: 0.10.0
libtpu: 0.0.40
codegen_flags: <defaults>
</compile_context>

<pallas_src>
import numpy as np

import jax
import jax.numpy as jnp
from jax import lax
from jax.experimental import pallas as pl
from jax.experimental.pallas import tpu as pltpu


# ----------------------------------------------------------------------------
# Kernel
# ----------------------------------------------------------------------------
def _make_bottleneck_kernel(Nb, H, W):
    HW = H * W
    R = Nb * HW
    bf = jnp.bfloat16
    f32 = jnp.float32

    def kernel(x_ref, m_ref, w1_ref, b1_ref, wvf_ref, b2_ref, w3_ref, b3_ref,
               o_ref, u_sc):
        Cin_p = x_ref.shape[-1]
        C = w1_ref.shape[-1]                      # Cmid_p

        x = x_ref[...].reshape(R, Cin_p)
        x_mxu = x if x.dtype == bf else x.astype(bf)
        x_res = x if x.dtype == f32 else x.astype(f32)

        # Grid-invariant 0/1 boundary masks: [h-1 valid, h+1 valid, w-1, w+1].
        m = m_ref[...]
        m_up, m_dn = m[:, 0:1], m[:, 1:2]
        m_l, m_r = m[:, 2:3], m[:, 3:4]

        # ---- conv1 (1x1, BN folded into weights) + bias + relu ------------
        t = jnp.dot(x_mxu, w1_ref[...], preferred_element_type=f32)
        t = jnp.maximum(t + b1_ref[...], 0.0)     # f32 elementwise (v5e VALU)

        # ---- conv2 (3x3, stride 1, pad 1, BN folded) -----------------------
        # Row/col decomposition, fused over dx:
        #   u = [tap(h-1) | tap(h) | tap(h+1)]           (2 sublane rolls)
        #   p = u @ wvf  with wvf (3*Cmid, 3*Cmid)       (1 wide MXU matmul)
        #   out = p_c + shift(p_l,+1)*m_l + shift(p_r,-1)*m_r  (2 rolls)
        # Masks also cut cross-image wrap when Nb > 1 images share the block.
        t_up = pltpu.roll(t, W, axis=0) * m_up            # input row h-1
        t_dn = pltpu.roll(t, R - W, axis=0) * m_dn        # input row h+1
        u_sc[:, 0:C] = t_up.astype(bf)
        u_sc[:, C:2 * C] = t.astype(bf)
        u_sc[:, 2 * C:3 * C] = t_dn.astype(bf)

        p = jnp.dot(u_sc[...], wvf_ref[...], preferred_element_type=f32)
        p_l, p_c, p_r = p[:, 0:C], p[:, C:2 * C], p[:, 2 * C:3 * C]

        acc = p_c
        acc = acc + pltpu.roll(p_l, 1, axis=0) * m_l
        acc = acc + pltpu.roll(p_r, R - 1, axis=0) * m_r
        t2 = jnp.maximum(acc + b2_ref[...], 0.0)

        # ---- conv3 (1x1, BN folded) + bias + residual add + relu ----------
        t3 = jnp.dot(t2.astype(bf), w3_ref[...], preferred_element_type=f32)
        out = jnp.maximum(t3 + b3_ref[...] + x_res, 0.0)
        o_ref[...] = out.reshape(Nb, HW, out.shape[-1]).astype(o_ref.dtype)

    return kernel


# ----------------------------------------------------------------------------
# One-time (per-model) weight preparation
# ----------------------------------------------------------------------------
def _fold_bn(gamma, beta, mean, var, eps=1e-5):
    scale = gamma / jnp.sqrt(var + eps)
    bias = beta - mean * scale
    return scale, bias


def _round_up(v, m):
    return (v + m - 1) // m * m


def prepare_bottleneck_params(params, eps=1e-5):
    """Fold BN, pad channels to 128 lanes, cast to bf16, build the fused
    column-stacked 3x3 weight.  Call ONCE per model (hoisted out of the
    per-forward hot path)."""
    Cin, Cmid = params["w1"].shape
    Cout = params["w3"].shape[1]
    assert Cout == Cin, "residual add requires inplanes == planes * 4"

    s1, b1 = _fold_bn(params["g1"], params["be1"], params["m1"], params["v1"], eps)
    s2, b2 = _fold_bn(params["g2"], params["be2"], params["m2"], params["v2"], eps)
    s3, b3 = _fold_bn(params["g3"], params["be3"], params["m3"], params["v3"], eps)
    w1f = params["w1"] * s1[None, :]                     # (Cin, Cmid)
    w2f = params["w2"] * s2[None, None, None, :]         # (3,3,Cmid,Cmid) HWIO
    w3f = params["w3"] * s3[None, :]                     # (Cmid, Cout)

    Cin_p = _round_up(Cin, 128)
    Cmid_p = _round_up(Cmid, 128)
    Cout_p = _round_up(Cout, 128)
    bf = jnp.bfloat16

    w1p = jnp.pad(w1f, ((0, Cin_p - Cin), (0, Cmid_p - Cmid))).astype(bf)
    w3p = jnp.pad(w3f, ((0, Cmid_p - Cmid), (0, Cout_p - Cout))).astype(bf)
    w2p = jnp.pad(w2f, ((0, 0), (0, 0),
                        (0, Cmid_p - Cmid), (0, Cmid_p - Cmid)))
    # wv[dx] = vstack_dy w2[dy, dx]  (K = 3*Cmid_p); fuse over dx along N.
    wv_cols = [jnp.concatenate([w2p[0, dx], w2p[1, dx], w2p[2, dx]], axis=0)
               for dx in range(3)]                       # each (3*Cmid_p, Cmid_p)
    wvf = jnp.concatenate(wv_cols, axis=1).astype(bf)    # (3*Cmid_p, 3*Cmid_p)

    b1p = jnp.pad(b1, (0, Cmid_p - Cmid)).reshape(1, Cmid_p).astype(jnp.float32)
    b2p = jnp.pad(b2, (0, Cmid_p - Cmid)).reshape(1, Cmid_p).astype(jnp.float32)
    b3p = jnp.pad(b3, (0, Cout_p - Cout)).reshape(1, Cout_p).astype(jnp.float32)

    return dict(w1p=w1p, b1p=b1p, wvf=wvf, b2p=b2p, w3p=w3p, b3p=b3p,
                Cin=Cin, Cmid=Cmid, Cout=Cout,
                Cin_p=Cin_p, Cmid_p=Cmid_p, Cout_p=Cout_p)


# ----------------------------------------------------------------------------
# Layout packing (network-boundary only in a real model)
# ----------------------------------------------------------------------------
def pack_input(x_nchw, Cin_p, dtype=jnp.float32):
    N, Cin, H, W = x_nchw.shape
    x = jnp.transpose(x_nchw, (0, 2, 3, 1)).reshape(N, H * W, Cin)
    return jnp.pad(x, ((0, 0), (0, 0), (0, Cin_p - Cin))).astype(dtype)


def unpack_output(out_packed, Cout, H, W):
    N = out_packed.shape[0]
    out = out_packed[:, :, :Cout].reshape(N, H, W, Cout)
    return jnp.transpose(out, (0, 3, 1, 2)).astype(jnp.float32)


_MASK_CACHE = {}


def _get_masks(H, W, Nb):
    key = (H, W, Nb)
    if key not in _MASK_CACHE:
        hh, ww = np.meshgrid(np.arange(H), np.arange(W), indexing="ij")
        m = np.stack([hh >= 1, hh <= H - 2, ww >= 1, ww <= W - 2], axis=-1)
        m = m.astype(np.float32).reshape(H * W, 4)
        _MASK_CACHE[key] = jnp.asarray(np.tile(m, (Nb, 1)))
    return _MASK_CACHE[key]


# ----------------------------------------------------------------------------
# VMEM / grid policy
# ----------------------------------------------------------------------------
def _vmem_limit_bytes():
    # ~56 MiB on 64-MiB parts (v7x), capped at ~100 MiB on 128-MiB parts.
    cap = 64 * 1024 * 1024
    try:
        info = pltpu.get_tpu_info()
        cap = int(getattr(info, "vmem_capacity_bytes", cap) or cap)
    except Exception:
        pass
    return min(int(cap * 7 // 8), 100 * 1024 * 1024)


def _pick_batch_pack(N, HW, Cin_p, Cmid_p, Cout_p, vmem_limit,
                     io_bytes_per_elem, single_buffer_weights=True):
    """Images packed per grid step.  Counts weight blocks, double-buffered
    I/O, the bf16 concat operand, the fused-matmul f32 result, and coexisting
    f32 temporaries.  Keeps >=2 grid steps whenever N>=2 (v7x megacore) and
    Nb | N; Nb>1 only when HW is a multiple of 8 (sublane-safe reshape)."""
    if HW % 8 != 0:
        return 1
    wbuf = 1 if single_buffer_weights else 2
    weight_bytes = wbuf * (
        Cin_p * Cmid_p * 2 + 9 * Cmid_p * Cmid_p * 2 + Cmid_p * Cout_p * 2
        + (2 * Cmid_p + Cout_p) * 4)
    budget = int(vmem_limit * 0.85) - weight_bytes

    per_img = (
        2 * HW * (Cin_p + Cout_p) * io_bytes_per_elem   # double-buffered in/out
        + 2 * HW * 4 * 4                                # mask block
        + HW * (4 * Cmid_p * 4                          # t, t_up, t_dn, acc/t2 f32
                + 3 * Cmid_p * 2                        # u concat operand (bf16)
                + 3 * Cmid_p * 4                        # fused conv2 result (f32)
                + 2 * Cout_p * 4                        # t3 / out (f32)
                + Cin_p * 4))                           # f32 residual copy of x

    nb = max(1, min(N, budget // max(per_img, 1)))
    if N >= 2:
        nb = min(nb, N // 2)
    while N % nb:
        nb -= 1
    return int(nb)


# ----------------------------------------------------------------------------
# Forward (hot path) — packed layout in, packed layout out
# ----------------------------------------------------------------------------
def bottleneck_forward_packed(x_packed, prep, H, W):
    N, HW, Cin_p = x_packed.shape
    assert HW == H * W and Cin_p == prep["Cin_p"]
    Cmid_p, Cout_p = prep["Cmid_p"], prep["Cout_p"]

    vmem_limit = _vmem_limit_bytes()
    io_bytes = jnp.dtype(x_packed.dtype).itemsize
    Nb = _pick_batch_pack(N, HW, Cin_p, Cmid_p, Cout_p, vmem_limit, io_bytes)

    masks = _get_masks(H, W, Nb)
    kernel = _make_bottleneck_kernel(Nb, H, W)

    def call(single_buffer):
        def const_spec(shape):
            idx = lambda n, _s=shape: (0,) * len(_s)
            if single_buffer and hasattr(pl, "Buffered"):
                return pl.BlockSpec(shape, idx, pipeline_mode=pl.Buffered(1))
            return pl.BlockSpec(shape, idx)

        return pl.pallas_call(
            kernel,
            out_shape=jax.ShapeDtypeStruct((N, HW, Cout_p), x_packed.dtype),
            grid=(N // Nb,),
            in_specs=[
                pl.BlockSpec((Nb, HW, Cin_p), lambda n: (n, 0, 0)),
                const_spec((Nb * HW, 4)),
                const_spec((Cin_p, Cmid_p)),
                const_spec((1, Cmid_p)),
                const_spec((3 * Cmid_p, 3 * Cmid_p)),
                const_spec((1, Cmid_p)),
                const_spec((Cmid_p, Cout_p)),
                const_spec((1, Cout_p)),
            ],
            out_specs=pl.BlockSpec((Nb, HW, Cout_p), lambda n: (n, 0, 0)),
            scratch_shapes=[pltpu.VMEM((Nb * HW, 3 * Cmid_p), jnp.bfloat16)],
            compiler_params=pltpu.CompilerParams(
                dimension_semantics=("parallel",),
                vmem_limit_bytes=vmem_limit),
        )(x_packed, masks, prep["w1p"], prep["b1p"], prep["wvf"],
          prep["b2p"], prep["w3p"], prep["b3p"])

    try:
        return call(True)
    except Exception:
        # Fallback: default double-buffered specs (older JAX / unsupported
        # pipeline_mode) — numerically identical, slightly more VMEM.
        return call(False)


def bottleneck_forward(x_nchw, params):
    """Convenience NCHW->NCHW wrapper (weight prep is NOT hoisted here; use
    prepare_bottleneck_params + bottleneck_forward_packed in a real model)."""
    N, Cin, H, W = x_nchw.shape
    prep = prepare_bottleneck_params(params)
    x_packed = pack_input(x_nchw, prep["Cin_p"])
    out_packed = bottleneck_forward_packed(x_packed, prep, H, W)
    return unpack_output(out_packed, prep["Cout"], H, W)


# ----------------------------------------------------------------------------
# Pure-JAX reference (matches PyTorch eval-mode semantics)
# ----------------------------------------------------------------------------
def _reference_forward(x_nchw, params, eps=1e-5):
    x = jnp.transpose(x_nchw, (0, 2, 3, 1))          # NHWC

    def bn(t, g, b, m, v):
        return (t - m) / jnp.sqrt(v + eps) * g + b

    t = jnp.einsum("nhwc,cd->nhwd", x, params["w1"])
    t = jax.nn.relu(bn(t, params["g1"], params["be1"], params["m1"], params["v1"]))
    t = lax.conv_general_dilated(
        t, params["w2"], window_strides=(1, 1), padding="SAME",
        dimension_numbers=("NHWC", "HWIO", "NHWC"))
    t = jax.nn.relu(bn(t, params["g2"], params["be2"], params["m2"], params["v2"]))
    t = jnp.einsum("nhwc,cd->nhwd", t, params["w3"])
    t = bn(t, params["g3"], params["be3"], params["m3"], params["v3"])
    out = jax.nn.relu(t + x)
    return jnp.transpose(out, (0, 3, 1, 2))          # back to NCHW


if __name__ == "__main__":
    # Bottleneck(inplanes=16, planes=4) -> out channels = planes * 4 = 16
    N, inplanes, planes, H, W = 2, 16, 4, 8, 8
    Cout = planes * 4

    key = jax.random.PRNGKey(0)
    ks = jax.random.split(key, 16)

    params = {
        "w1": 0.1 * jax.random.normal(ks[0], (inplanes, planes), jnp.float32),
        "w2": 0.1 * jax.random.normal(ks[1], (3, 3, planes, planes), jnp.float32),
        "w3": 0.1 * jax.random.normal(ks[2], (planes, Cout), jnp.float32),
        "g1": 1.0 + 0.1 * jax.random.normal(ks[3], (planes,), jnp.float32),
        "be1": 0.1 * jax.random.normal(ks[4], (planes,), jnp.float32),
        "m1": 0.1 * jax.random.normal(ks[5], (planes,), jnp.float32),
        "v1": 1.0 + 0.1 * jax.random.uniform(ks[6], (planes,), jnp.float32),
        "g2": 1.0 + 0.1 * jax.random.normal(ks[7], (planes,), jnp.float32),
        "be2": 0.1 * jax.random.normal(ks[8], (planes,), jnp.float32),
        "m2": 0.1 * jax.random.normal(ks[9], (planes,), jnp.float32),
        "v2": 1.0 + 0.1 * jax.random.uniform(ks[10], (planes,), jnp.float32),
        "g3": 1.0 + 0.1 * jax.random.normal(ks[11], (Cout,), jnp.float32),
        "be3": 0.1 * jax.random.normal(ks[12], (Cout,), jnp.float32),
        "m3": 0.1 * jax.random.normal(ks[13], (Cout,), jnp.float32),
        "v3": 1.0 + 0.1 * jax.random.uniform(ks[14], (Cout,), jnp.float32),
    }

    x = jax.random.normal(ks[15], (N, inplanes, H, W), jnp.float32)

    # Weight prep once per model; packed NHWC layout at the kernel boundary.
    prep = prepare_bottleneck_params(params)
    x_packed = pack_input(x, prep["Cin_p"])
    out_packed = bottleneck_forward_packed(x_packed, prep, H, W)
    out = jax.block_until_ready(unpack_output(out_packed, prep["Cout"], H, W))

    ref = jax.block_until_ready(_reference_forward(x, params))

    assert out.shape == (N, Cout, H, W)
    # bf16 MXU operands vs f32 reference -> loosened tolerance (precision
    # tradeoff, not a bug).
    assert jnp.allclose(out, ref, atol=2e-2, rtol=2e-2), (
        f"max abs err {jnp.max(jnp.abs(out - ref))}")

    print("KERNEL_OK")
</pallas_src>

<mosaic_0001>
module attributes {stable_mosaic.version = 11 : i64} {
  func.func @kernel(%arg0: i32, %arg1: memref<1x64x128xf32, #tpu.memory_space<vmem>>, %arg2: memref<64x4xf32, #tpu.memory_space<vmem>>, %arg3: memref<128x128xbf16, #tpu.memory_space<vmem>>, %arg4: memref<1x128xf32, #tpu.memory_space<vmem>>, %arg5: memref<384x384xbf16, #tpu.memory_space<vmem>>, %arg6: memref<1x128xf32, #tpu.memory_space<vmem>>, %arg7: memref<128x128xbf16, #tpu.memory_space<vmem>>, %arg8: memref<1x128xf32, #tpu.memory_space<vmem>>, %arg9: memref<1x64x128xf32, #tpu.memory_space<vmem>>, %arg10: memref<64x384xbf16, #tpu.memory_space<vmem>>) attributes {dimension_semantics = [#tpu.dimension_semantics<parallel>], iteration_bounds = array<i64: 2>, scalar_prefetch = 0 : i64, scratch_operands = 1 : i64, tpu.core_type = #tpu.core_type<tc>, window_params = [{transform_indices = @transform_0, window_bounds = array<i64: 1, 64, 128>}, {pipeline_mode = #tpu.pipeline_mode<synchronous>, transform_indices = @transform_1, window_bounds = array<i64: 64, 4>}, {pipeline_mode = #tpu.pipeline_mode<synchronous>, transform_indices = @transform_2, window_bounds = array<i64: 128, 128>}, {pipeline_mode = #tpu.pipeline_mode<synchronous>, transform_indices = @transform_3, window_bounds = array<i64: 1, 128>}, {pipeline_mode = #tpu.pipeline_mode<synchronous>, transform_indices = @transform_4, window_bounds = array<i64: 384, 384>}, {pipeline_mode = #tpu.pipeline_mode<synchronous>, transform_indices = @transform_5, window_bounds = array<i64: 1, 128>}, {pipeline_mode = #tpu.pipeline_mode<synchronous>, transform_indices = @transform_6, window_bounds = array<i64: 128, 128>}, {pipeline_mode = #tpu.pipeline_mode<synchronous>, transform_indices = @transform_7, window_bounds = array<i64: 1, 128>}, {transform_indices = @transform_8, window_bounds = array<i64: 1, 64, 128>}]} {
    %c0 = arith.constant 0 : index
    %c0_0 = arith.constant 0 : index
    %c0_1 = arith.constant 0 : index
    %0 = vector.load %arg1[%c0, %c0_0, %c0_1] : memref<1x64x128xf32, #tpu.memory_space<vmem>>, vector<1x64x128xf32>
    %1 = vector.shape_cast %0 : vector<1x64x128xf32> to vector<64x128xf32>
    %2 = arith.truncf %1 : vector<64x128xf32> to vector<64x128xbf16>
    %c0_2 = arith.constant 0 : index
    %c0_3 = arith.constant 0 : index
    %3 = vector.load %arg2[%c0_2, %c0_3] : memref<64x4xf32, #tpu.memory_space<vmem>>, vector<64x4xf32>
    %4 = vector.extract_strided_slice %3 {offsets = [0, 0], sizes = [64, 1], strides = [1, 1]} : vector<64x4xf32> to vector<64x1xf32>
    %5 = vector.extract_strided_slice %3 {offsets = [0, 1], sizes = [64, 1], strides = [1, 1]} : vector<64x4xf32> to vector<64x1xf32>
    %6 = vector.extract_strided_slice %3 {offsets = [0, 2], sizes = [64, 1], strides = [1, 1]} : vector<64x4xf32> to vector<64x1xf32>
    %7 = vector.extract_strided_slice %3 {offsets = [0, 3], sizes = [64, 1], strides = [1, 1]} : vector<64x4xf32> to vector<64x1xf32>
    %c0_4 = arith.constant 0 : index
    %c0_5 = arith.constant 0 : index
    %8 = vector.load %arg3[%c0_4, %c0_5] : memref<128x128xbf16, #tpu.memory_space<vmem>>, vector<128x128xbf16>
    %cst = arith.constant dense<0.000000e+00> : vector<64x128xf32>
    %9 = tpu.matmul %2, %8, %cst {dimension_numbers = #tpu.dot_dimension_numbers<[1], [0], [0], [1], [0, 0, 1, 1], [], []>} : vector<64x128xbf16>, vector<128x128xbf16>, vector<64x128xf32> -> vector<64x128xf32>
    %c0_6 = arith.constant 0 : index
    %c0_7 = arith.constant 0 : index
    %10 = vector.load %arg4[%c0_6, %c0_7] : memref<1x128xf32, #tpu.memory_space<vmem>>, vector<1x128xf32>
    %11 = vector.broadcast %10 : vector<1x128xf32> to vector<64x128xf32>
    %12 = arith.addf %9, %11 : vector<64x128xf32>
    %cst_8 = arith.constant 0.000000e+00 : f32
    %13 = vector.broadcast %cst_8 : f32 to vector<64x128xf32>
    %14 = arith.maximumf %12, %13 : vector<64x128xf32>
    %c8_i32 = arith.constant 8 : i32
    %15 = tpu.dynamic_rotate %14 by %c8_i32 dim 0 : vector<64x128xf32>, i32 -> vector<64x128xf32>
    %16 = vector.broadcast %4 : vector<64x1xf32> to vector<64x128xf32>
    %17 = arith.mulf %15, %16 : vector<64x128xf32>
    %c56_i32 = arith.constant 56 : i32
    %18 = tpu.dynamic_rotate %14 by %c56_i32 dim 0 : vector<64x128xf32>, i32 -> vector<64x128xf32>
    %19 = vector.broadcast %5 : vector<64x1xf32> to vector<64x128xf32>
    %20 = arith.mulf %18, %19 : vector<64x128xf32>
    %21 = arith.truncf %17 : vector<64x128xf32> to vector<64x128xbf16>
    %c0_9 = arith.constant 0 : index
    %c0_10 = arith.constant 0 : index
    %22 = vector.load %arg10[%c0_9, %c0_10] : memref<64x384xbf16, #tpu.memory_space<vmem>>, vector<64x128xbf16>
    tpu.vector_store %arg10[%c0_9, %c0_10], %21 {strides = array<i32>} : memref<64x384xbf16, #tpu.memory_space<vmem>>, vector<64x128xbf16>,
    %23 = arith.truncf %14 : vector<64x128xf32> to vector<64x128xbf16>
    %c0_11 = arith.constant 0 : index
    %c128 = arith.constant 128 : index
    %24 = vector.load %arg10[%c0_11, %c128] : memref<64x384xbf16, #tpu.memory_space<vmem>>, vector<64x128xbf16>
    tpu.vector_store %arg10[%c0_11, %c128], %23 {strides = array<i32>} : memref<64x384xbf16, #tpu.memory_space<vmem>>, vector<64x128xbf16>,
    %25 = arith.truncf %20 : vector<64x128xf32> to vector<64x128xbf16>
    %c0_12 = arith.constant 0 : index
    %c256 = arith.constant 256 : index
    %26 = vector.load %arg10[%c0_12, %c256] : memref<64x384xbf16, #tpu.memory_space<vmem>>, vector<64x128xbf16>
    tpu.vector_store %arg10[%c0_12, %c256], %25 {strides = array<i32>} : memref<64x384xbf16, #tpu.memory_space<vmem>>, vector<64x128xbf16>,
    %c0_13 = arith.constant 0 : index
    %c0_14 = arith.constant 0 : index
    %27 = vector.load %arg10[%c0_13, %c0_14] : memref<64x384xbf16, #tpu.memory_space<vmem>>, vector<64x384xbf16>
    %c0_15 = arith.constant 0 : index
    %c0_16 = arith.constant 0 : index
    %28 = vector.load %arg5[%c0_15, %c0_16] : memref<384x384xbf16, #tpu.memory_space<vmem>>, vector<384x384xbf16>
    %cst_17 = arith.constant dense<0.000000e+00> : vector<64x384xf32>
    %29 = tpu.matmul %27, %28, %cst_17 {dimension_numbers = #tpu.dot_dimension_numbers<[1], [0], [0], [1], [0, 0, 1, 1], [], []>} : vector<64x384xbf16>, vector<384x384xbf16>, vector<64x384xf32> -> vector<64x384xf32>
    %30 = vector.extract_strided_slice %29 {offsets = [0, 0], sizes = [64, 128], strides = [1, 1]} : vector<64x384xf32> to vector<64x128xf32>
    %31 = vector.extract_strided_slice %29 {offsets = [0, 128], sizes = [64, 128], strides = [1, 1]} : vector<64x384xf32> to vector<64x128xf32>
    %32 = vector.extract_strided_slice %29 {offsets = [0, 256], sizes = [64, 128], strides = [1, 1]} : vector<64x384xf32> to vector<64x128xf32>
    %c1_i32 = arith.constant 1 : i32
    %33 = tpu.dynamic_rotate %30 by %c1_i32 dim 0 : vector<64x128xf32>, i32 -> vector<64x128xf32>
    %34 = vector.broadcast %6 : vector<64x1xf32> to vector<64x128xf32>
    %35 = arith.mulf %33, %34 : vector<64x128xf32>
    %36 = arith.addf %31, %35 : vector<64x128xf32>
    %c63_i32 = arith.constant 63 : i32
    %37 = tpu.dynamic_rotate %32 by %c63_i32 dim 0 : vector<64x128xf32>, i32 -> vector<64x128xf32>
    %38 = vector.broadcast %7 : vector<64x1xf32> to vector<64x128xf32>
    %39 = arith.mulf %37, %38 : vector<64x128xf32>
    %40 = arith.addf %36, %39 : vector<64x128xf32>
    %c0_18 = arith.constant 0 : index
    %c0_19 = arith.constant 0 : index
    %41 = vector.load %arg6[%c0_18, %c0_19] : memref<1x128xf32, #tpu.memory_space<vmem>>, vector<1x128xf32>
    %42 = vector.broadcast %41 : vector<1x128xf32> to vector<64x128xf32>
    %43 = arith.addf %40, %42 : vector<64x128xf32>
    %cst_20 = arith.constant 0.000000e+00 : f32
    %44 = vector.broadcast %cst_20 : f32 to vector<64x128xf32>
    %45 = arith.maximumf %43, %44 : vector<64x128xf32>
    %46 = arith.truncf %45 : vector<64x128xf32> to vector<64x128xbf16>
    %c0_21 = arith.constant 0 : index
    %c0_22 = arith.constant 0 : index
    %47 = vector.load %arg7[%c0_21, %c0_22] : memref<128x128xbf16, #tpu.memory_space<vmem>>, vector<128x128xbf16>
    %cst_23 = arith.constant dense<0.000000e+00> : vector<64x128xf32>
    %48 = tpu.matmul %46, %47, %cst_23 {dimension_numbers = #tpu.dot_dimension_numbers<[1], [0], [0], [1], [0, 0, 1, 1], [], []>} : vector<64x128xbf16>, vector<128x128xbf16>, vector<64x128xf32> -> vector<64x128xf32>
    %c0_24 = arith.constant 0 : index
    %c0_25 = arith.constant 0 : index
    %49 = vector.load %arg8[%c0_24, %c0_25] : memref<1x128xf32, #tpu.memory_space<vmem>>, vector<1x128xf32>
    %50 = vector.broadcast %49 : vector<1x128xf32> to vector<64x128xf32>
    %51 = arith.addf %48, %50 : vector<64x128xf32>
    %52 = arith.addf %51, %1 : vector<64x128xf32>
    %cst_26 = arith.constant 0.000000e+00 : f32
    %53 = vector.broadcast %cst_26 : f32 to vector<64x128xf32>
    %54 = arith.maximumf %52, %53 : vector<64x128xf32>
    %55 = vector.shape_cast %54 : vector<64x128xf32> to vector<1x64x128xf32>
    %c0_27 = arith.constant 0 : index
    %c0_28 = arith.constant 0 : index
    %c0_29 = arith.constant 0 : index
    %56 = vector.load %arg9[%c0_27, %c0_28, %c0_29] : memref<1x64x128xf32, #tpu.memory_space<vmem>>, vector<1x64x128xf32>
    tpu.vector_store %arg9[%c0_27, %c0_28, %c0_29], %55 {strides = array<i32>} : memref<1x64x128xf32, #tpu.memory_space<vmem>>, vector<1x64x128xf32>,
    return
  }
  func.func @transform_0(%arg0: i32) -> (i32, i32, i32) {
    %c0_i32 = arith.constant 0 : i32
    %c0_i32_0 = arith.constant 0 : i32
    %c0_i32_1 = arith.constant 0 : i32
    return %arg0, %c0_i32, %c0_i32_0 : i32, i32, i32
  }
  func.func @transform_1(%arg0: i32) -> (i32, i32) {
    %c0_i32 = arith.constant 0 : i32
    %c0_i32_0 = arith.constant 0 : i32
    %c0_i32_1 = arith.constant 0 : i32
    return %c0_i32, %c0_i32_0 : i32, i32
  }
  func.func @transform_2(%arg0: i32) -> (i32, i32) {
    %c0_i32 = arith.constant 0 : i32
    %c0_i32_0 = arith.constant 0 : i32
    %c0_i32_1 = arith.constant 0 : i32
    return %c0_i32, %c0_i32_0 : i32, i32
  }
  func.func @transform_3(%arg0: i32) -> (i32, i32) {
    %c0_i32 = arith.constant 0 : i32
    %c0_i32_0 = arith.constant 0 : i32
    %c0_i32_1 = arith.constant 0 : i32
    return %c0_i32, %c0_i32_0 : i32, i32
  }
  func.func @transform_4(%arg0: i32) -> (i32, i32) {
    %c0_i32 = arith.constant 0 : i32
    %c0_i32_0 = arith.constant 0 : i32
    %c0_i32_1 = arith.constant 0 : i32
    return %c0_i32, %c0_i32_0 : i32, i32
  }
  func.func @transform_5(%arg0: i32) -> (i32, i32) {
    %c0_i32 = arith.constant 0 : i32
    %c0_i32_0 = arith.constant 0 : i32
    %c0_i32_1 = arith.constant 0 : i32
    return %c0_i32, %c0_i32_0 : i32, i32
  }
  func.func @transform_6(%arg0: i32) -> (i32, i32) {
    %c0_i32 = arith.constant 0 : i32
    %c0_i32_0 = arith.constant 0 : i32
    %c0_i32_1 = arith.constant 0 : i32
    return %c0_i32, %c0_i32_0 : i32, i32
  }
  func.func @transform_7(%arg0: i32) -> (i32, i32) {
    %c0_i32 = arith.constant 0 : i32
    %c0_i32_0 = arith.constant 0 : i32
    %c0_i32_1 = arith.constant 0 : i32
    return %c0_i32, %c0_i32_0 : i32, i32
  }
  func.func @transform_8(%arg0: i32) -> (i32, i32, i32) {
    %c0_i32 = arith.constant 0 : i32
    %c0_i32_0 = arith.constant 0 : i32
    %c0_i32_1 = arith.constant 0 : i32
    return %arg0, %c0_i32, %c0_i32_0 : i32, i32, i32
  }
}

module attributes {stable_mosaic.version = 11 : i64} {
  func.func @kernel(%arg0: i32, %arg1: memref<1x64x128xf32, #tpu.memory_space<vmem>>, %arg2: memref<64x4xf32, #tpu.memory_space<vmem>>, %arg3: memref<128x128xbf16, #tpu.memory_space<vmem>>, %arg4: memref<1x128xf32, #tpu.memory_space<vmem>>, %arg5: memref<384x384xbf16, #tpu.memory_space<vmem>>, %arg6: memref<1x128xf32, #tpu.memory_space<vmem>>, %arg7: memref<128x128xbf16, #tpu.memory_space<vmem>>, %arg8: memref<1x128xf32, #tpu.memory_space<vmem>>, %arg9: memref<1x64x128xf32, #tpu.memory_space<vmem>>, %arg10: memref<64x384xbf16, #tpu.memory_space<vmem>>) attributes {dimension_semantics = [#tpu.dimension_semantics<parallel>], iteration_bounds = array<i64: 2>, scalar_prefetch = 0 : i64, scratch_operands = 1 : i64, tpu.core_type = #tpu.core_type<tc>, window_params = [{transform_indices = @transform_0, window_bounds = array<i64: 1, 64, 128>}, {pipeline_mode = #tpu.pipeline_mode<synchronous>, transform_indices = @transform_1, window_bounds = array<i64: 64, 4>}, {pipeline_mode = #tpu.pipeline_mode<synchronous>, transform_indices = @transform_2, window_bounds = array<i64: 128, 128>}, {pipeline_mode = #tpu.pipeline_mode<synchronous>, transform_indices = @transform_3, window_bounds = array<i64: 1, 128>}, {pipeline_mode = #tpu.pipeline_mode<synchronous>, transform_indices = @transform_4, window_bounds = array<i64: 384, 384>}, {pipeline_mode = #tpu.pipeline_mode<synchronous>, transform_indices = @transform_5, window_bounds = array<i64: 1, 128>}, {pipeline_mode = #tpu.pipeline_mode<synchronous>, transform_indices = @transform_6, window_bounds = array<i64: 128, 128>}, {pipeline_mode = #tpu.pipeline_mode<synchronous>, transform_indices = @transform_7, window_bounds = array<i64: 1, 128>}, {transform_indices = @transform_8, window_bounds = array<i64: 1, 64, 128>}]} {
    %c0 = arith.constant 0 : index
    %c0_0 = arith.constant 0 : index
    %c0_1 = arith.constant 0 : index
    %0 = vector.load %arg1[%c0, %c0_0, %c0_1] : memref<1x64x128xf32, #tpu.memory_space<vmem>>, vector<1x64x128xf32>
    %1 = vector.shape_cast %0 : vector<1x64x128xf32> to vector<64x128xf32>
    %2 = arith.truncf %1 : vector<64x128xf32> to vector<64x128xbf16>
    %c0_2 = arith.constant 0 : index
    %c0_3 = arith.constant 0 : index
    %3 = vector.load %arg2[%c0_2, %c0_3] : memref<64x4xf32, #tpu.memory_space<vmem>>, vector<64x4xf32>
    %4 = vector.extract_strided_slice %3 {offsets = [0, 0], sizes = [64, 1], strides = [1, 1]} : vector<64x4xf32> to vector<64x1xf32>
    %5 = vector.extract_strided_slice %3 {offsets = [0, 1], sizes = [64, 1], strides = [1, 1]} : vector<64x4xf32> to vector<64x1xf32>
    %6 = vector.extract_strided_slice %3 {offsets = [0, 2], sizes = [64, 1], strides = [1, 1]} : vector<64x4xf32> to vector<64x1xf32>
    %7 = vector.extract_strided_slice %3 {offsets = [0, 3], sizes = [64, 1], strides = [1, 1]} : vector<64x4xf32> to vector<64x1xf32>
    %c0_4 = arith.constant 0 : index
    %c0_5 = arith.constant 0 : index
    %8 = vector.load %arg3[%c0_4, %c0_5] : memref<128x128xbf16, #tpu.memory_space<vmem>>, vector<128x128xbf16>
    %cst = arith.constant dense<0.000000e+00> : vector<64x128xf32>
    %9 = tpu.matmul %2, %8, %cst {dimension_numbers = #tpu.dot_dimension_numbers<[1], [0], [0], [1], [0, 0, 1, 1], [], []>} : vector<64x128xbf16>, vector<128x128xbf16>, vector<64x128xf32> -> vector<64x128xf32>
    %c0_6 = arith.constant 0 : index
    %c0_7 = arith.constant 0 : index
    %10 = vector.load %arg4[%c0_6, %c0_7] : memref<1x128xf32, #tpu.memory_space<vmem>>, vector<1x128xf32>
    %11 = vector.broadcast %10 : vector<1x128xf32> to vector<64x128xf32>
    %12 = arith.addf %9, %11 : vector<64x128xf32>
    %cst_8 = arith.constant 0.000000e+00 : f32
    %13 = vector.broadcast %cst_8 : f32 to vector<64x128xf32>
    %14 = arith.maximumf %12, %13 : vector<64x128xf32>
    %c8_i32 = arith.constant 8 : i32
    %15 = tpu.dynamic_rotate %14 by %c8_i32 dim 0 : vector<64x128xf32>, i32 -> vector<64x128xf32>
    %16 = vector.broadcast %4 : vector<64x1xf32> to vector<64x128xf32>
    %17 = arith.mulf %15, %16 : vector<64x128xf32>
    %c56_i32 = arith.constant 56 : i32
    %18 = tpu.dynamic_rotate %14 by %c56_i32 dim 0 : vector<64x128xf32>, i32 -> vector<64x128xf32>
    %19 = vector.broadcast %5 : vector<64x1xf32> to vector<64x128xf32>
    %20 = arith.mulf %18, %19 : vector<64x128xf32>
    %21 = arith.truncf %17 : vector<64x128xf32> to vector<64x128xbf16>
    %c0_9 = arith.constant 0 : index
    %c0_10 = arith.constant 0 : index
    %22 = vector.load %arg10[%c0_9, %c0_10] : memref<64x384xbf16, #tpu.memory_space<vmem>>, vector<64x128xbf16>
    tpu.vector_store %arg10[%c0_9, %c0_10], %21 {strides = array<i32>} : memref<64x384xbf16, #tpu.memory_space<vmem>>, vector<64x128xbf16>,
    %23 = arith.truncf %14 : vector<64x128xf32> to vector<64x128xbf16>
    %c0_11 = arith.constant 0 : index
    %c128 = arith.constant 128 : index
    %24 = vector.load %arg10[%c0_11, %c128] : memref<64x384xbf16, #tpu.memory_space<vmem>>, vector<64x128xbf16>
    tpu.vector_store %arg10[%c0_11, %c128], %23 {strides = array<i32>} : memref<64x384xbf16, #tpu.memory_space<vmem>>, vector<64x128xbf16>,
    %25 = arith.truncf %20 : vector<64x128xf32> to vector<64x128xbf16>
    %c0_12 = arith.constant 0 : index
    %c256 = arith.constant 256 : index
    %26 = vector.load %arg10[%c0_12, %c256] : memref<64x384xbf16, #tpu.memory_space<vmem>>, vector<64x128xbf16>
    tpu.vector_store %arg10[%c0_12, %c256], %25 {strides = array<i32>} : memref<64x384xbf16, #tpu.memory_space<vmem>>, vector<64x128xbf16>,
    %c0_13 = arith.constant 0 : index
    %c0_14 = arith.constant 0 : index
    %27 = vector.load %arg10[%c0_13, %c0_14] : memref<64x384xbf16, #tpu.memory_space<vmem>>, vector<64x384xbf16>
    %c0_15 = arith.constant 0 : index
    %c0_16 = arith.constant 0 : index
    %28 = vector.load %arg5[%c0_15, %c0_16] : memref<384x384xbf16, #tpu.memory_space<vmem>>, vector<384x384xbf16>
    %cst_17 = arith.constant dense<0.000000e+00> : vector<64x384xf32>
    %29 = tpu.matmul %27, %28, %cst_17 {dimension_numbers = #tpu.dot_dimension_numbers<[1], [0], [0], [1], [0, 0, 1, 1], [], []>} : vector<64x384xbf16>, vector<384x384xbf16>, vector<64x384xf32> -> vector<64x384xf32>
    %30 = vector.extract_strided_slice %29 {offsets = [0, 0], sizes = [64, 128], strides = [1, 1]} : vector<64x384xf32> to vector<64x128xf32>
    %31 = vector.extract_strided_slice %29 {offsets = [0, 128], sizes = [64, 128], strides = [1, 1]} : vector<64x384xf32> to vector<64x128xf32>
    %32 = vector.extract_strided_slice %29 {offsets = [0, 256], sizes = [64, 128], strides = [1, 1]} : vector<64x384xf32> to vector<64x128xf32>
    %c1_i32 = arith.constant 1 : i32
    %33 = tpu.dynamic_rotate %30 by %c1_i32 dim 0 : vector<64x128xf32>, i32 -> vector<64x128xf32>
    %34 = vector.broadcast %6 : vector<64x1xf32> to vector<64x128xf32>
    %35 = arith.mulf %33, %34 : vector<64x128xf32>
    %36 = arith.addf %31, %35 : vector<64x128xf32>
    %c63_i32 = arith.constant 63 : i32
    %37 = tpu.dynamic_rotate %32 by %c63_i32 dim 0 : vector<64x128xf32>, i32 -> vector<64x128xf32>
    %38 = vector.broadcast %7 : vector<64x1xf32> to vector<64x128xf32>
    %39 = arith.mulf %37, %38 : vector<64x128xf32>
    %40 = arith.addf %36, %39 : vector<64x128xf32>
    %c0_18 = arith.constant 0 : index
    %c0_19 = arith.constant 0 : index
    %41 = vector.load %arg6[%c0_18, %c0_19] : memref<1x128xf32, #tpu.memory_space<vmem>>, vector<1x128xf32>
    %42 = vector.broadcast %41 : vector<1x128xf32> to vector<64x128xf32>
    %43 = arith.addf %40, %42 : vector<64x128xf32>
    %cst_20 = arith.constant 0.000000e+00 : f32
    %44 = vector.broadcast %cst_20 : f32 to vector<64x128xf32>
    %45 = arith.maximumf %43, %44 : vector<64x128xf32>
    %46 = arith.truncf %45 : vector<64x128xf32> to vector<64x128xbf16>
    %c0_21 = arith.constant 0 : index
    %c0_22 = arith.constant 0 : index
    %47 = vector.load %arg7[%c0_21, %c0_22] : memref<128x128xbf16, #tpu.memory_space<vmem>>, vector<128x128xbf16>
    %cst_23 = arith.constant dense<0.000000e+00> : vector<64x128xf32>
    %48 = tpu.matmul %46, %47, %cst_23 {dimension_numbers = #tpu.dot_dimension_numbers<[1], [0], [0], [1], [0, 0, 1, 1], [], []>} : vector<64x128xbf16>, vector<128x128xbf16>, vector<64x128xf32> -> vector<64x128xf32>
    %c0_24 = arith.constant 0 : index
    %c0_25 = arith.constant 0 : index
    %49 = vector.load %arg8[%c0_24, %c0_25] : memref<1x128xf32, #tpu.memory_space<vmem>>, vector<1x128xf32>
    %50 = vector.broadcast %49 : vector<1x128xf32> to vector<64x128xf32>
    %51 = arith.addf %48, %50 : vector<64x128xf32>
    %52 = arith.addf %51, %1 : vector<64x128xf32>
    %cst_26 = arith.constant 0.000000e+00 : f32
    %53 = vector.broadcast %cst_26 : f32 to vector<64x128xf32>
    %54 = arith.maximumf %52, %53 : vector<64x128xf32>
    %55 = vector.shape_cast %54 : vector<64x128xf32> to vector<1x64x128xf32>
    %c0_27 = arith.constant 0 : index
    %c0_28 = arith.constant 0 : index
    %c0_29 = arith.constant 0 : index
    %56 = vector.load %arg9[%c0_27, %c0_28, %c0_29] : memref<1x64x128xf32, #tpu.memory_space<vmem>>, vector<1x64x128xf32>
    tpu.vector_store %arg9[%c0_27, %c0_28, %c0_29], %55 {strides = array<i32>} : memref<1x64x128xf32, #tpu.memory_space<vmem>>, vector<1x64x128xf32>,
    return
  }
  func.func @transform_0(%arg0: i32) -> (i32, i32, i32) {
    %c0_i32 = arith.constant 0 : i32
    %c0_i32_0 = arith.constant 0 : i32
    %c0_i32_1 = arith.constant 0 : i32
    return %arg0, %c0_i32, %c0_i32_0 : i32, i32, i32
  }
  func.func @transform_1(%arg0: i32) -> (i32, i32) {
    %c0_i32 = arith.constant 0 : i32
    %c0_i32_0 = arith.constant 0 : i32
    %c0_i32_1 = arith.constant 0 : i32
    return %c0_i32, %c0_i32_0 : i32, i32
  }
  func.func @transform_2(%arg0: i32) -> (i32, i32) {
    %c0_i32 = arith.constant 0 : i32
    %c0_i32_0 = arith.constant 0 : i32
    %c0_i32_1 = arith.constant 0 : i32
    return %c0_i32, %c0_i32_0 : i32, i32
  }
  func.func @transform_3(%arg0: i32) -> (i32, i32) {
    %c0_i32 = arith.constant 0 : i32
    %c0_i32_0 = arith.constant 0 : i32
    %c0_i32_1 = arith.constant 0 : i32
    return %c0_i32, %c0_i32_0 : i32, i32
  }
  func.func @transform_4(%arg0: i32) -> (i32, i32) {
    %c0_i32 = arith.constant 0 : i32
    %c0_i32_0 = arith.constant 0 : i32
    %c0_i32_1 = arith.constant 0 : i32
    return %c0_i32, %c0_i32_0 : i32, i32
  }
  func.func @transform_5(%arg0: i32) -> (i32, i32) {
    %c0_i32 = arith.constant 0 : i32
    %c0_i32_0 = arith.constant 0 : i32
    %c0_i32_1 = arith.constant 0 : i32
    return %c0_i32, %c0_i32_0 : i32, i32
  }
  func.func @transform_6(%arg0: i32) -> (i32, i32) {
    %c0_i32 = arith.constant 0 : i32
    %c0_i32_0 = arith.constant 0 : i32
    %c0_i32_1 = arith.constant 0 : i32
    return %c0_i32, %c0_i32_0 : i32, i32
  }
  func.func @transform_7(%arg0: i32) -> (i32, i32) {
    %c0_i32 = arith.constant 0 : i32
    %c0_i32_0 = arith.constant 0 : i32
    %c0_i32_1 = arith.constant 0 : i32
    return %c0_i32, %c0_i32_0 : i32, i32
  }
  func.func @transform_8(%arg0: i32) -> (i32, i32, i32) {
    %c0_i32 = arith.constant 0 : i32
    %c0_i32_0 = arith.constant 0 : i32
    %c0_i32_1 = arith.constant 0 : i32
    return %arg0, %c0_i32, %c0_i32_0 : i32, i32, i32
  }
}

</mosaic_0001>

<bundles_post_ra>
// kernel: tpu_custom_call.1
= control target key start
LH: loop header
LB: loop body
LE: loop exit
PB: predicated region body
PF: predicated region fallthrough
CT: control target
= control target key end

     0   :  { %s3294_s0 = inlined_call_operand.hbm [shape: f32[2,64,128], index: 0, kind: input, shape index: {}]   ;;  %s3295_s1 = inlined_call_operand.vmem [shape: f32[64,4], index: 1, kind: input, shape index: {}]   ;;  %s3296_s2 = inlined_call_operand.vmem [shape: bf16[128,128], index: 2, kind: input, shape index: {}]   ;;  %s3297_s3 = inlined_call_operand.vmem [shape: f32[1,128], index: 3, kind: input, shape index: {}]   ;;  %s3298_s4 = inlined_call_operand.hbm [shape: bf16[384,384], index: 4, kind: input, shape index: {}]   ;;  %s3299_s5 = inlined_call_operand.vmem [shape: f32[1,128], index: 5, kind: input, shape index: {}]   ;;  %s3300_s6 = inlined_call_operand.hbm [shape: bf16[128,128], index: 6, kind: input, shape index: {}]   ;;  %s3301_s7 = inlined_call_operand.vmem [shape: f32[1,128], index: 7, kind: input, shape index: {}]   ;;  %s3302_s8 = inlined_call_operand.hbm [shape: f32[2,64,128], index: 8, kind: output, shape index: {}]  }
   0x1   :  { %3307 = sst [smem:[#allocation13_spill]] %s3298_s4 }
   0x2   :  { %3308 = sst [smem:[#allocation14_spill]] %s3300_s6 }
   0x3   :  { %13 = vsyncpa [#allocation4], 0 }
   0x4   :  { %15 = vsyncpa [#allocation4 + $0x1], 0 }
   0x5   :  { %16 = vsyncpa [#allocation7], 0 }
   0x6   :  { %17 = vsyncpa [#allocation5], 0 }
   0x7   :  { %19 = vsyncpa [#allocation5 + $0x1], 0  ;;  %s2762_s27 = smov 0   ;;  %s2764_s28 = smov 0  }
   0x8   :  { %s2766_s29 = smov 0   ;;  %s2768_s30 = smov 0  }
   0x9 LB: > { %s2783_s9 = sadd.s32 4294967295, %s2699_s30   ;;  %s1987_s10 = sadd.s32 4294967294, %s2699_s30   ;;  %s2699_s30 = sphi %s2768_s30, %s3328_s30   ;;  %s2695_s29 = sphi %s2766_s29, %s3327_s29   ;;  %s2691_s28 = sphi %s2764_s28, %s3326_s28   ;;  %s2687_s27 = sphi %s2762_s27, %s3325_s27  }
   0xa   : > { %p45_p0 = scmp.ne.s32.totalorder %s2691_s28, %s2687_s27  ;;  %p3303_p1 = scmp.eq.s32.totalorder %s2783_s9, 0 }
   0xb   : > { %p222_p3 = scmp.eq.s32.totalorder %s1987_s10, 1  ;;  %p1988_p5 = scmp.ge.s32.totalorder %s2699_s30, 1 }
   0xc   : > { %p2792_p4 = por %p3303_p1, %p45_p0  ;;  %p229_p7 = scmp.lt.s32.totalorder %s2699_s30, 3 }
   0xd   : > { %p2797_p6 = por %p222_p3, %p45_p0  ;;  %s2701_s14 = smov [#allocation6]  }
   0xe   : > { %s3309_s11 = scalar_select %p2792_p4, 1, 0 }
   0xf   : > { %s3310_s12 = scalar_select %p2797_p6, 1, 0 }
  0x10   : > { %p2802_p8 = pnand %p1988_p5, %p229_p7  ;;  %s250_s15 = sshll.u32 %s2701_s14, 4  ;;  %s251_s15 = int_to_ptr.vmem [resolvable:$true] %s250_s15 }
  0x11   : > { %s2702_s17 = smov [#allocation8]   ;;  %s2562_s19 = scalar_lea.vmem %s251_s15, 9216 }
  0x12   : > { %s3311_s13 = scalar_select %p2802_p8, 1, 0 }
  0x13   : > { %p2334_p9 = pneg %p2802_p8  ;;  %s266_s18 = sshll.u32 %s2702_s17, 4  ;;  %s267_s18 = int_to_ptr.vmem [resolvable:$true] %s266_s18 }
  0x14   : > { %p2563_p13 = scmp.ne.s32.totalorder %s251_s15, %s2562_s19  ;;  %p2570_p5 = scmp.lt.s32.totalorder %s251_s15, %s251_s15 }
  0x15   : > { %p2811_p11 = pnand %p2334_p9, %p3303_p1  ;;  %p2571_p7 = scmp.lt.s32.totalorder %s2562_s19, %s2562_s19 }
  0x17   : > { %p2553_p12 = pneg %p2811_p11  ;;  %p2572_p10 = por %p2571_p7, %p2570_p5 }
  0x19   : > { %p2565_p0 = pnand %p2563_p13, %p2553_p12 }
  0x1b   : > { %p2566_p3 = pneg %p2565_p0 }
  0x1d   : > { %p2573_p9 = pnand %p2572_p10, %p2566_p3 }
  0x1f   : > { %2576 = shalt.err (!%p2573_p9)
}
  0x20   : > { %s2703_s20 = smov 192   ;;  %s2704_s21 = smov 12  }
  0x21   : > { %s3313_s4 = sld [smem:[#allocation13_spill]]  ;;  %s2588_s24 = scalar_lea.vmem %s267_s18, 1024 }
  0x22   : > { %p2589_p1 = scmp.ne.s32.totalorder %s267_s18, %s2588_s24  ;;  %p2596_p2 = scmp.lt.s32.totalorder %s267_s18, %s267_s18 }
  0x23   : > { %p2597_p6 = scmp.lt.s32.totalorder %s2588_s24, %s2588_s24 }
  0x24   : > { %p2591_p13 = pnand %p2589_p1, %p2553_p12 }
  0x25   : > { %p2598_p5 = por %p2597_p6, %p2596_p2 }
  0x26   : > { %p2592_p0 = pneg %p2591_p13 }
  0x27   : > { %2337 = dma.hbm_to_vmem [thread:$0]  (!%p2811_p11), %s3313_s4, 9216, %s251_s15, [#allocation7], %s2703_s20, %s2703_s20, %s2704_s21  }
  0x28   : > { %p2599_p10 = pnand %p2598_p5, %p2592_p0 }
  0x2a   : > { %2602 = shalt.err (!%p2599_p10)
}
  0x2b   : > { %s2705_s25 = smov 64   ;;  %s2706_s26 = smov 4  }
  0x2c   : > { %s3314_s6 = sld [smem:[#allocation14_spill]]  ;;  %s2834_s15 = sadd.s32 1, %s2699_s30  }
  0x2d   : > { %s29_s17 = ssub.s32 %s2699_s30, %s2834_s15  ;;  %s32_s19 = sadd.s32 1, %s2695_s29 }
  0x2e   : > { %p30_p1 = scmp.eq.s32.totalorder %s29_s17, 0  ;;  %p39_p2 = scmp.ne.s32.totalorder %s2695_s29, %s2691_s28 }
  0x2f   : > { %p40_p6 = scmp.eq.s32.totalorder %s2699_s30, 0  ;;  %p3315_p3 = scmp.eq.s32.totalorder %s2783_s9, 1 }
  0x30   : > { %s2843_s20 = scalar_select %p30_p1, %s2695_s29, %s32_s19  }
  0x31   : > { %p41_p12 = por %p40_p6, %p39_p2  ;;  %p2847_p7 = por %p3315_p3, %p39_p2 }
  0x32   : > { %2340 = dma.hbm_to_vmem [thread:$0]  (!%p2811_p11), %s3314_s6, 1024, %s267_s18, [#allocation7], %s2705_s25, %s2705_s25, %s2706_s26  }
  0x33   : > { %s3316_s21 = scalar_select %p2847_p7, 1, 0 }
  0x34   : > { %p2351_p9 = scmp.lt.s32.totalorder %s2699_s30, 2  ;;  %s283_s16 = sand.u32 1, %s2695_s29  }
  0x35   : > { %s1992_s22 = sshll.u32 %s283_s16, 6  ;;  %s2132_s18 = sshll.u32 %s2699_s30, 10 }
  0x36   : > { %s2857_s25 = scalar_lea.hbm %s3294_s0, %s2132_s18  ;;  %s287_s26 = scalar_lea.vmem [#allocation3], %s1992_s22 }
  0x37   : > { %s294_s10 = sshll.u32 %s287_s26, 4  ;;  %p2861_p11 = pnand %p2351_p9, %p41_p12  ;;  %s2859_s10 = int_to_ptr.vmem [resolvable:$true] %s294_s10 }
  0x38   : > { %s2865_s17 = scalar_lea.sflag [#allocation4], %s283_s16  ;;  %s2603_s19 = scalar_lea.hbm %s2857_s25, 1024 }
  0x39   : > { %p2604_p13 = scmp.ne.s32.totalorder %s2857_s25, %s2603_s19  ;;  %p2605_p0 = pneg %p2861_p11 }
  0x3a   : > { %s2608_s22 = scalar_lea.hbm %s3294_s0, 2048  ;;  %p2609_p1 = scmp.lt.s32.totalorder %s2857_s25, %s3294_s0 }
  0x3b   : > { %p2606_p5 = pnand %p2605_p0, %p2604_p13  ;;  %p2610_p2 = scmp.lt.s32.totalorder %s2608_s22, %s2603_s19 }
  0x3d   : > { %p2607_p10 = pneg %p2606_p5  ;;  %p2611_p6 = por %p2610_p2, %p2609_p1 }
  0x3f   : > { %p2612_p12 = pnand %p2611_p6, %p2607_p10 }
  0x41   : > { %2615 = shalt.err (!%p2612_p12)
}
  0x42   : > { %s2616_s16 = scalar_lea.vmem %s2859_s10, 1024  ;;  %s2707_s4 = smov [#allocation3]  }
  0x43   : > { %p2617_p3 = scmp.ne.s32.totalorder %s2859_s10, %s2616_s16  ;;  %s2621_s6 = sshll.u32 %s2707_s4, 4  ;;  %s2622_s6 = int_to_ptr.vmem [resolvable:$false] %s2621_s6 }
  0x44   : > { %s2623_s18 = scalar_lea.vmem %s2622_s6, 2048  ;;  %p2624_p5 = scmp.lt.s32.totalorder %s2859_s10, %s2622_s6 }
  0x45   : > { %p2619_p9 = pnand %p2617_p3, %p2605_p0  ;;  %p2625_p7 = scmp.lt.s32.totalorder %s2623_s18, %s2616_s16 }
  0x47   : > { %p2620_p13 = pneg %p2619_p9  ;;  %p2626_p4 = por %p2625_p7, %p2624_p5 }
  0x49   : > { %p2627_p8 = pnand %p2626_p4, %p2620_p13 }
  0x4b   : > { %2630 = shalt.err (!%p2627_p8)
}
  0x4c   : > { %s2708_s19 = smov 128   ;;  %s2709_s23 = smov 8  }
  0x4d   : > { %2344 = dma.hbm_to_vmem [thread:$0]  (!%p2861_p11), %s2857_s25, 1024, %s2859_s10, %s2865_s17, %s2708_s19, %s2708_s19, %s2709_s23  }
  0x4e   : > { %p3318_p0 = scmp.ne.s32.totalorder %s3311_s13, 0 }
  0x4f   : > { %s2889_s4 = sand.u32 (!%p3318_p0), 1, %s2691_s28   ;;  %p3319_p4 = scmp.ne.s32.totalorder (!%p3318_p0), %s3309_s11, 0 }
  0x50   : > { %306 = sbr.rel (%p3318_p0) target bundleno = 831 (0x33f), region = 52  ;;  %s1996_s6 = sshll.u32 (!%p3318_p0), %s2889_s4, 6 }
  0x51   : > { %s309_s22 = scalar_lea.sflag (!%p3318_p0), [#allocation4], %s2889_s4  ;;  %s2895_s24 = scalar_lea.vmem (!%p3318_p0), [#allocation3], %s1996_s6 }
  0x55   : > { %2674 = dma.done.wait (%p3319_p4), %s309_s22, 1024  }
  0x56   : > { %2676 = vsyncadd (%p3319_p4), %s309_s22, 4294966272  ;;  %p3320_p8 = scmp.eq.s32.totalorder %s2783_s9, 0 }
  0x58   : > { %2678 = dma.done.wait (%p3320_p8), [#allocation7], 10240   ;;  %p3321_p7 = pmov %p3320_p8 }
  0x59   : > { %v2710_v0 = vmov 1   ;;  %v2415_v1 = vld [vmem:[%s3296_s2 + $0x38] sm:$0xff]   ;;  %v2416_v2 = vld [vmem:[%s3296_s2 + $0x30] sm:$0xff]   ;;  %v2417_v3 = vld [vmem:[%s3296_s2 + $0x28] sm:$0xff]   ;;  %v2711_v20 = vmov 0   ;;  %s3228_s10 = scalar_lea.vmem [#allocation9], %s1996_s6 }
  0x5a   : > { %2680 = vsyncadd (%p3321_p7), [#allocation7], 4294957056  ;;  %2402 = vset.pattern.permute.xlu1 %v2710_v0  ;;  %2401 = vset.pattern.permute.xlu0 %v2710_v0  ;;  %v2418_v4 = vld [vmem:[%s3296_s2 + $0x20] sm:$0xff]   ;;  %v355_v6 = vld [vmem:[%s2895_s24 + $0x8] sm:$0xff]  ;;  %s1895_s6 = sshll.u32 %s3228_s10, 4  ;;  %s2157_s11 = sshll.u32 %s2783_s9, 10  ;;  %s3242_s6 = int_to_ptr.vmem [resolvable:$true] %s1895_s6 }
  0x5b   : > { %2234 = vmatprep.subr.bf16.mxu0 %v2415_v1  ;;  %v354_v5 = vld [vmem:[%s2895_s24] sm:$0xff]  ;;  %v2924_v8 = vld [vmem:[%s3295_s1 + $0x10] sm:$0xff]  ;;  %v2419_v10 = vld [vmem:[%s3296_s2 + $0x18] sm:$0xff]   ;;  %s3249_s26 = scalar_lea.hbm %s3302_s8, %s2157_s11  ;;  %s1882_s16 = scalar_lea.sflag [#allocation5], %s2889_s4 }
  0x5c   : > { %2235 = vmatpush3.bf16.msra.mxu0 %v2415_v1  ;;  %v362_v7 = vpack.c.bf16 %v355_v6, %v354_v5  ;;  %v2929_v9 = vld [vmem:[%s3295_s1] sm:$0xff]  ;;  %575 = vperm.xlu1 %2402, %v2924_v8   ;;  %v2938_v11 = vld [vmem:[%s3295_s1 + $0x18] sm:$0xff]  ;;  %v2425_v13 = vld [vmem:[#allocation6 + $0xa8] ss:$12 sps:$4 sm:$0xff]   ;;  %s2631_s18 = scalar_lea.vmem %s3242_s6, 1024  ;;  %p3322_p10 = scmp.ne.s32.totalorder %s3316_s21, 0 }
  0x5d   : > { %2236 = vmatprep.subr.bf16.mxu0 %v2416_v2  ;;  %567 = vperm.xlu0 %2401, %v2929_v9   ;;  %v2423_v12 = vld [vmem:[#allocation6 + $0xac] ss:$12 sps:$4 sm:$0xff]   ;;  %v2420_v14 = vld [vmem:[%s3296_s2 + $0x10] sm:$0xff]   ;;  %v2429_v18 = vld [vmem:[#allocation6 + $0x7c] ss:$12 sps:$4 sm:$0xff]   ;;  %p2632_p11 = scmp.ne.s32.totalorder %s3242_s6, %s2631_s18  ;;  %s2714_s9 = smov [#allocation9]  }
  0x5e   : > { %2250 = vmatprep.mubr.bf16.mxu0 %v362_v7  ;;  %v2426_v15 = vld [vmem:[#allocation6 + $0x94] ss:$12 sps:$4 sm:$0xff]   ;;  %v2948_v16 = vld [vmem:[%s3295_s1 + $0x8] sm:$0xff]  ;;  %1286 = vmatprep.subr.bf16.mxu1 %v2423_v12  ;;  %v2428_v17 = vld [vmem:[#allocation6 + $0x90] ss:$12 sps:$4 sm:$0xff]   ;;  %s2635_s19 = sshll.u32 %s2714_s9, 4  ;;  %s2636_s19 = int_to_ptr.vmem [resolvable:$false] %s2635_s19 }
  0x5f   : > { %1287 = vmatpush1.bf16.msra.mxu1 %v2425_v13  ;;  %v2421_v19 = vld [vmem:[%s3296_s2 + $0x8] sm:$0xff]   ;;  %v2422_v21 = vld [vmem:[%s3296_s2] sm:$0xff]   ;;  %v356_v25 = vld [vmem:[%s2895_s24 + $0x10] sm:$0xff]  ;;  %p2633_p1 = pnand %p2632_p11, %p3322_p10  ;;  %s2637_s23 = scalar_lea.vmem %s2636_s19, 2048 }
  0x60   : > { %2237 = vmatpush3.bf16.msra.mxu0 %v2416_v2  ;;  %579 = vperm.xlu1 %2402, %v2938_v11   ;;  %v2964_v22 = vld [vmem:[%s3295_s1 + $0x20] sm:$0xff]  ;;  %v2969_v23 = vld [vmem:[%s3295_s1 + $0x28] sm:$0xff]  ;;  %v357_v26 = vld [vmem:[%s2895_s24 + $0x18] sm:$0xff]  ;;  %p2638_p6 = scmp.lt.s32.totalorder %s3242_s6, %s2636_s19  ;;  %p2639_p12 = scmp.lt.s32.totalorder %s2637_s23, %s2631_s18 }
  0x61   : > { %2238 = vmatprep.subr.bf16.mxu0 %v2417_v3  ;;  %571 = vperm.xlu0 %2401, %v2948_v16   ;;  %v2431_v24 = vld [vmem:[#allocation6 + $0x78] ss:$12 sps:$4 sm:$0xff]   ;;  %v359_v29 = vld [vmem:[%s2895_s24 + $0x28] sm:$0xff]  ;;  %v2982_v31 = vld [vmem:[%s3295_s1 + $0x30] sm:$0xff]  ;;  %v363_v34 = vpack.c.bf16 %v357_v26, %v356_v25  ;;  %p2634_p2 = pneg %p2633_p1 }
  0x62   : > { %1288 = vmatprep.subr.bf16.mxu1 %v2426_v15  ;;  %v2432_v27 = vld [vmem:[#allocation6 + $0x64] ss:$12 sps:$4 sm:$0xff]   ;;  %v2434_v30 = vld [vmem:[#allocation6 + $0x60] ss:$12 sps:$4 sm:$0xff]   ;;  %v2437_v35 = vld [vmem:[#allocation6 + $0x48] ss:$12 sps:$4 sm:$0xff]   ;;  %p2640_p3 = por %p2639_p12, %p2638_p6 }
  0x63   : > { %1289 = vmatpush1.bf16.msra.mxu1 %v2428_v17  ;;  %v358_v28 = vld [vmem:[%s2895_s24 + $0x20] sm:$0xff]  ;;  %v2435_v32 = vld [vmem:[#allocation6 + $0x4c] ss:$12 sps:$4 sm:$0xff]   ;;  %v2443_v38 = vld [vmem:[#allocation6 + $0x228] ss:$12 sps:$4 sm:$0xff]  }
  0x64   : > { %2239 = vmatpush3.bf16.msra.mxu0 %v2417_v3  ;;  %2404 = vset.pattern.permute.xlu1 %v2711_v20  ;;  %v2445_v33 = vld [vmem:[#allocation6 + $0x22c] ss:$12 sps:$4 sm:$0xff]   ;;  %v364_v36 = vpack.c.bf16 %v359_v29, %v358_v28  ;;  %v2438_v37 = vld [vmem:[#allocation6 + $0x34] ss:$12 sps:$4 sm:$0xff]   ;;  %v2440_v42 = vld [vmem:[#allocation6 + $0x30] ss:$12 sps:$4 sm:$0xff]   ;;  %p2641_p9 = pnand %p2640_p3, %p2634_p2 }
  0x65   : > { %2240 = vmatprep.subr.bf16.mxu0 %v2418_v4  ;;  %525 = vperm.xlu1 %2404, %v2948_v16   ;;  %v360_v39 = vld [vmem:[%s2895_s24 + $0x30] sm:$0xff]  ;;  %v361_v40 = vld [vmem:[%s2895_s24 + $0x38] sm:$0xff]  ;;  %v2452_v49 = vld [vmem:[#allocation6] ss:$12 sps:$4 sm:$0xff]  }
  0x66   : > { %2403 = vset.pattern.permute.xlu0 %v2711_v20  ;;  %1290 = vmatprep.subr.bf16.mxu1 %v2429_v18  ;;  %v2451_v41 = vld [vmem:[#allocation6 + $0x214] ss:$12 sps:$4 sm:$0xff]   ;;  %v2993_v43 = vld [vmem:[%s3295_s1 + $0x38] sm:$0xff]  ;;  %v365_v46 = vpack.c.bf16 %v361_v40, %v360_v39  ;;  %v2447_v48 = vld [vmem:[#allocation6 + $0x4] ss:$12 sps:$4 sm:$0xff]  }
  0x67   : > { %520 = vperm.xlu0 %2403, %v2929_v9   ;;  %1291 = vmatpush1.bf16.msra.mxu1 %v2431_v24  ;;  %v2441_v44 = vld [vmem:[#allocation6 + $0x1c] ss:$12 sps:$4 sm:$0xff]   ;;  %v2446_v47 = vld [vmem:[#allocation6 + $0x18] ss:$12 sps:$4 sm:$0xff]   ;;  %v2459_v54 = vld [vmem:[#allocation6 + $0x154] ss:$12 sps:$4 sm:$0xff]  }
  0x68   : > { %2241 = vmatpush3.bf16.msra.mxu0 %v2418_v4  ;;  %1292 = vmatprep.subr.bf16.mxu1 %v2432_v27  ;;  %v2449_v45 = vld [vmem:[#allocation6 + $0x210] ss:$12 sps:$4 sm:$0xff]   ;;  %v2453_v50 = vld [vmem:[#allocation6 + $0x16c] ss:$12 sps:$4 sm:$0xff]   ;;  %v2458_v52 = vld [vmem:[#allocation6 + $0x168] ss:$12 sps:$4 sm:$0xff]  }
  0x69   : > { %2242 = vmatprep.subr.bf16.mxu0 %v2419_v10  ;;  %2405 = vset.pattern.permute.xlu1 %v2710_v0  ;;  %v2457_v51 = vld [vmem:[#allocation6 + $0x1fc] ss:$12 sps:$4 sm:$0xff]   ;;  %v2455_v53 = vld [vmem:[#allocation6 + $0x1f8] ss:$12 sps:$4 sm:$0xff]   ;;  %v2461_v57 = vld [vmem:[#allocation6 + $0x1e0] ss:$12 sps:$4 sm:$0xff]  }
  0x6a   : > { %583 = vperm.xlu1 %2405, %v2964_v22   ;;  %v2463_v55 = vld [vmem:[#allocation6 + $0x1e4] ss:$12 sps:$4 sm:$0xff]   ;;  %v2465_v58 = vld [vmem:[#allocation6 + $0x13c] ss:$12 sps:$4 sm:$0xff]   ;;  %v2469_v59 = vld [vmem:[#allocation6 + $0x1cc] ss:$12 sps:$4 sm:$0xff]  }
  0x6b   : > { %2406 = vset.pattern.permute.xlu0 %v2710_v0  ;;  %1293 = vmatpush1.bf16.msra.mxu1 %v2434_v30  ;;  %v2464_v56 = vld [vmem:[#allocation6 + $0x150] ss:$12 sps:$4 sm:$0xff]   ;;  %v2470_v60 = vld [vmem:[#allocation6 + $0x138] ss:$12 sps:$4 sm:$0xff]   ;;  %v2467_v61 = vld [vmem:[#allocation6 + $0x1c8] ss:$12 sps:$4 sm:$0xff]  }
  0x6c   : > { %2243 = vmatpush3.bf16.msra.mxu0 %v2419_v10  ;;  %587 = vperm.xlu0 %2406, %v2969_v23   ;;  %v2471_v62 = vld [vmem:[#allocation6 + $0x124] ss:$12 sps:$4 sm:$0xff]   ;;  %v2475_v63 = vld [vmem:[#allocation6 + $0x1b4] ss:$12 sps:$4 sm:$0xff]   ;;  %v2477_v2 = vld [vmem:[#allocation6 + $0x10c] ss:$12 sps:$4 sm:$0xff]  }
  0x6d   : > { %2244 = vmatprep.subr.bf16.mxu0 %v2420_v14  ;;  %1294 = vmatprep.subr.bf16.mxu1 %v2435_v32  ;;  %v2473_v1 = vld [vmem:[#allocation6 + $0x1b0] ss:$12 sps:$4 sm:$0xff]   ;;  %v2482_v4 = vld [vmem:[#allocation6 + $0x108] ss:$12 sps:$4 sm:$0xff]   ;;  %v2479_v5 = vld [vmem:[#allocation6 + $0x198] ss:$12 sps:$4 sm:$0xff]  }
  0x6e   : > { %2407 = vset.pattern.permute.xlu1 %v2711_v20  ;;  %v2481_v3 = vld [vmem:[#allocation6 + $0x19c] ss:$12 sps:$4 sm:$0xff]   ;;  %v2483_v6 = vld [vmem:[#allocation6 + $0xf4] ss:$12 sps:$4 sm:$0xff]   ;;  %v2487_v7 = vld [vmem:[#allocation6 + $0x184] ss:$12 sps:$4 sm:$0xff]  }
  0x6f   : > { %530 = vperm.xlu1 %2407, %v2924_v8   ;;  %1295 = vmatpush1.bf16.msra.mxu1 %v2437_v35  ;;  %v2488_v10 = vld [vmem:[#allocation6 + $0xf0] ss:$12 sps:$4 sm:$0xff]   ;;  %v2485_v12 = vld [vmem:[#allocation6 + $0x180] ss:$12 sps:$4 sm:$0xff]   ;;  %v2492_v15 = vld [vmem:[#allocation6 + $0xd8] ss:$12 sps:$4 sm:$0xff]  }
  0x70   : > { %2245 = vmatpush3.bf16.msra.mxu0 %v2420_v14  ;;  %591 = vperm.xlu0 %2406, %v2982_v31   ;;  %v2489_v13 = vld [vmem:[#allocation6 + $0xdc] ss:$12 sps:$4 sm:$0xff]   ;;  %v2495_v17 = vld [vmem:[#allocation6 + $0xc4] ss:$12 sps:$4 sm:$0xff]   ;;  %v2498_v18 = vld [vmem:[#allocation6 + $0xc0] ss:$12 sps:$4 sm:$0xff]  }
  0x71   : > { %2246 = vmatprep.subr.bf16.mxu0 %v2421_v19  ;;  %1296 = vmatprep.subr.bf16.mxu1 %v2438_v37  ;;  %v2491_v14 = vld [vmem:[#allocation6 + $0x170] ss:$12 sps:$4 sm:$0xff]   ;;  %v2713_v24 = vmov 3  }
  0x73   : > { %535 = vperm.xlu1 %2407, %v2938_v11   ;;  %1297 = vmatpush1.bf16.msra.mxu1 %v2440_v42 }
  0x74   : > { %2247 = vmatpush3.bf16.msra.mxu0 %v2421_v19  ;;  %2409 = vset.pattern.permute.xlu0 %v2711_v20  ;;  %v3004_v19 = vld [vmem:[#allocation6 + $0x230] ss:$12 sps:$4 sm:$0xff]  }
  0x75   : > { %2248 = vmatprep.subr.bf16.mxu0 %v2422_v21  ;;  %540 = vperm.xlu0 %2409, %v2964_v22  }
  0x76   : > { %1298 = vmatprep.subr.bf16.mxu1 %v2441_v44 }
  0x77   : > { %2408 = vset.pattern.permute.xlu1 %v2710_v0  ;;  %1299 = vmatpush1.bf16.msra.mxu1 %v2446_v47  ;;  %v2476_v0 = vld [vmem:[#allocation6 + $0x120] ss:$12 sps:$4 sm:$0xff]  }
  0x78   : > { %2249 = vmatpush3.bf16.msra.mxu0 %v2422_v21  ;;  %595 = vperm.xlu1 %2408, %v2993_v43   ;;  %v2712_v21 = vmov 2  }
  0x79   : > { %1359 = vmatprep.subr.bf16.mxu0 %v2445_v33  ;;  %555 = vperm.xlu0 %2409, %v2993_v43  }
  0x7a   : > { %1300 = vmatprep.subr.bf16.mxu1 %v2447_v48 }
  0x7b   : > { %2251 = vmatmul.mubr.bf16.vlgmr.msra.gmra.mxu0 %v363_v34  ;;  %1301 = vmatpush1.bf16.msra.mxu1 %v2452_v49 }
  0x7c   : > { %2254 = vmatprep.mubr.bf16.mxu0 %v364_v36  ;;  %1360 = vmatpush1.bf16.msra.mxu0 %v2443_v38 }
  0x7d   : > { %1361 = vmatprep.subr.bf16.mxu0 %v2451_v41  ;;  %2410 = vset.pattern.permute.xlu1 %v2711_v20 }
  0x7e   : > { %545 = vperm.xlu1 %2410, %v2969_v23   ;;  %1302 = vmatprep.subr.bf16.mxu1 %v2453_v50 }
  0x7f   : > { %1303 = vmatpush2.bf16.msra.mxu1 %v2458_v52  ;;  %2412 = vset.pattern.permute.xlu0 %v2712_v21 }
  0x80   : > { %1362 = vmatpush1.bf16.msra.mxu0 %v2449_v45  ;;  %1304 = vmatprep.subr.bf16.mxu1 %v2459_v54 }
  0x81   : > { %1363 = vmatprep.subr.bf16.mxu0 %v2457_v51  ;;  %1586 = vperm.xlu0 %2412, %v2948_v16  }
  0x82   : > { %550 = vperm.xlu1 %2410, %v2982_v31  }
  0x83   : > { %2255 = vmatmul.mubr.bf16.gmra.mxu0 %v365_v46  ;;  %1305 = vmatpush2.bf16.msra.mxu1 %v2464_v56 }
  0x84   : > { %1391 = vmatprep.mubr.bf16.mxu0 %v2711_v20  ;;  %1364 = vmatpush1.bf16.msra.mxu0 %v2455_v53 }
  0x85   : > { %1365 = vmatprep.subr.bf16.mxu0 %v2463_v55  ;;  %1306 = vmatprep.subr.bf16.mxu1 %v2465_v58 }
  0x86   : > { %2411 = vset.pattern.permute.xlu1 %v2712_v21  ;;  %1590 = vperm.xlu0 %2412, %v2924_v8  }
  0x87   : > { %1307 = vmatpush2.bf16.msra.mxu1 %v2470_v60  ;;  %1582 = vperm.xlu1 %2411, %v2929_v9  }
  0x88   : > { %1366 = vmatpush1.bf16.msra.mxu0 %v2461_v57  ;;  %1308 = vmatprep.subr.bf16.mxu1 %v2471_v62 }
  0x89   : > { %1367 = vmatprep.subr.bf16.mxu0 %v2469_v59 }
  0x8a   : > { %1606 = vperm.xlu0 %2412, %v2982_v31  }
  0x8b   : > { %1309 = vmatpush2.bf16.msra.mxu1 %v2476_v0  ;;  %1598 = vperm.xlu1 %2411, %v2964_v22  }
  0x8c   : > { %1368 = vmatpush1.bf16.msra.mxu0 %v2467_v61  ;;  %1310 = vmatprep.subr.bf16.mxu1 %v2477_v2 }
  0x8d   : > { %1369 = vmatprep.subr.bf16.mxu0 %v2475_v63 }
  0x8e   : > { %2413 = vset.pattern.permute.xlu0 %v2713_v24 }
  0x8f   : > { %1311 = vmatpush2.bf16.msra.mxu1 %v2482_v4  ;;  %1602 = vperm.xlu1 %2411, %v2969_v23  }
  0x90   : > { %1370 = vmatpush1.bf16.msra.mxu0 %v2473_v1  ;;  %1312 = vmatprep.subr.bf16.mxu1 %v2483_v6 }
  0x91   : > { %1371 = vmatprep.subr.bf16.mxu0 %v2481_v3  ;;  %1647 = vperm.xlu0 %2413, %v2929_v9  }
  0x93   : > { %1313 = vmatpush2.bf16.msra.mxu1 %v2488_v10  ;;  %1594 = vperm.xlu1 %2411, %v2938_v11  }
  0x94   : > { %1372 = vmatpush1.bf16.msra.mxu0 %v2479_v5  ;;  %1314 = vmatprep.subr.bf16.mxu1 %v2489_v13 }
  0x95   : > { %1373 = vmatprep.subr.bf16.mxu0 %v2487_v7  ;;  %1667 = vperm.xlu0 %2413, %v2969_v23  }
  0x97   : > { %1315 = vmatpush2.bf16.msra.mxu1 %v2492_v15  ;;  %1610 = vperm.xlu1 %2411, %v2993_v43  }
  0x98   : > { %1374 = vmatpush1.bf16.msra.mxu0 %v2485_v12  ;;  %1316 = vmatprep.subr.bf16.mxu1 %v2495_v17 }
  0x99   : > { %2170 = vmatprep.subr.bf16.mxu0 %v2491_v14  ;;  %1659 = vperm.xlu0 %2413, %v2938_v11   ;;  %v3032_v11 = vld [vmem:[%s3297_s3] ss:$0 sm:$0xff] }
  0x9b   : > { %1317 = vmatpush2.bf16.msra.mxu1 %v2498_v18  ;;  %2414 = vset.pattern.permute.xlu1 %v2713_v24 }
  0x9c   : > { %2258 = vmatprep.subr.bf16.mxu1 %v3004_v19  ;;  %1651 = vperm.xlu1 %2414, %v2948_v16  }
  0x9d   : > { %1675 = vperm.xlu0 %2413, %v2993_v43  }
  0xa0   : > { %1663 = vperm.xlu1 %2414, %v2964_v22  }
  0xa4   : > { %1655 = vperm.xlu1 %2414, %v2924_v8  }
  0xa8   : > { %1671 = vperm.xlu1 %2414, %v2982_v31  }
  0xd7   : > { %v576_v25 = vpop.permute.xlu1 %575 }
  0xd8   : > { %v568_v27 = vpop.permute.xlu0 %567 }
  0xdb   : > { %v3017_v26 = vpop.permute.xlu1 %579 }
  0xdc   : > { %v572_v29 = vpop.permute.xlu0 %571 }
  0xe0   : > { %v526_v28 = vpop.permute.xlu1 %525 }
  0xe2   : > { %v3027_v23 = vpop.permute.xlu0 %520 }
  0xe5   : > { %v3024_v9 = vpop.permute.xlu1 %583 }
  0xe7   : > { %v588_v32 = vpop.permute.xlu0 %587 }
  0xea   : > { %v531_v30 = vpop.permute.xlu1 %530 }
  0xeb   : > { %v3035_v34 = vpop.permute.xlu0 %591 }
  0xee   : > { %v536_v16 = vpop.permute.xlu1 %535 }
  0xf0   : > { %v541_v48 = vpop.permute.xlu0 %540 }
  0xf3   : > { %v596_v41 = vpop.permute.xlu1 %595 }
  0xf4   : > { %v556_v63 = vpop.permute.xlu0 %555 }
  0xf9   : > { %v546_v5 = vpop.permute.xlu1 %545 }
 0x13b   : > { %v2252_v22 = vpop.f32.mrf.mxu0 }
 0x13c   : > { %v488_v33 = vadd.f32 %v2252_v22, %v3032_v11 }
 0x13d   : > { %v479_v8 = vpop.f32.mrf.mxu0 }
 0x13e   : > { %v512_v35 = vmax.f32 %v488_v33, 0.0  ;;  %v480_v36 = vadd.f32 %v3032_v11, %v479_v8 }
 0x13f   : > { %v2253_v31 = vpop.f32.mrf.mxu0 }
 0x140   : > { %v599_v37 = vmul.f32 %v572_v29, %v512_v35  ;;  %v2143_v38 = vpack.c.bf16 %v512_v35, %v512_v35  ;;  %v561_v39 = vmul.f32 %v536_v16, %v512_v35  ;;  %v510_v40 = vmax.f32 %v480_v36, 0.0 }
 0x141   : > { %v491_v42 = vadd.f32 %v2253_v31, %v3032_v11  ;;  %v482_v43 = vpop.f32.mrf.mxu0 }
 0x142   : > { %680 = vst [vmem:[#allocation2 + $0x1c] sm:$0xf] %v2143_v38  ;;  %v2150_v44 = vpack.c.bf16 %v599_v37, %v599_v37  ;;  %v2136_v45 = vpack.c.bf16 %v561_v39, %v561_v39  ;;  %v559_v46 = vmul.f32 %v526_v28, %v510_v40  ;;  %v2141_v47 = vpack.c.bf16 %v510_v40, %v510_v40 }
 0x143   : > { %v513_v49 = vmax.f32 %v491_v42, 0.0  ;;  %v605_v50 = vmul.f32 %v596_v41, %v510_v40  ;;  %v483_v51 = vadd.f32 %v3032_v11, %v482_v43  ;;  %v2256_v52 = vpop.f32.mrf.mxu0  ;;  %v2497_v40 = vld [vmem:[#allocation6 + $0x158] ss:$12 sps:$4 sm:$0xff]   ;;  %v2508_v43 = vld [vmem:[#allocation6 + $0x80] ss:$12 sps:$4 sm:$0xff]  }
 0x144   : > { %719 = vst [vmem:[#allocation2 + $0x14] sm:$0xf] %v2150_v44  ;;  %641 = vst [vmem:[#allocation2 + $0x24] sm:$0xf] %v2136_v45  ;;  %v2134_v53 = vpack.c.bf16 %v559_v46, %v559_v46  ;;  %v504_v54 = vadd.f32 %v2256_v52, %v3032_v11  ;;  %v2499_v42 = vld [vmem:[#allocation6 + $0x98] ss:$12 sps:$4 sm:$0xff]  }
 0x145   : > { %678 = vst [vmem:[#allocation2 + $0x4] sm:$0xf] %v2141_v47  ;;  %v600_v55 = vmul.f32 %v576_v25, %v513_v49  ;;  %v2144_v56 = vpack.c.bf16 %v513_v49, %v513_v49  ;;  %v2156_v57 = vpack.c.bf16 %v605_v50, %v605_v50  ;;  %v511_v58 = vmax.f32 %v483_v51, 0.0  ;;  %v495_v59 = vpop.f32.mrf.mxu0  ;;  %v2509_v46 = vld [vmem:[#allocation6 + $0x128] ss:$12 sps:$4 sm:$0xff]  }
 0x146   : > { %639 = vst [vmem:[#allocation2 + $0xc] sm:$0xf] %v2134_v53  ;;  %v562_v60 = vmul.f32 %v541_v48, %v513_v49  ;;  %v516_v61 = vmax.f32 %v504_v54, 0.0  ;;  %v496_v62 = vadd.f32 %v3032_v11, %v495_v59  ;;  %v2510_v48 = vld [vmem:[#allocation6 + $0x218] ss:$12 sps:$4 sm:$0xff]  }
 0x147   : > { %681 = vst [vmem:[#allocation2 + $0x28] sm:$0xf] %v2144_v56  ;;  %v2151_v0 = vpack.c.bf16 %v600_v55, %v600_v55  ;;  %725 = vst [vmem:[#allocation2 + $0x5c] sm:$0xf] %v2156_v57  ;;  %v560_v1 = vmul.f32 %v531_v30, %v511_v58  ;;  %v598_v2 = vmul.f32 %v568_v27, %v511_v58  ;;  %v2257_v4 = vpop.f32.mrf.mxu0  ;;  %v2511_v50 = vld [vmem:[#allocation6 + $0x68] ss:$12 sps:$4 sm:$0xff]  }
 0x148   : > { %v2142_v3 = vpack.c.bf16 %v511_v58, %v511_v58  ;;  %v2137_v6 = vpack.c.bf16 %v562_v60, %v562_v60  ;;  %v603_v7 = vmul.f32 %v588_v32, %v516_v61  ;;  %v2147_v10 = vpack.c.bf16 %v516_v61, %v516_v61  ;;  %v2513_v51 = vld [vmem:[#allocation6 + $0x110] ss:$12 sps:$4 sm:$0xff]   ;;  %v2514_v52 = vld [vmem:[#allocation6 + $0x200] ss:$12 sps:$4 sm:$0xff]   ;;  %v2519_v55 = vld [vmem:[#allocation6 + $0xf8] ss:$12 sps:$4 sm:$0xff]  }
 0x149   : > { %v514_v12 = vmax.f32 %v496_v62, 0.0  ;;  %720 = vst [vmem:[#allocation2 + $0x20] sm:$0xf] %v2151_v0  ;;  %v2135_v13 = vpack.c.bf16 %v560_v1, %v560_v1  ;;  %v2149_v14 = vpack.c.bf16 %v598_v2, %v598_v2  ;;  %v507_v15 = vadd.f32 %v2257_v4, %v3032_v11  ;;  %v498_v18 = vpop.f32.mrf.mxu0  ;;  %v2518_v54 = vld [vmem:[#allocation6 + $0x50] ss:$12 sps:$4 sm:$0xff]  }
 0x14a   : > { %679 = vst [vmem:[#allocation2 + $0x10] sm:$0xf] %v2142_v3  ;;  %v565_v17 = vmul.f32 %v556_v63, %v516_v61  ;;  %642 = vst [vmem:[#allocation2 + $0x30] sm:$0xf] %v2137_v6  ;;  %v2154_v21 = vpack.c.bf16 %v603_v7, %v603_v7  ;;  %v499_v30 = vadd.f32 %v3032_v11, %v498_v18  ;;  %v2520_v58 = vld [vmem:[#allocation6 + $0x1e8] ss:$12 sps:$4 sm:$0xff]  }
 0x14b   : > { %684 = vst [vmem:[#allocation2 + $0x4c] sm:$0xf] %v2147_v10  ;;  %v601_v24 = vmul.f32 %v3017_v26, %v514_v12  ;;  %v2145_v25 = vpack.c.bf16 %v514_v12, %v514_v12  ;;  %v563_v27 = vmul.f32 %v546_v5, %v514_v12  ;;  %640 = vst [vmem:[#allocation2 + $0x18] sm:$0xf] %v2135_v13  ;;  %v517_v28 = vmax.f32 %v507_v15, 0.0  ;;  %v551_v26 = vpop.permute.xlu1 %550  ;;  %v2535_v6 = vld [vmem:[#allocation8 + $0x38] sm:$0xff]  }
 0x14c   : > { %718 = vst [vmem:[#allocation2 + $0x8] sm:$0xf] %v2149_v14  ;;  %v2140_v29 = vpack.c.bf16 %v565_v17, %v565_v17  ;;  %723 = vst [vmem:[#allocation2 + $0x44] sm:$0xf] %v2154_v21  ;;  %v515_v35 = vmax.f32 %v499_v30, 0.0  ;;  %v2536_v7 = vld [vmem:[#allocation8 + $0x30] sm:$0xff]  }
 0x14d   : > { %682 = vst [vmem:[#allocation2 + $0x34] sm:$0xf] %v2145_v25  ;;  %v2152_v32 = vpack.c.bf16 %v601_v24, %v601_v24  ;;  %v2138_v16 = vpack.c.bf16 %v563_v27, %v563_v27  ;;  %v558_v22 = vmul.f32 %v3027_v23, %v517_v28  ;;  %v604_v33 = vmul.f32 %v3035_v34, %v517_v28  ;;  %v2494_v23 = vld [vmem:[#allocation6 + $0xb0] ss:$12 sps:$4 sm:$0xff]   ;;  %v2523_v59 = vld [vmem:[#allocation6 + $0xe0] ss:$12 sps:$4 sm:$0xff]  }
 0x14e   : > { %v2148_v8 = vpack.c.bf16 %v517_v28, %v517_v28  ;;  %645 = vst [vmem:[#allocation2 + $0x54] sm:$0xf] %v2140_v29  ;;  %v602_v37 = vmul.f32 %v3024_v9, %v515_v35  ;;  %v2146_v11 = vpack.c.bf16 %v515_v35, %v515_v35  ;;  %v564_v38 = vmul.f32 %v551_v26, %v515_v35  ;;  %v2503_v9 = vld [vmem:[#allocation6 + $0x140] ss:$12 sps:$4 sm:$0xff]   ;;  %v3054_v47 = vld [vmem:[#allocation2 + $0x1c] ss:$12 sps:$4 sm:$0xff]  }
 0x14f   : > { %721 = vst [vmem:[#allocation2 + $0x2c] sm:$0xf] %v2152_v32  ;;  %643 = vst [vmem:[#allocation2 + $0x3c] sm:$0xf] %v2138_v16  ;;  %v2133_v36 = vpack.c.bf16 %v558_v22, %v558_v22  ;;  %v2155_v31 = vpack.c.bf16 %v604_v33, %v604_v33  ;;  %v2524_v60 = vld [vmem:[#allocation6 + $0x1d0] ss:$12 sps:$4 sm:$0xff]   ;;  %v3076_v22 = vpop.permute.xlu1 %1582 }
 0x150   : > { %685 = vst [vmem:[#allocation2 + $0x58] sm:$0xf] %v2148_v8  ;;  %683 = vst [vmem:[#allocation2 + $0x40] sm:$0xf] %v2146_v11  ;;  %v2153_v39 = vpack.c.bf16 %v602_v37, %v602_v37  ;;  %v2139_v34 = vpack.c.bf16 %v564_v38, %v564_v38  ;;  %v2528_v62 = vld [vmem:[#allocation6 + $0x20] ss:$12 sps:$4 sm:$0xff]  }
 0x151   : > { %638 = vst [vmem:[#allocation2] sm:$0xf] %v2133_v36  ;;  %724 = vst [vmem:[#allocation2 + $0x50] sm:$0xf] %v2155_v31  ;;  %v2502_v45 = vld [vmem:[#allocation2 + $0x4] ss:$12 sps:$4 sm:$0xff]  }
 0x152   : > { %722 = vst [vmem:[#allocation2 + $0x38] sm:$0xf] %v2153_v39  ;;  %644 = vst [vmem:[#allocation2 + $0x48] sm:$0xf] %v2139_v34  ;;  %1318 = vmatprep.mubr.bf16.mxu1 %v2502_v45  ;;  %v2512_v53 = vld [vmem:[#allocation2 + $0x18] ss:$12 sps:$4 sm:$0xff]  }
 0x153   : > { %v3048_v41 = vld [vmem:[#allocation2 + $0x8] ss:$12 sps:$4 sm:$0xff]   ;;  %v2530_v2 = vld [vmem:[#allocation6 + $0x1b8] ss:$12 sps:$4 sm:$0xff]   ;;  %v2533_v4 = vld [vmem:[#allocation6 + $0x1a0] ss:$12 sps:$4 sm:$0xff]   ;;  %v3086_v37 = vpop.permute.xlu1 %1598 }
 0x154   : > { %1392 = vmatmul.mubr.bf16.vlgmr.msra.gmra.mxu0 %v3048_v41  ;;  %v2529_v1 = vld [vmem:[#allocation6 + $0xc8] ss:$12 sps:$4 sm:$0xff]   ;;  %v2538_v12 = vld [vmem:[#allocation8 + $0x20] sm:$0xff]   ;;  %v2539_v13 = vld [vmem:[#allocation8 + $0x18] sm:$0xff]  }
 0x155   : > { %2171 = vmatpush3.bf16.msra.mxu0 %v2494_v23  ;;  %1401 = vmatprep.mubr.bf16.mxu0 %v2711_v20  ;;  %v2531_v3 = vld [vmem:[#allocation6 + $0x8] ss:$12 sps:$4 sm:$0xff]   ;;  %v2542_v17 = vld [vmem:[#allocation8] sm:$0xff]  }
 0x156   : > { %2172 = vmatprep.subr.bf16.mxu0 %v2497_v40  ;;  %v3056_v49 = vld [vmem:[#allocation2 + $0x20] ss:$12 sps:$4 sm:$0xff]   ;;  %v2522_v61 = vld [vmem:[#allocation2 + $0x30] ss:$12 sps:$4 sm:$0xff]   ;;  %v2534_v5 = vld [vmem:[#allocation6 + $0x188] ss:$12 sps:$4 sm:$0xff]  }
 0x157   : > { %v2515_v56 = vld [vmem:[#allocation2 + $0x34] ss:$12 sps:$4 sm:$0xff]   ;;  %v2525_v63 = vld [vmem:[#allocation2 + $0x4c] ss:$12 sps:$4 sm:$0xff]  }
 0x158   : > { %v3052_v44 = vld [vmem:[#allocation2] ss:$12 sps:$4 sm:$0xff]   ;;  %v2527_v0 = vld [vmem:[#allocation2 + $0x50] ss:$12 sps:$4 sm:$0xff]  }
 0x159   : > { %2173 = vmatpush3.bf16.msra.mxu0 %v2499_v42  ;;  %1319 = vmatmul.mubr.bf16.vlgmr.msra.gmra.mxu1 %v3052_v44  ;;  %v2517_v57 = vld [vmem:[#allocation2 + $0x38] ss:$12 sps:$4 sm:$0xff]   ;;  %v2537_v10 = vld [vmem:[#allocation8 + $0x28] sm:$0xff]   ;;  %v2540_v14 = vld [vmem:[#allocation8 + $0x10] sm:$0xff]  }
 0x15a   : > { %2174 = vmatprep.subr.bf16.mxu0 %v2503_v9  ;;  %1328 = vmatprep.mubr.bf16.mxu1 %v3054_v47  ;;  %v2541_v15 = vld [vmem:[#allocation8 + $0x8] sm:$0xff]  }
 0x15b   : > { %2259 = vmatpush3.bf16.msra.mxu1 %v3004_v19  ;;  %v2521_v19 = vld [vmem:[#allocation6 + $0x38] ss:$12 sps:$4 sm:$0xff]  }
 0x15c   : > { %1402 = vmatmul.mubr.bf16.gmra.mxu0 %v3056_v49  ;;  %2260 = vmatprep.subr.bf16.mxu1 %v2510_v48 }
 0x15d   : > { %2175 = vmatpush3.bf16.msra.mxu0 %v2508_v43  ;;  %1411 = vmatprep.mubr.bf16.mxu0 %v2711_v20 }
 0x15e   : > { %2176 = vmatprep.subr.bf16.mxu0 %v2509_v46  ;;  %v1587_v46 = vpop.permute.xlu0 %1586 }
 0x15f   : > { %2261 = vmatpush3.bf16.msra.mxu1 %v2510_v48 }
 0x160   : > { %2262 = vmatprep.subr.bf16.mxu1 %v2514_v52 }
 0x161   : > { %2177 = vmatpush3.bf16.msra.mxu0 %v2511_v50  ;;  %1329 = vmatmul.mubr.bf16.gmra.mxu1 %v2512_v53  ;;  %v1570_v50 = vlaneseq }
 0x162   : > { %2178 = vmatprep.subr.bf16.mxu0 %v2513_v51  ;;  %1338 = vmatprep.mubr.bf16.mxu1 %v2515_v56 }
 0x163   : > { %2263 = vmatpush3.bf16.msra.mxu1 %v2514_v52 }
 0x164   : > { %1412 = vmatmul.mubr.bf16.gmra.mxu0 %v2517_v57  ;;  %2264 = vmatprep.subr.bf16.mxu1 %v2520_v58 }
 0x165   : > { %2179 = vmatpush3.bf16.msra.mxu0 %v2518_v54  ;;  %1421 = vmatprep.mubr.bf16.mxu0 %v2711_v20  ;;  %v2532_v20 = vld [vmem:[#allocation2 + $0x48] ss:$12 sps:$4 sm:$0xff]  }
 0x166   : > { %2180 = vmatprep.subr.bf16.mxu0 %v2519_v55 }
 0x167   : > { %2265 = vmatpush3.bf16.msra.mxu1 %v2520_v58  ;;  %v3116_v58 = vshrl.u32 %v1570_v50, 7 }
 0x168   : > { %2266 = vmatprep.subr.bf16.mxu1 %v2524_v60 }
 0x169   : > { %2181 = vmatpush3.bf16.msra.mxu0 %v2521_v19  ;;  %1339 = vmatmul.mubr.bf16.gmra.mxu1 %v2522_v61  ;;  %vm1572_vm0 = vcmp.lt.s32.totalorder %v3116_v58, 1  ;;  %vm1637_vm1 = vcmp.lt.s32.totalorder %v3116_v58, 7 }
 0x16a   : > { %2182 = vmatprep.subr.bf16.mxu0 %v2523_v59  ;;  %1348 = vmatprep.mubr.bf16.mxu1 %v2525_v63 }
 0x16b   : > { %2267 = vmatpush3.bf16.msra.mxu1 %v2524_v60  ;;  %v1591_v60 = vpop.permute.xlu0 %1590 }
 0x16c   : > { %1422 = vmatmul.mubr.bf16.gmra.mxu0 %v2527_v0  ;;  %2268 = vmatprep.subr.bf16.mxu1 %v2530_v2 }
 0x16d   : > { %2183 = vmatpush3.bf16.msra.mxu0 %v2528_v62  ;;  %1464 = vmatprep.mubr.bf16.mxu0 %v2502_v45 }
 0x16e   : > { %2184 = vmatprep.subr.bf16.mxu0 %v2529_v1 }
 0x16f   : > { %2269 = vmatpush3.bf16.msra.mxu1 %v2530_v2 }
 0x170   : > { %2270 = vmatprep.subr.bf16.mxu1 %v2533_v4 }
 0x171   : > { %2185 = vmatpush3.bf16.msra.mxu0 %v2531_v3  ;;  %1349 = vmatmul.mubr.bf16.gmra.mxu1 %v2532_v20 }
 0x172   : > { %2274 = vmatprep.mubr.bf16.mxu1 %v3048_v41  ;;  %2282 = vmatprep.subr.bf16.mxu0 %v2535_v6  ;;  %v3096_v41 = vpop.permute.xlu1 %1602 }
 0x173   : > { %2271 = vmatpush3.bf16.msra.mxu1 %v2533_v4 }
 0x174   : > { %1465 = vmatmul.mubr.bf16.vlgmr.msra.gmra.mxu0 %v3052_v44  ;;  %2272 = vmatprep.subr.bf16.mxu1 %v2534_v5 }
 0x175   : > { %1472 = vmatprep.mubr.bf16.mxu0 %v3054_v47  ;;  %2283 = vmatpush3.bf16.msra.mxu0 %v2535_v6 }
 0x176   : > { %2284 = vmatprep.subr.bf16.mxu0 %v2536_v7  ;;  %v3108_v48 = vpop.permute.xlu1 %1594 }
 0x177   : > { %2273 = vmatpush3.bf16.msra.mxu1 %v2534_v5 }
 0x178   : > { %2306 = vmatprep.subr.bf16.mxu1 %v2535_v6 }
 0x179   : > { %2285 = vmatpush3.bf16.msra.mxu0 %v2536_v7 }
 0x17a   : > { %2275 = vmatmul.mubr.bf16.vlgmr.msra.gmra.mxu1 %v3056_v49  ;;  %2286 = vmatprep.subr.bf16.mxu0 %v2537_v10 }
 0x17b   : > { %2278 = vmatprep.mubr.bf16.mxu1 %v2517_v57  ;;  %2314 = vmatpush3.bf16.msra.mxu1 %v2535_v6  ;;  %v3124_v6 = vpop.permute.xlu0 %1606 }
 0x17c   : > { %1473 = vmatmul.mubr.bf16.gmra.mxu0 %v2512_v53  ;;  %2307 = vmatprep.subr.bf16.mxu1 %v2536_v7 }
 0x17d   : > { %1480 = vmatprep.mubr.bf16.mxu0 %v2515_v56  ;;  %2287 = vmatpush3.bf16.msra.mxu0 %v2537_v10  ;;  %v3114_v56 = vpop.permute.xlu1 %1610 }
 0x17e   : > { %2288 = vmatprep.subr.bf16.mxu0 %v2538_v12 }
 0x17f   : > { %2315 = vmatpush3.bf16.msra.mxu1 %v2536_v7 }
 0x180   : > { %2308 = vmatprep.subr.bf16.mxu1 %v2537_v10 }
 0x181   : > { %2289 = vmatpush3.bf16.msra.mxu0 %v2538_v12  ;;  %v1652_v1 = vpop.permute.xlu1 %1651 }
 0x182   : > { %2279 = vmatmul.mubr.bf16.gmra.mxu1 %v2527_v0  ;;  %2290 = vmatprep.subr.bf16.mxu0 %v2539_v13 }
 0x183   : > { %2316 = vmatpush3.bf16.msra.mxu1 %v2537_v10 }
 0x184   : > { %1481 = vmatmul.mubr.bf16.gmra.mxu0 %v2522_v61  ;;  %2309 = vmatprep.subr.bf16.mxu1 %v2538_v12 }
 0x185   : > { %1488 = vmatprep.mubr.bf16.mxu0 %v2525_v63  ;;  %2291 = vmatpush3.bf16.msra.mxu0 %v2539_v13 }
 0x186   : > { %2292 = vmatprep.subr.bf16.mxu0 %v2540_v14 }
 0x187   : > { %2317 = vmatpush3.bf16.msra.mxu1 %v2538_v12 }
 0x188   : > { %2310 = vmatprep.subr.bf16.mxu1 %v2539_v13 }
 0x189   : > { %2293 = vmatpush3.bf16.msra.mxu0 %v2540_v14 }
 0x18a   : > { %2294 = vmatprep.subr.bf16.mxu0 %v2541_v15 }
 0x18b   : > { %2318 = vmatpush3.bf16.msra.mxu1 %v2539_v13 }
 0x18c   : > { %1489 = vmatmul.mubr.bf16.gmra.mxu0 %v2532_v20  ;;  %2311 = vmatprep.subr.bf16.mxu1 %v2540_v14 }
 0x18d   : > { %2295 = vmatpush3.bf16.msra.mxu0 %v2541_v15 }
 0x18e   : > { %2296 = vmatprep.subr.bf16.mxu0 %v2542_v17 }
 0x18f   : > { %2319 = vmatpush3.bf16.msra.mxu1 %v2540_v14 }
 0x190   : > { %2312 = vmatprep.subr.bf16.mxu1 %v2541_v15 }
 0x191   : > { %2297 = vmatpush3.bf16.msra.mxu0 %v2542_v17 }
 0x193   : > { %2320 = vmatpush3.bf16.msra.mxu1 %v2541_v15 }
 0x194   : > { %2313 = vmatprep.subr.bf16.mxu1 %v2542_v17 }
 0x197   : > { %2321 = vmatpush3.bf16.msra.mxu1 %v2542_v17 }
 0x214   : > { %v1393_v18 = vpop.f32.mrf.mxu0 }
 0x216   : > { %v3068_v21 = vpop.f32.mrf.mxu0 }
 0x218   : > { %v1397_v24 = vpop.f32.mrf.mxu0 }
 0x219   : > { %v1320_v27 = vpop.f32.mrf.mxu1 }
 0x21a   : > { %v3070_v25 = vpop.f32.mrf.mxu0  ;;  %v1394_v59 = vadd.f32 %v1393_v18, %v1320_v27 }
 0x21b   : > { %v3072_v29 = vpop.f32.mrf.mxu1 }
 0x21c   : > { %v1403_v28 = vpop.f32.mrf.mxu0  ;;  %v1562_v20 = vrot.slane %v1394_v59, 7 }
 0x21d   : > { %v1324_v32 = vpop.f32.mrf.mxu1 }
 0x21e   : > { %v3074_v30 = vpop.f32.mrf.mxu0  ;;  %v1398_v54 = vadd.f32 %v1397_v24, %v1324_v32 }
 0x21f   : > { %v3078_v33 = vpop.f32.mrf.mxu1 }
 0x220   : > { %v1407_v16 = vpop.f32.mrf.mxu0  ;;  %v1563_v0 = vrot.slane %v1398_v54, 7 }
 0x221   : > { %v1330_v35 = vpop.f32.mrf.mxu1 }
 0x222   : > { %v3080_v8 = vpop.f32.mrf.mxu0  ;;  %v1404_v57 = vadd.f32 %v1403_v28, %v1330_v35  ;;  %v1579_v13 = vsel %vm1572_vm0, %v1562_v20, %v1563_v0 }
 0x223   : > { %v3082_v36 = vpop.f32.mrf.mxu1  ;;  %v1614_v50 = vmul.f32 %v1587_v46, %v1579_v13 }
 0x224   : > { %v1413_v26 = vpop.f32.mrf.mxu0  ;;  %v1564_v2 = vrot.slane %v1404_v57, 7  ;;  %v1396_v57 = vadd.f32 %v3068_v21, %v3072_v29 }
 0x225   : > { %v1334_v11 = vpop.f32.mrf.mxu1 }
 0x226   : > { %v3084_v31 = vpop.f32.mrf.mxu0  ;;  %v1408_v7 = vadd.f32 %v1407_v16, %v1334_v11  ;;  %v1578_v17 = vsel %vm1572_vm0, %v1563_v0, %v1564_v2  ;;  %v1648_v11 = vpop.permute.xlu0 %1647 }
 0x227   : > { %v3090_v39 = vpop.f32.mrf.mxu1  ;;  %v1615_v59 = vmul.f32 %v1591_v60, %v1578_v17 }
 0x228   : > { %v3088_v38 = vpop.f32.mrf.mxu0 }
 0x229   : > { %v1340_v40 = vpop.f32.mrf.mxu1 }
 0x22a   : > { %v3092_v23 = vpop.f32.mrf.mxu0  ;;  %v3130_v18 = vadd.f32 %v1413_v26, %v1340_v40 }
 0x22b   : > { %v3098_v42 = vpop.f32.mrf.mxu1 }
 0x22c   : > { %v3094_v34 = vpop.f32.mrf.mxu0 }
 0x22d   : > { %v3102_v43 = vpop.f32.mrf.mxu1 }
 0x22e   : > { %v3100_v9 = vpop.f32.mrf.mxu0 }
 0x22f   : > { %v3104_v45 = vpop.f32.mrf.mxu1 }
 0x230   : > { %v1427_v44 = vpop.f32.mrf.mxu0 }
 0x231   : > { %v3110_v49 = vpop.f32.mrf.mxu1 }
 0x232   : > { %v3106_v47 = vpop.f32.mrf.mxu0 }
 0x233   : > { %v3112_v52 = vpop.f32.mrf.mxu1 }
 0x234   : > { %v2186_v51 = vpop.f32.mrf.mxu0 }
 0x235   : > { %v1354_v55 = vpop.f32.mrf.mxu1 }
 0x236   : > { %v2187_v53 = vpop.f32.mrf.mxu0  ;;  %v3118_v61 = vadd.f32 %v1427_v44, %v1354_v55  ;;  %v3138_v44 = vpop.permute.xlu1 %1663 }
 0x237   : > { %v3120_v62 = vpop.f32.mrf.mxu1  ;;  %v2188_v14 = vadd.f32 %v2187_v53, %v2186_v51  ;;  %v1565_v51 = vrot.slane %v1408_v7, 7 }
 0x238   : > { %v2189_v19 = vpop.f32.mrf.mxu0  ;;  %v1569_v5 = vrot.slane %v3118_v61, 7 }
 0x239   : > { %v1577_v21 = vsel %vm1572_vm0, %v1564_v2, %v1565_v51 }
 0x23a   : > { %v2190_v63 = vpop.f32.mrf.mxu0  ;;  %v2276_v3 = vpop.f32.mrf.mxu1  ;;  %v1580_v28 = vsel %vm1572_vm0, %v1569_v5, %v1562_v20 }
 0x23b   : > { %v2191_v32 = vadd.f32 %v2190_v63, %v2189_v19  ;;  %v1400_v19 = vadd.f32 %v3070_v25, %v3078_v33  ;;  %v1613_v63 = vmul.f32 %v3076_v22, %v1580_v28  ;;  %v1418_v25 = vadd.f32 %v3088_v38, %v3102_v43 }
 0x23c   : > { %v2192_v4 = vpop.f32.mrf.mxu0  ;;  %v1531_v10 = vpop.f32.mrf.mxu1 }
 0x23d   : > { %v3136_v16 = vadd.f32 %v2188_v14, %v1531_v10  ;;  %v1622_v10 = vadd.f32 %v1614_v50, %v1400_v19  ;;  %v3162_v14 = vpop.permute.xlu0 %1667  ;;  %v1621_v2 = vadd.f32 %v1613_v63, %v1396_v57 }
 0x23e   : > { %v2193_v12 = vpop.f32.mrf.mxu0  ;;  %v2277_v24 = vpop.f32.mrf.mxu1 }
 0x23f   : > { %v2194_v15 = vadd.f32 %v2193_v12, %v2192_v4  ;;  %v1629_v4 = vrot.slane %v3136_v16, 1  ;;  %v1406_v12 = vadd.f32 %v3074_v30, %v3082_v36  ;;  %v1656_v36 = vpop.permute.xlu1 %1655 }
 0x240   : > { %v2195_v27 = vpop.f32.mrf.mxu0  ;;  %v1534_v53 = vpop.f32.mrf.mxu1 }
 0x241   : > { %v1540_v35 = vadd.f32 %v2276_v3, %v2194_v15  ;;  %v1535_v40 = vadd.f32 %v2191_v32, %v1534_v53  ;;  %v1566_v3 = vrot.slane %v3130_v18, 7  ;;  %v1623_v15 = vadd.f32 %v1615_v59, %v1406_v12  ;;  %v3170_v32 = vld [vmem:[%s3299_s5] ss:$0 sm:$0xff] }
 0x242   : > { %v2196_v54 = vpop.f32.mrf.mxu0  ;;  %v3146_v0 = vpop.f32.mrf.mxu1 }
 0x243   : > { %v1631_v26 = vrot.slane %v1540_v35, 1  ;;  %v2197_v55 = vadd.f32 %v2196_v54, %v2195_v27  ;;  %v1630_v20 = vrot.slane %v1535_v40, 1  ;;  %v1576_v27 = vsel %vm1572_vm0, %v1565_v51, %v1566_v3 }
 0x244   : > { %v2198_v46 = vpop.f32.mrf.mxu0  ;;  %v1547_v29 = vpop.f32.mrf.mxu1  ;;  %v1567_v51 = vrot.slane %v1418_v25, 7  ;;  %v1416_v25 = vadd.f32 %v3084_v31, %v3098_v42 }
 0x245   : > { %v1543_v7 = vadd.f32 %v2277_v24, %v2197_v55  ;;  %v1643_v33 = vsel %vm1637_vm1, %v1630_v20, %v1631_v26  ;;  %v1644_v60 = vsel %vm1637_vm1, %v1629_v4, %v1630_v20  ;;  %v1616_v24 = vmul.f32 %v3108_v48, %v1577_v21 }
 0x246   : > { %v2199_v22 = vpop.f32.mrf.mxu0  ;;  %v1678_v17 = vmul.f32 %v1648_v11, %v1644_v60  ;;  %v1679_v18 = vmul.f32 %v1652_v1, %v1643_v33  ;;  %v2281_v38 = vpop.f32.mrf.mxu1  ;;  %v1424_v11 = vadd.f32 %v3094_v34, %v3110_v49  ;;  %v1410_v48 = vadd.f32 %v3080_v8, %v3090_v39 }
 0x247   : > { %v1632_v13 = vrot.slane %v1543_v7, 1  ;;  %v2200_v30 = vadd.f32 %v2199_v22, %v2198_v46  ;;  %v1617_v34 = vmul.f32 %v3086_v37, %v1576_v27  ;;  %v1660_v49 = vpop.permute.xlu0 %1659 }
 0x248   : > { %v2201_v43 = vpop.f32.mrf.mxu0  ;;  %v1686_v53 = vadd.f32 %v1678_v17, %v1621_v2  ;;  %v1687_v54 = vadd.f32 %v1679_v18, %v1622_v10  ;;  %v1550_v19 = vpop.f32.mrf.mxu1  ;;  %v1624_v46 = vadd.f32 %v1616_v24, %v1410_v48  ;;  %v1568_v10 = vrot.slane %v1424_v11, 7 }
 0x249   : > { %v1548_v28 = vadd.f32 %v2200_v30, %v1547_v29  ;;  %v1642_v35 = vsel %vm1637_vm1, %v1631_v26, %v1632_v13  ;;  %v1575_v29 = vsel %vm1572_vm0, %v1566_v3, %v1567_v51 }
 0x24a   : > { %v1680_v1 = vmul.f32 %v1656_v36, %v1642_v35  ;;  %v2202_v50 = vpop.f32.mrf.mxu0  ;;  %v1701_v63 = vadd.f32 %v3170_v32, %v1686_v53  ;;  %v1702_v26 = vadd.f32 %v3170_v32, %v1687_v54  ;;  %v1618_v17 = vmul.f32 %v3096_v41, %v1575_v29 }
 0x24b   : > { %v1633_v40 = vrot.slane %v1548_v28, 1  ;;  %v2203_v55 = vadd.f32 %v2202_v50, %v2201_v43  ;;  %v1574_v31 = vsel %vm1572_vm0, %v1567_v51, %v1568_v10  ;;  %v1573_v43 = vsel %vm1572_vm0, %v1568_v10, %v1569_v5  ;;  %v2543_v10 = vld [vmem:[%s2895_s24 + $0x10] sm:$0xff] }
 0x24c   : > { %v1688_v57 = vadd.f32 %v1680_v1, %v1623_v15  ;;  %v2204_v59 = vpop.f32.mrf.mxu0  ;;  %v1709_v12 = vmax.f32 %v1701_v63, 0.0  ;;  %v1710_v21 = vmax.f32 %v1702_v26, 0.0  ;;  %v1619_v11 = vmul.f32 %v3124_v6, %v1574_v31 }
 0x24d   : > { %v1641_v20 = vsel %vm1637_vm1, %v1632_v13, %v1633_v40  ;;  %v1551_v7 = vadd.f32 %v2203_v55, %v1550_v19  ;;  %v1625_v13 = vadd.f32 %v1617_v34, %v1416_v25  ;;  %v1620_v61 = vmul.f32 %v3114_v56, %v1573_v43 }
 0x24e   : > { %v1681_v8 = vmul.f32 %v1660_v49, %v1641_v20  ;;  %v2205_v39 = vpop.f32.mrf.mxu0  ;;  %v1703_v37 = vadd.f32 %v3170_v32, %v1688_v57  ;;  %v1717_v36 = vpack.c.bf16 %v1710_v21, %v1709_v12  ;;  %v1426_v54 = vadd.f32 %v3100_v9, %v3112_v52  ;;  %v2544_v21 = vld [vmem:[%s2895_s24] sm:$0xff] }
 0x24f   : > { %v1634_v22 = vrot.slane %v1551_v7, 1  ;;  %v2206_v33 = vadd.f32 %v2205_v39, %v2204_v59 }
 0x250   : > { %v1689_v60 = vadd.f32 %v1681_v8, %v1624_v46  ;;  %v2207_v30 = vpop.f32.mrf.mxu0  ;;  %2298 = vmatprep.mubr.bf16.mxu0 %v1717_v36  ;;  %v1711_v41 = vmax.f32 %v1703_v37, 0.0  ;;  %v1627_v51 = vadd.f32 %v1619_v11, %v1426_v54  ;;  %v2545_v37 = vld [vmem:[%s2895_s24 + $0x18] sm:$0xff] }
 0x251   : > { %v1640_v15 = vsel %vm1637_vm1, %v1633_v40, %v1634_v22  ;;  %v1556_v2 = vadd.f32 %v3146_v0, %v2206_v33  ;;  %v1420_v0 = vadd.f32 %v3092_v23, %v3104_v45  ;;  %v1430_v23 = vadd.f32 %v3106_v47, %v3120_v62  ;;  %v1672_v40 = vpop.permute.xlu1 %1671 }
 0x252   : > { %v1704_v42 = vadd.f32 %v3170_v32, %v1689_v60  ;;  %v1682_v3 = vmul.f32 %v3138_v44, %v1640_v15  ;;  %v2208_v18 = vpop.f32.mrf.mxu0 }
 0x253   : > { %v1635_v24 = vrot.slane %v1556_v2, 1  ;;  %v2209_v27 = vadd.f32 %v2208_v18, %v2207_v30  ;;  %v1626_v50 = vadd.f32 %v1618_v17, %v1420_v0  ;;  %v1628_v9 = vadd.f32 %v1620_v61, %v1430_v23  ;;  %v2548_v0 = vld [vmem:[%s2895_s24 + $0x20] sm:$0xff] }
 0x254   : > { %v1712_v28 = vmax.f32 %v1704_v42, 0.0  ;;  %v1690_v35 = vadd.f32 %v1682_v3, %v1625_v13  ;;  %v2546_v13 = vld [vmem:[%s2895_s24 + $0x8] sm:$0xff]  ;;  %v2547_v3 = vld [vmem:[%s2895_s24 + $0x30] sm:$0xff] }
 0x255   : > { %v1639_v44 = vsel %vm1637_vm1, %v1634_v22, %v1635_v24  ;;  %v1559_v1 = vadd.f32 %v2281_v38, %v2209_v27  ;;  %v1676_v38 = vpop.permute.xlu0 %1675 }
 0x256   : > { %v1718_v53 = vpack.c.bf16 %v1712_v28, %v1711_v41  ;;  %v1683_v5 = vmul.f32 %v3162_v14, %v1639_v44  ;;  %v1705_v6 = vadd.f32 %v3170_v32, %v1690_v35  ;;  %v2549_v44 = vld [vmem:[%s2895_s24 + $0x38] sm:$0xff] }
 0x257   : > { %v1636_v48 = vrot.slane %v1559_v1, 1 }
 0x258   : > { %2299 = vmatmul.mubr.bf16.vlgmr.msra.gmra.mxu0 %v1718_v53  ;;  %v1691_v45 = vadd.f32 %v1683_v5, %v1626_v50  ;;  %v1713_v19 = vmax.f32 %v1705_v6, 0.0  ;;  %v2550_v53 = vld [vmem:[%s2895_s24 + $0x28] sm:$0xff] }
 0x259   : > { %v1638_v56 = vsel %vm1637_vm1, %v1635_v24, %v1636_v48  ;;  %v1645_v14 = vsel %vm1637_vm1, %v1636_v48, %v1629_v4  ;;  %v2118_v4 = vld [vmem:[%s3301_s7] ss:$0 sm:$0xff] }
 0x25a   : > { %v1684_v52 = vmul.f32 %v1672_v40, %v1638_v56  ;;  %v1685_v55 = vmul.f32 %v1676_v38, %v1645_v14  ;;  %v1706_v47 = vadd.f32 %v3170_v32, %v1691_v45 }
 0x25c   : > { %v1692_v62 = vadd.f32 %v1684_v52, %v1627_v51  ;;  %v1693_v57 = vadd.f32 %v1685_v55, %v1628_v9  ;;  %v1714_v59 = vmax.f32 %v1706_v47, 0.0 }
 0x25e   : > { %v1707_v63 = vadd.f32 %v3170_v32, %v1692_v62  ;;  %v1708_v26 = vadd.f32 %v3170_v32, %v1693_v57  ;;  %v1719_v46 = vpack.c.bf16 %v1714_v59, %v1713_v19 }
 0x260   : > { %v1715_v16 = vmax.f32 %v1707_v63, 0.0  ;;  %v1716_v34 = vmax.f32 %v1708_v26, 0.0  ;;  %2302 = vmatprep.mubr.bf16.mxu1 %v1719_v46 }
 0x262   : > { %v1720_v58 = vpack.c.bf16 %v1716_v34, %v1715_v16 }
 0x264   : > { %2303 = vmatmul.mubr.bf16.vlgmr.msra.gmra.mxu1 %v1720_v58 }
 0x318   : > { %v2300_v49 = vpop.f32.mrf.mxu0 }
 0x319   : > { %v1835_v20 = vadd.f32 %v2300_v49, %v2118_v4 }
 0x31a   : > { %v1826_v7 = vpop.f32.mrf.mxu0 }
 0x31b   : > { %v1859_v8 = vadd.f32 %v2543_v10, %v1835_v20  ;;  %v1827_v32 = vadd.f32 %v2118_v4, %v1826_v7 }
 0x31c   : > { %v2301_v39 = vpop.f32.mrf.mxu0 }
 0x31d   : > { %v1867_v12 = vmax.f32 %v1859_v8, 0.0  ;;  %v1857_v25 = vadd.f32 %v2544_v21, %v1827_v32  ;;  %v1838_v29 = vadd.f32 %v2301_v39, %v2118_v4 }
 0x31e   : > { %v1829_v22 = vpop.f32.mrf.mxu0 }
 0x31f   : > { %1875 = vst [vmem:[%s3228_s10 + $0x10] sm:$0xff] %v1867_v12  ;;  %v1865_v33 = vmax.f32 %v1857_v25, 0.0  ;;  %v1860_v60 = vadd.f32 %v2545_v37, %v1838_v29  ;;  %v1830_v30 = vadd.f32 %v2118_v4, %v1829_v22 }
 0x321   : > { %1873 = vst [vmem:[%s3228_s10] sm:$0xff] %v1865_v33  ;;  %v1868_v36 = vmax.f32 %v1860_v60, 0.0  ;;  %v1858_v15 = vadd.f32 %v2546_v13, %v1830_v30 }
 0x323   : > { %1876 = vst [vmem:[%s3228_s10 + $0x18] sm:$0xff] %v1868_v36  ;;  %v1866_v2 = vmax.f32 %v1858_v15, 0.0 }
 0x324   : > { %v2304_v17 = vpop.f32.mrf.mxu1 }
 0x325   : > { %1874 = vst [vmem:[%s3228_s10 + $0x8] sm:$0xff] %v1866_v2  ;;  %v1851_v31 = vadd.f32 %v2304_v17, %v2118_v4 }
 0x326   : > { %v1842_v42 = vpop.f32.mrf.mxu1 }
 0x327   : > { %v1863_v18 = vadd.f32 %v2547_v3, %v1851_v31  ;;  %v1843_v43 = vadd.f32 %v2118_v4, %v1842_v42 }
 0x328   : > { %v2305_v24 = vpop.f32.mrf.mxu1 }
 0x329   : > { %v1871_v27 = vmax.f32 %v1863_v18, 0.0  ;;  %v1861_v41 = vadd.f32 %v2548_v0, %v1843_v43  ;;  %v1854_v28 = vadd.f32 %v2305_v24, %v2118_v4 }
 0x32a   : > { %v1845_v35 = vpop.f32.mrf.mxu1 }
 0x32b   : > { %1879 = vst [vmem:[%s3228_s10 + $0x30] sm:$0xff] %v1871_v27  ;;  %v1869_v11 = vmax.f32 %v1861_v41, 0.0  ;;  %v1864_v1 = vadd.f32 %v2549_v44, %v1854_v28  ;;  %v1846_v50 = vadd.f32 %v2118_v4, %v1845_v35 }
 0x32d   : > { %1877 = vst [vmem:[%s3228_s10 + $0x20] sm:$0xff] %v1869_v11  ;;  %v1872_v61 = vmax.f32 %v1864_v1, 0.0  ;;  %v1862_v5 = vadd.f32 %v2550_v53, %v1846_v50 }
 0x32f   : > { %1880 = vst [vmem:[%s3228_s10 + $0x38] sm:$0xff] %v1872_v61  ;;  %v1870_v54 = vmax.f32 %v1862_v5, 0.0 }
 0x331   : > { %1878 = vst [vmem:[%s3228_s10 + $0x28] sm:$0xff] %v1870_v54 }
 0x332   : > { %2644 = shalt.err (!%p2641_p9)
}
 0x333   : > { %s2645_s24 = scalar_lea.hbm %s3249_s26, 1024  ;;  %s2649_s25 = scalar_lea.hbm %s3302_s8, 2048 }
 0x334   : > { %p2646_p13 = scmp.ne.s32.totalorder %s3249_s26, %s2645_s24  ;;  %p2650_p4 = scmp.lt.s32.totalorder %s3249_s26, %s3302_s8 }
 0x335   : > { %p2651_p8 = scmp.lt.s32.totalorder %s2649_s25, %s2645_s24 }
 0x336   : > { %p2647_p5 = pnand %p2646_p13, %p3322_p10 }
 0x337   : > { %p2652_p7 = por %p2651_p8, %p2650_p4 }
 0x338   : > { %p2648_p0 = pneg %p2647_p5 }
 0x33a   : > { %p2653_p11 = pnand %p2652_p7, %p2648_p0 }
 0x33c   : > { %2656 = shalt.err (!%p2653_p11)
}
 0x33d   : > { %s2715_s14 = smov 128   ;;  %s2716_s17 = smov 8  }
 0x33e   : > { %2332 = dma.vmem_to_hbm [thread:$0]  (%p3322_p10), %s3242_s6, 1024, %s3249_s26, %s1882_s16, %s2715_s14, %s2715_s14, %s2716_s17  }
 0x33f PF: > { %s1910_s18 = sand.u32 1, %s2687_s27   ;;  %p3323_p1 = scmp.ne.s32.totalorder %s3310_s12, 0 }
 0x340   : > { %p3324_p2 = scmp.ge.s32.totalorder %s2699_s30, 2  ;;  %s1911_s9 = scalar_lea.sflag [#allocation5], %s1910_s18 }
 0x342   : > { %p2346_p6 = pnand %p3324_p2, %p3323_p1 }
 0x344   : > { %p2347_p12 = pneg %p2346_p6 }
 0x346   : > { %2682 = dma.done.wait (%p2347_p12), %s1911_s9, 1024  }
 0x347   : > { %2684 = vsyncadd (%p2347_p12), %s1911_s9, 4294966272  ;;  %p22_p3 = scmp.ge.s32.totalorder %s2834_s15, 4   ;;  %s3325_s27 = smov %s2691_s28 }
 0x348   : > { %s3326_s28 = smov %s2695_s29  ;;  %s3327_s29 = smov %s2843_s20 }
 0x349   : > { %s3328_s30 = smov %s2834_s15  ;;  %24 = sbr.rel (!%p22_p3) target bundleno = 9 (0x9), region = 105 }
 0x34e   :  { %1916 = vsyncpa [#allocation4], 1 }
 0x34f   :  { %1918 = vsyncpa [#allocation4 + $0x1], 1 }
 0x350   :  { %1919 = vsyncpa [#allocation7], 1 }
 0x351   :  { %1920 = vsyncpa [#allocation5], 1 }
 0x352   :  { %1922 = vsyncpa [#allocation5 + $0x1], 1 }

// kernel: tpu_custom_call.1
= control target key start
LH: loop header
LB: loop body
LE: loop exit
PB: predicated region body
PF: predicated region fallthrough
CT: control target
= control target key end

     0   :  { %s3294_s0 = inlined_call_operand.hbm [shape: f32[2,64,128], index: 0, kind: input, shape index: {}]   ;;  %s3295_s1 = inlined_call_operand.vmem [shape: f32[64,4], index: 1, kind: input, shape index: {}]   ;;  %s3296_s2 = inlined_call_operand.vmem [shape: bf16[128,128], index: 2, kind: input, shape index: {}]   ;;  %s3297_s3 = inlined_call_operand.vmem [shape: f32[1,128], index: 3, kind: input, shape index: {}]   ;;  %s3298_s4 = inlined_call_operand.hbm [shape: bf16[384,384], index: 4, kind: input, shape index: {}]   ;;  %s3299_s5 = inlined_call_operand.vmem [shape: f32[1,128], index: 5, kind: input, shape index: {}]   ;;  %s3300_s6 = inlined_call_operand.hbm [shape: bf16[128,128], index: 6, kind: input, shape index: {}]   ;;  %s3301_s7 = inlined_call_operand.vmem [shape: f32[1,128], index: 7, kind: input, shape index: {}]   ;;  %s3302_s8 = inlined_call_operand.hbm [shape: f32[2,64,128], index: 8, kind: output, shape index: {}]  }
   0x1   :  { %3307 = sst [smem:[#allocation13_spill]] %s3298_s4 }
   0x2   :  { %3308 = sst [smem:[#allocation14_spill]] %s3300_s6 }
   0x3   :  { %13 = vsyncpa [#allocation4], 0 }
   0x4   :  { %15 = vsyncpa [#allocation4 + $0x1], 0 }
   0x5   :  { %16 = vsyncpa [#allocation7], 0 }
   0x6   :  { %17 = vsyncpa [#allocation5], 0 }
   0x7   :  { %19 = vsyncpa [#allocation5 + $0x1], 0  ;;  %s2762_s27 = smov 0   ;;  %s2764_s28 = smov 0  }
   0x8   :  { %s2766_s29 = smov 0   ;;  %s2768_s30 = smov 0  }
   0x9 LB: > { %s2783_s9 = sadd.s32 4294967295, %s2699_s30   ;;  %s1987_s10 = sadd.s32 4294967294, %s2699_s30   ;;  %s2699_s30 = sphi %s2768_s30, %s3328_s30   ;;  %s2695_s29 = sphi %s2766_s29, %s3327_s29   ;;  %s2691_s28 = sphi %s2764_s28, %s3326_s28   ;;  %s2687_s27 = sphi %s2762_s27, %s3325_s27  }
   0xa   : > { %p45_p0 = scmp.ne.s32.totalorder %s2691_s28, %s2687_s27  ;;  %p3303_p1 = scmp.eq.s32.totalorder %s2783_s9, 0 }
   0xb   : > { %p222_p3 = scmp.eq.s32.totalorder %s1987_s10, 1  ;;  %p1988_p5 = scmp.ge.s32.totalorder %s2699_s30, 1 }
   0xc   : > { %p2792_p4 = por %p3303_p1, %p45_p0  ;;  %p229_p7 = scmp.lt.s32.totalorder %s2699_s30, 3 }
   0xd   : > { %p2797_p6 = por %p222_p3, %p45_p0  ;;  %s2701_s14 = smov [#allocation6]  }
   0xe   : > { %s3309_s11 = scalar_select %p2792_p4, 1, 0 }
   0xf   : > { %s3310_s12 = scalar_select %p2797_p6, 1, 0 }
  0x10   : > { %p2802_p8 = pnand %p1988_p5, %p229_p7  ;;  %s250_s15 = sshll.u32 %s2701_s14, 4  ;;  %s251_s15 = int_to_ptr.vmem [resolvable:$true] %s250_s15 }
  0x11   : > { %s2702_s17 = smov [#allocation8]   ;;  %s2562_s19 = scalar_lea.vmem %s251_s15, 9216 }
  0x12   : > { %s3311_s13 = scalar_select %p2802_p8, 1, 0 }
  0x13   : > { %p2334_p9 = pneg %p2802_p8  ;;  %s266_s18 = sshll.u32 %s2702_s17, 4  ;;  %s267_s18 = int_to_ptr.vmem [resolvable:$true] %s266_s18 }
  0x14   : > { %p2563_p13 = scmp.ne.s32.totalorder %s251_s15, %s2562_s19  ;;  %p2570_p5 = scmp.lt.s32.totalorder %s251_s15, %s251_s15 }
  0x15   : > { %p2811_p11 = pnand %p2334_p9, %p3303_p1  ;;  %p2571_p7 = scmp.lt.s32.totalorder %s2562_s19, %s2562_s19 }
  0x17   : > { %p2553_p12 = pneg %p2811_p11  ;;  %p2572_p10 = por %p2571_p7, %p2570_p5 }
  0x19   : > { %p2565_p0 = pnand %p2563_p13, %p2553_p12 }
  0x1b   : > { %p2566_p3 = pneg %p2565_p0 }
  0x1d   : > { %p2573_p9 = pnand %p2572_p10, %p2566_p3 }
  0x1f   : > { %2576 = shalt.err (!%p2573_p9)
}
  0x20   : > { %s2703_s20 = smov 192   ;;  %s2704_s21 = smov 12  }
  0x21   : > { %s3313_s4 = sld [smem:[#allocation13_spill]]  ;;  %s2588_s24 = scalar_lea.vmem %s267_s18, 1024 }
  0x22   : > { %p2589_p1 = scmp.ne.s32.totalorder %s267_s18, %s2588_s24  ;;  %p2596_p2 = scmp.lt.s32.totalorder %s267_s18, %s267_s18 }
  0x23   : > { %p2597_p6 = scmp.lt.s32.totalorder %s2588_s24, %s2588_s24 }
  0x24   : > { %p2591_p13 = pnand %p2589_p1, %p2553_p12 }
  0x25   : > { %p2598_p5 = por %p2597_p6, %p2596_p2 }
  0x26   : > { %p2592_p0 = pneg %p2591_p13 }
  0x27   : > { %2337 = dma.hbm_to_vmem [thread:$0]  (!%p2811_p11), %s3313_s4, 9216, %s251_s15, [#allocation7], %s2703_s20, %s2703_s20, %s2704_s21  }
  0x28   : > { %p2599_p10 = pnand %p2598_p5, %p2592_p0 }
  0x2a   : > { %2602 = shalt.err (!%p2599_p10)
}
  0x2b   : > { %s2705_s25 = smov 64   ;;  %s2706_s26 = smov 4  }
  0x2c   : > { %s3314_s6 = sld [smem:[#allocation14_spill]]  ;;  %s2834_s15 = sadd.s32 1, %s2699_s30  }
  0x2d   : > { %s29_s17 = ssub.s32 %s2699_s30, %s2834_s15  ;;  %s32_s19 = sadd.s32 1, %s2695_s29 }
  0x2e   : > { %p30_p1 = scmp.eq.s32.totalorder %s29_s17, 0  ;;  %p39_p2 = scmp.ne.s32.totalorder %s2695_s29, %s2691_s28 }
  0x2f   : > { %p40_p6 = scmp.eq.s32.totalorder %s2699_s30, 0  ;;  %p3315_p3 = scmp.eq.s32.totalorder %s2783_s9, 1 }
  0x30   : > { %s2843_s20 = scalar_select %p30_p1, %s2695_s29, %s32_s19  }
  0x31   : > { %p41_p12 = por %p40_p6, %p39_p2  ;;  %p2847_p7 = por %p3315_p3, %p39_p2 }
  0x32   : > { %2340 = dma.hbm_to_vmem [thread:$0]  (!%p2811_p11), %s3314_s6, 1024, %s267_s18, [#allocation7], %s2705_s25, %s2705_s25, %s2706_s26  }
  0x33   : > { %s3316_s21 = scalar_select %p2847_p7, 1, 0 }
  0x34   : > { %p2351_p9 = scmp.lt.s32.totalorder %s2699_s30, 2  ;;  %s283_s16 = sand.u32 1, %s2695_s29  }
  0x35   : > { %s1992_s22 = sshll.u32 %s283_s16, 6  ;;  %s2132_s18 = sshll.u32 %s2699_s30, 10 }
  0x36   : > { %s2857_s25 = scalar_lea.hbm %s3294_s0, %s2132_s18  ;;  %s287_s26 = scalar_lea.vmem [#allocation3], %s1992_s22 }
  0x37   : > { %s294_s10 = sshll.u32 %s287_s26, 4  ;;  %p2861_p11 = pnand %p2351_p9, %p41_p12  ;;  %s2859_s10 = int_to_ptr.vmem [resolvable:$true] %s294_s10 }
  0x38   : > { %s2865_s17 = scalar_lea.sflag [#allocation4], %s283_s16  ;;  %s2603_s19 = scalar_lea.hbm %s2857_s25, 1024 }
  0x39   : > { %p2604_p13 = scmp.ne.s32.totalorder %s2857_s25, %s2603_s19  ;;  %p2605_p0 = pneg %p2861_p11 }
  0x3a   : > { %s2608_s22 = scalar_lea.hbm %s3294_s0, 2048  ;;  %p2609_p1 = scmp.lt.s32.totalorder %s2857_s25, %s3294_s0 }
  0x3b   : > { %p2606_p5 = pnand %p2605_p0, %p2604_p13  ;;  %p2610_p2 = scmp.lt.s32.totalorder %s2608_s22, %s2603_s19 }
  0x3d   : > { %p2607_p10 = pneg %p2606_p5  ;;  %p2611_p6 = por %p2610_p2, %p2609_p1 }
  0x3f   : > { %p2612_p12 = pnand %p2611_p6, %p2607_p10 }
  0x41   : > { %2615 = shalt.err (!%p2612_p12)
}
  0x42   : > { %s2616_s16 = scalar_lea.vmem %s2859_s10, 1024  ;;  %s2707_s4 = smov [#allocation3]  }
  0x43   : > { %p2617_p3 = scmp.ne.s32.totalorder %s2859_s10, %s2616_s16  ;;  %s2621_s6 = sshll.u32 %s2707_s4, 4  ;;  %s2622_s6 = int_to_ptr.vmem [resolvable:$false] %s2621_s6 }
  0x44   : > { %s2623_s18 = scalar_lea.vmem %s2622_s6, 2048  ;;  %p2624_p5 = scmp.lt.s32.totalorder %s2859_s10, %s2622_s6 }
  0x45   : > { %p2619_p9 = pnand %p2617_p3, %p2605_p0  ;;  %p2625_p7 = scmp.lt.s32.totalorder %s2623_s18, %s2616_s16 }
  0x47   : > { %p2620_p13 = pneg %p2619_p9  ;;  %p2626_p4 = por %p2625_p7, %p2624_p5 }
  0x49   : > { %p2627_p8 = pnand %p2626_p4, %p2620_p13 }
  0x4b   : > { %2630 = shalt.err (!%p2627_p8)
}
  0x4c   : > { %s2708_s19 = smov 128   ;;  %s2709_s23 = smov 8  }
  0x4d   : > { %2344 = dma.hbm_to_vmem [thread:$0]  (!%p2861_p11), %s2857_s25, 1024, %s2859_s10, %s2865_s17, %s2708_s19, %s2708_s19, %s2709_s23  }
  0x4e   : > { %p3318_p0 = scmp.ne.s32.totalorder %s3311_s13, 0 }
  0x4f   : > { %s2889_s4 = sand.u32 (!%p3318_p0), 1, %s2691_s28   ;;  %p3319_p4 = scmp.ne.s32.totalorder (!%p3318_p0), %s3309_s11, 0 }
  0x50   : > { %306 = sbr.rel (%p3318_p0) target bundleno = 831 (0x33f), region = 52  ;;  %s1996_s6 = sshll.u32 (!%p3318_p0), %s2889_s4, 6 }
  0x51   : > { %s309_s22 = scalar_lea.sflag (!%p3318_p0), [#allocation4], %s2889_s4  ;;  %s2895_s24 = scalar_lea.vmem (!%p3318_p0), [#allocation3], %s1996_s6 }
  0x55   : > { %2674 = dma.done.wait (%p3319_p4), %s309_s22, 1024  }
  0x56   : > { %2676 = vsyncadd (%p3319_p4), %s309_s22, 4294966272  ;;  %p3320_p8 = scmp.eq.s32.totalorder %s2783_s9, 0 }
  0x58   : > { %2678 = dma.done.wait (%p3320_p8), [#allocation7], 10240   ;;  %p3321_p7 = pmov %p3320_p8 }
  0x59   : > { %v2710_v0 = vmov 1   ;;  %v2415_v1 = vld [vmem:[%s3296_s2 + $0x38] sm:$0xff]   ;;  %v2416_v2 = vld [vmem:[%s3296_s2 + $0x30] sm:$0xff]   ;;  %v2417_v3 = vld [vmem:[%s3296_s2 + $0x28] sm:$0xff]   ;;  %v2711_v20 = vmov 0   ;;  %s3228_s10 = scalar_lea.vmem [#allocation9], %s1996_s6 }
  0x5a   : > { %2680 = vsyncadd (%p3321_p7), [#allocation7], 4294957056  ;;  %2402 = vset.pattern.permute.xlu1 %v2710_v0  ;;  %2401 = vset.pattern.permute.xlu0 %v2710_v0  ;;  %v2418_v4 = vld [vmem:[%s3296_s2 + $0x20] sm:$0xff]   ;;  %v355_v6 = vld [vmem:[%s2895_s24 + $0x8] sm:$0xff]  ;;  %s1895_s6 = sshll.u32 %s3228_s10, 4  ;;  %s2157_s11 = sshll.u32 %s2783_s9, 10  ;;  %s3242_s6 = int_to_ptr.vmem [resolvable:$true] %s1895_s6 }
  0x5b   : > { %2234 = vmatprep.subr.bf16.mxu0 %v2415_v1  ;;  %v354_v5 = vld [vmem:[%s2895_s24] sm:$0xff]  ;;  %v2924_v8 = vld [vmem:[%s3295_s1 + $0x10] sm:$0xff]  ;;  %v2419_v10 = vld [vmem:[%s3296_s2 + $0x18] sm:$0xff]   ;;  %s3249_s26 = scalar_lea.hbm %s3302_s8, %s2157_s11  ;;  %s1882_s16 = scalar_lea.sflag [#allocation5], %s2889_s4 }
  0x5c   : > { %2235 = vmatpush3.bf16.msra.mxu0 %v2415_v1  ;;  %v362_v7 = vpack.c.bf16 %v355_v6, %v354_v5  ;;  %v2929_v9 = vld [vmem:[%s3295_s1] sm:$0xff]  ;;  %575 = vperm.xlu1 %2402, %v2924_v8   ;;  %v2938_v11 = vld [vmem:[%s3295_s1 + $0x18] sm:$0xff]  ;;  %v2425_v13 = vld [vmem:[#allocation6 + $0xa8] ss:$12 sps:$4 sm:$0xff]   ;;  %s2631_s18 = scalar_lea.vmem %s3242_s6, 1024  ;;  %p3322_p10 = scmp.ne.s32.totalorder %s3316_s21, 0 }
  0x5d   : > { %2236 = vmatprep.subr.bf16.mxu0 %v2416_v2  ;;  %567 = vperm.xlu0 %2401, %v2929_v9   ;;  %v2423_v12 = vld [vmem:[#allocation6 + $0xac] ss:$12 sps:$4 sm:$0xff]   ;;  %v2420_v14 = vld [vmem:[%s3296_s2 + $0x10] sm:$0xff]   ;;  %v2429_v18 = vld [vmem:[#allocation6 + $0x7c] ss:$12 sps:$4 sm:$0xff]   ;;  %p2632_p11 = scmp.ne.s32.totalorder %s3242_s6, %s2631_s18  ;;  %s2714_s9 = smov [#allocation9]  }
  0x5e   : > { %2250 = vmatprep.mubr.bf16.mxu0 %v362_v7  ;;  %v2426_v15 = vld [vmem:[#allocation6 + $0x94] ss:$12 sps:$4 sm:$0xff]   ;;  %v2948_v16 = vld [vmem:[%s3295_s1 + $0x8] sm:$0xff]  ;;  %1286 = vmatprep.subr.bf16.mxu1 %v2423_v12  ;;  %v2428_v17 = vld [vmem:[#allocation6 + $0x90] ss:$12 sps:$4 sm:$0xff]   ;;  %s2635_s19 = sshll.u32 %s2714_s9, 4  ;;  %s2636_s19 = int_to_ptr.vmem [resolvable:$false] %s2635_s19 }
  0x5f   : > { %1287 = vmatpush1.bf16.msra.mxu1 %v2425_v13  ;;  %v2421_v19 = vld [vmem:[%s3296_s2 + $0x8] sm:$0xff]   ;;  %v2422_v21 = vld [vmem:[%s3296_s2] sm:$0xff]   ;;  %v356_v25 = vld [vmem:[%s2895_s24 + $0x10] sm:$0xff]  ;;  %p2633_p1 = pnand %p2632_p11, %p3322_p10  ;;  %s2637_s23 = scalar_lea.vmem %s2636_s19, 2048 }
  0x60   : > { %2237 = vmatpush3.bf16.msra.mxu0 %v2416_v2  ;;  %579 = vperm.xlu1 %2402, %v2938_v11   ;;  %v2964_v22 = vld [vmem:[%s3295_s1 + $0x20] sm:$0xff]  ;;  %v2969_v23 = vld [vmem:[%s3295_s1 + $0x28] sm:$0xff]  ;;  %v357_v26 = vld [vmem:[%s2895_s24 + $0x18] sm:$0xff]  ;;  %p2638_p6 = scmp.lt.s32.totalorder %s3242_s6, %s2636_s19  ;;  %p2639_p12 = scmp.lt.s32.totalorder %s2637_s23, %s2631_s18 }
  0x61   : > { %2238 = vmatprep.subr.bf16.mxu0 %v2417_v3  ;;  %571 = vperm.xlu0 %2401, %v2948_v16   ;;  %v2431_v24 = vld [vmem:[#allocation6 + $0x78] ss:$12 sps:$4 sm:$0xff]   ;;  %v359_v29 = vld [vmem:[%s2895_s24 + $0x28] sm:$0xff]  ;;  %v2982_v31 = vld [vmem:[%s3295_s1 + $0x30] sm:$0xff]  ;;  %v363_v34 = vpack.c.bf16 %v357_v26, %v356_v25  ;;  %p2634_p2 = pneg %p2633_p1 }
  0x62   : > { %1288 = vmatprep.subr.bf16.mxu1 %v2426_v15  ;;  %v2432_v27 = vld [vmem:[#allocation6 + $0x64] ss:$12 sps:$4 sm:$0xff]   ;;  %v2434_v30 = vld [vmem:[#allocation6 + $0x60] ss:$12 sps:$4 sm:$0xff]   ;;  %v2437_v35 = vld [vmem:[#allocation6 + $0x48] ss:$12 sps:$4 sm:$0xff]   ;;  %p2640_p3 = por %p2639_p12, %p2638_p6 }
  0x63   : > { %1289 = vmatpush1.bf16.msra.mxu1 %v2428_v17  ;;  %v358_v28 = vld [vmem:[%s2895_s24 + $0x20] sm:$0xff]  ;;  %v2435_v32 = vld [vmem:[#allocation6 + $0x4c] ss:$12 sps:$4 sm:$0xff]   ;;  %v2443_v38 = vld [vmem:[#allocation6 + $0x228] ss:$12 sps:$4 sm:$0xff]  }
  0x64   : > { %2239 = vmatpush3.bf16.msra.mxu0 %v2417_v3  ;;  %2404 = vset.pattern.permute.xlu1 %v2711_v20  ;;  %v2445_v33 = vld [vmem:[#allocation6 + $0x22c] ss:$12 sps:$4 sm:$0xff]   ;;  %v364_v36 = vpack.c.bf16 %v359_v29, %v358_v28  ;;  %v2438_v37 = vld [vmem:[#allocation6 + $0x34] ss:$12 sps:$4 sm:$0xff]   ;;  %v2440_v42 = vld [vmem:[#allocation6 + $0x30] ss:$12 sps:$4 sm:$0xff]   ;;  %p2641_p9 = pnand %p2640_p3, %p2634_p2 }
  0x65   : > { %2240 = vmatprep.subr.bf16.mxu0 %v2418_v4  ;;  %525 = vperm.xlu1 %2404, %v2948_v16   ;;  %v360_v39 = vld [vmem:[%s2895_s24 + $0x30] sm:$0xff]  ;;  %v361_v40 = vld [vmem:[%s2895_s24 + $0x38] sm:$0xff]  ;;  %v2452_v49 = vld [vmem:[#allocation6] ss:$12 sps:$4 sm:$0xff]  }
  0x66   : > { %2403 = vset.pattern.permute.xlu0 %v2711_v20  ;;  %1290 = vmatprep.subr.bf16.mxu1 %v2429_v18  ;;  %v2451_v41 = vld [vmem:[#allocation6 + $0x214] ss:$12 sps:$4 sm:$0xff]   ;;  %v2993_v43 = vld [vmem:[%s3295_s1 + $0x38] sm:$0xff]  ;;  %v365_v46 = vpack.c.bf16 %v361_v40, %v360_v39  ;;  %v2447_v48 = vld [vmem:[#allocation6 + $0x4] ss:$12 sps:$4 sm:$0xff]  }
  0x67   : > { %520 = vperm.xlu0 %2403, %v2929_v9   ;;  %1291 = vmatpush1.bf16.msra.mxu1 %v2431_v24  ;;  %v2441_v44 = vld [vmem:[#allocation6 + $0x1c] ss:$12 sps:$4 sm:$0xff]   ;;  %v2446_v47 = vld [vmem:[#allocation6 + $0x18] ss:$12 sps:$4 sm:$0xff]   ;;  %v2459_v54 = vld [vmem:[#allocation6 + $0x154] ss:$12 sps:$4 sm:$0xff]  }
  0x68   : > { %2241 = vmatpush3.bf16.msra.mxu0 %v2418_v4  ;;  %1292 = vmatprep.subr.bf16.mxu1 %v2432_v27  ;;  %v2449_v45 = vld [vmem:[#allocation6 + $0x210] ss:$12 sps:$4 sm:$0xff]   ;;  %v2453_v50 = vld [vmem:[#allocation6 + $0x16c] ss:$12 sps:$4 sm:$0xff]   ;;  %v2458_v52 = vld [vmem:[#allocation6 + $0x168] ss:$12 sps:$4 sm:$0xff]  }
  0x69   : > { %2242 = vmatprep.subr.bf16.mxu0 %v2419_v10  ;;  %2405 = vset.pattern.permute.xlu1 %v2710_v0  ;;  %v2457_v51 = vld [vmem:[#allocation6 + $0x1fc] ss:$12 sps:$4 sm:$0xff]   ;;  %v2455_v53 = vld [vmem:[#allocation6 + $0x1f8] ss:$12 sps:$4 sm:$0xff]   ;;  %v2461_v57 = vld [vmem:[#allocation6 + $0x1e0] ss:$12 sps:$4 sm:$0xff]  }
  0x6a   : > { %583 = vperm.xlu1 %2405, %v2964_v22   ;;  %v2463_v55 = vld [vmem:[#allocation6 + $0x1e4] ss:$12 sps:$4 sm:$0xff]   ;;  %v2465_v58 = vld [vmem:[#allocation6 + $0x13c] ss:$12 sps:$4 sm:$0xff]   ;;  %v2469_v59 = vld [vmem:[#allocation6 + $0x1cc] ss:$12 sps:$4 sm:$0xff]  }
  0x6b   : > { %2406 = vset.pattern.permute.xlu0 %v2710_v0  ;;  %1293 = vmatpush1.bf16.msra.mxu1 %v2434_v30  ;;  %v2464_v56 = vld [vmem:[#allocation6 + $0x150] ss:$12 sps:$4 sm:$0xff]   ;;  %v2470_v60 = vld [vmem:[#allocation6 + $0x138] ss:$12 sps:$4 sm:$0xff]   ;;  %v2467_v61 = vld [vmem:[#allocation6 + $0x1c8] ss:$12 sps:$4 sm:$0xff]  }
  0x6c   : > { %2243 = vmatpush3.bf16.msra.mxu0 %v2419_v10  ;;  %587 = vperm.xlu0 %2406, %v2969_v23   ;;  %v2471_v62 = vld [vmem:[#allocation6 + $0x124] ss:$12 sps:$4 sm:$0xff]   ;;  %v2475_v63 = vld [vmem:[#allocation6 + $0x1b4] ss:$12 sps:$4 sm:$0xff]   ;;  %v2477_v2 = vld [vmem:[#allocation6 + $0x10c] ss:$12 sps:$4 sm:$0xff]  }
  0x6d   : > { %2244 = vmatprep.subr.bf16.mxu0 %v2420_v14  ;;  %1294 = vmatprep.subr.bf16.mxu1 %v2435_v32  ;;  %v2473_v1 = vld [vmem:[#allocation6 + $0x1b0] ss:$12 sps:$4 sm:$0xff]   ;;  %v2482_v4 = vld [vmem:[#allocation6 + $0x108] ss:$12 sps:$4 sm:$0xff]   ;;  %v2479_v5 = vld [vmem:[#allocation6 + $0x198] ss:$12 sps:$4 sm:$0xff]  }
  0x6e   : > { %2407 = vset.pattern.permute.xlu1 %v2711_v20  ;;  %v2481_v3 = vld [vmem:[#allocation6 + $0x19c] ss:$12 sps:$4 sm:$0xff]   ;;  %v2483_v6 = vld [vmem:[#allocation6 + $0xf4] ss:$12 sps:$4 sm:$0xff]   ;;  %v2487_v7 = vld [vmem:[#allocation6 + $0x184] ss:$12 sps:$4 sm:$0xff]  }
  0x6f   : > { %530 = vperm.xlu1 %2407, %v2924_v8   ;;  %1295 = vmatpush1.bf16.msra.mxu1 %v2437_v35  ;;  %v2488_v10 = vld [vmem:[#allocation6 + $0xf0] ss:$12 sps:$4 sm:$0xff]   ;;  %v2485_v12 = vld [vmem:[#allocation6 + $0x180] ss:$12 sps:$4 sm:$0xff]   ;;  %v2492_v15 = vld [vmem:[#allocation6 + $0xd8] ss:$12 sps:$4 sm:$0xff]  }
  0x70   : > { %2245 = vmatpush3.bf16.msra.mxu0 %v2420_v14  ;;  %591 = vperm.xlu0 %2406, %v2982_v31   ;;  %v2489_v13 = vld [vmem:[#allocation6 + $0xdc] ss:$12 sps:$4 sm:$0xff]   ;;  %v2495_v17 = vld [vmem:[#allocation6 + $0xc4] ss:$12 sps:$4 sm:$0xff]   ;;  %v2498_v18 = vld [vmem:[#allocation6 + $0xc0] ss:$12 sps:$4 sm:$0xff]  }
  0x71   : > { %2246 = vmatprep.subr.bf16.mxu0 %v2421_v19  ;;  %1296 = vmatprep.subr.bf16.mxu1 %v2438_v37  ;;  %v2491_v14 = vld [vmem:[#allocation6 + $0x170] ss:$12 sps:$4 sm:$0xff]   ;;  %v2713_v24 = vmov 3  }
  0x73   : > { %535 = vperm.xlu1 %2407, %v2938_v11   ;;  %1297 = vmatpush1.bf16.msra.mxu1 %v2440_v42 }
  0x74   : > { %2247 = vmatpush3.bf16.msra.mxu0 %v2421_v19  ;;  %2409 = vset.pattern.permute.xlu0 %v2711_v20  ;;  %v3004_v19 = vld [vmem:[#allocation6 + $0x230] ss:$12 sps:$4 sm:$0xff]  }
  0x75   : > { %2248 = vmatprep.subr.bf16.mxu0 %v2422_v21  ;;  %540 = vperm.xlu0 %2409, %v2964_v22  }
  0x76   : > { %1298 = vmatprep.subr.bf16.mxu1 %v2441_v44 }
  0x77   : > { %2408 = vset.pattern.permute.xlu1 %v2710_v0  ;;  %1299 = vmatpush1.bf16.msra.mxu1 %v2446_v47  ;;  %v2476_v0 = vld [vmem:[#allocation6 + $0x120] ss:$12 sps:$4 sm:$0xff]  }
  0x78   : > { %2249 = vmatpush3.bf16.msra.mxu0 %v2422_v21  ;;  %595 = vperm.xlu1 %2408, %v2993_v43   ;;  %v2712_v21 = vmov 2  }
  0x79   : > { %1359 = vmatprep.subr.bf16.mxu0 %v2445_v33  ;;  %555 = vperm.xlu0 %2409, %v2993_v43  }
  0x7a   : > { %1300 = vmatprep.subr.bf16.mxu1 %v2447_v48 }
  0x7b   : > { %2251 = vmatmul.mubr.bf16.vlgmr.msra.gmra.mxu0 %v363_v34  ;;  %1301 = vmatpush1.bf16.msra.mxu1 %v2452_v49 }
  0x7c   : > { %2254 = vmatprep.mubr.bf16.mxu0 %v364_v36  ;;  %1360 = vmatpush1.bf16.msra.mxu0 %v2443_v38 }
  0x7d   : > { %1361 = vmatprep.subr.bf16.mxu0 %v2451_v41  ;;  %2410 = vset.pattern.permute.xlu1 %v2711_v20 }
  0x7e   : > { %545 = vperm.xlu1 %2410, %v2969_v23   ;;  %1302 = vmatprep.subr.bf16.mxu1 %v2453_v50 }
  0x7f   : > { %1303 = vmatpush2.bf16.msra.mxu1 %v2458_v52  ;;  %2412 = vset.pattern.permute.xlu0 %v2712_v21 }
  0x80   : > { %1362 = vmatpush1.bf16.msra.mxu0 %v2449_v45  ;;  %1304 = vmatprep.subr.bf16.mxu1 %v2459_v54 }
  0x81   : > { %1363 = vmatprep.subr.bf16.mxu0 %v2457_v51  ;;  %1586 = vperm.xlu0 %2412, %v2948_v16  }
  0x82   : > { %550 = vperm.xlu1 %2410, %v2982_v31  }
  0x83   : > { %2255 = vmatmul.mubr.bf16.gmra.mxu0 %v365_v46  ;;  %1305 = vmatpush2.bf16.msra.mxu1 %v2464_v56 }
  0x84   : > { %1391 = vmatprep.mubr.bf16.mxu0 %v2711_v20  ;;  %1364 = vmatpush1.bf16.msra.mxu0 %v2455_v53 }
  0x85   : > { %1365 = vmatprep.subr.bf16.mxu0 %v2463_v55  ;;  %1306 = vmatprep.subr.bf16.mxu1 %v2465_v58 }
  0x86   : > { %2411 = vset.pattern.permute.xlu1 %v2712_v21  ;;  %1590 = vperm.xlu0 %2412, %v2924_v8  }
  0x87   : > { %1307 = vmatpush2.bf16.msra.mxu1 %v2470_v60  ;;  %1582 = vperm.xlu1 %2411, %v2929_v9  }
  0x88   : > { %1366 = vmatpush1.bf16.msra.mxu0 %v2461_v57  ;;  %1308 = vmatprep.subr.bf16.mxu1 %v2471_v62 }
  0x89   : > { %1367 = vmatprep.subr.bf16.mxu0 %v2469_v59 }
  0x8a   : > { %1606 = vperm.xlu0 %2412, %v2982_v31  }
  0x8b   : > { %1309 = vmatpush2.bf16.msra.mxu1 %v2476_v0  ;;  %1598 = vperm.xlu1 %2411, %v2964_v22  }
  0x8c   : > { %1368 = vmatpush1.bf16.msra.mxu0 %v2467_v61  ;;  %1310 = vmatprep.subr.bf16.mxu1 %v2477_v2 }
  0x8d   : > { %1369 = vmatprep.subr.bf16.mxu0 %v2475_v63 }
  0x8e   : > { %2413 = vset.pattern.permute.xlu0 %v2713_v24 }
  0x8f   : > { %1311 = vmatpush2.bf16.msra.mxu1 %v2482_v4  ;;  %1602 = vperm.xlu1 %2411, %v2969_v23  }
  0x90   : > { %1370 = vmatpush1.bf16.msra.mxu0 %v2473_v1  ;;  %1312 = vmatprep.subr.bf16.mxu1 %v2483_v6 }
  0x91   : > { %1371 = vmatprep.subr.bf16.mxu0 %v2481_v3  ;;  %1647 = vperm.xlu0 %2413, %v2929_v9  }
  0x93   : > { %1313 = vmatpush2.bf16.msra.mxu1 %v2488_v10  ;;  %1594 = vperm.xlu1 %2411, %v2938_v11  }
  0x94   : > { %1372 = vmatpush1.bf16.msra.mxu0 %v2479_v5  ;;  %1314 = vmatprep.subr.bf16.mxu1 %v2489_v13 }
  0x95   : > { %1373 = vmatprep.subr.bf16.mxu0 %v2487_v7  ;;  %1667 = vperm.xlu0 %2413, %v2969_v23  }
  0x97   : > { %1315 = vmatpush2.bf16.msra.mxu1 %v2492_v15  ;;  %1610 = vperm.xlu1 %2411, %v2993_v43  }
  0x98   : > { %1374 = vmatpush1.bf16.msra.mxu0 %v2485_v12  ;;  %1316 = vmatprep.subr.bf16.mxu1 %v2495_v17 }
  0x99   : > { %2170 = vmatprep.subr.bf16.mxu0 %v2491_v14  ;;  %1659 = vperm.xlu0 %2413, %v2938_v11   ;;  %v3032_v11 = vld [vmem:[%s3297_s3] ss:$0 sm:$0xff] }
  0x9b   : > { %1317 = vmatpush2.bf16.msra.mxu1 %v2498_v18  ;;  %2414 = vset.pattern.permute.xlu1 %v2713_v24 }
  0x9c   : > { %2258 = vmatprep.subr.bf16.mxu1 %v3004_v19  ;;  %1651 = vperm.xlu1 %2414, %v2948_v16  }
  0x9d   : > { %1675 = vperm.xlu0 %2413, %v2993_v43  }
  0xa0   : > { %1663 = vperm.xlu1 %2414, %v2964_v22  }
  0xa4   : > { %1655 = vperm.xlu1 %2414, %v2924_v8  }
  0xa8   : > { %1671 = vperm.xlu1 %2414, %v2982_v31  }
  0xd7   : > { %v576_v25 = vpop.permute.xlu1 %575 }
  0xd8   : > { %v568_v27 = vpop.permute.xlu0 %567 }
  0xdb   : > { %v3017_v26 = vpop.permute.xlu1 %579 }
  0xdc   : > { %v572_v29 = vpop.permute.xlu0 %571 }
  0xe0   : > { %v526_v28 = vpop.permute.xlu1 %525 }
  0xe2   : > { %v3027_v23 = vpop.permute.xlu0 %520 }
  0xe5   : > { %v3024_v9 = vpop.permute.xlu1 %583 }
  0xe7   : > { %v588_v32 = vpop.permute.xlu0 %587 }
  0xea   : > { %v531_v30 = vpop.permute.xlu1 %530 }
  0xeb   : > { %v3035_v34 = vpop.permute.xlu0 %591 }
  0xee   : > { %v536_v16 = vpop.permute.xlu1 %535 }
  0xf0   : > { %v541_v48 = vpop.permute.xlu0 %540 }
  0xf3   : > { %v596_v41 = vpop.permute.xlu1 %595 }
  0xf4   : > { %v556_v63 = vpop.permute.xlu0 %555 }
  0xf9   : > { %v546_v5 = vpop.permute.xlu1 %545 }
 0x13b   : > { %v2252_v22 = vpop.f32.mrf.mxu0 }
 0x13c   : > { %v488_v33 = vadd.f32 %v2252_v22, %v3032_v11 }
 0x13d   : > { %v479_v8 = vpop.f32.mrf.mxu0 }
 0x13e   : > { %v512_v35 = vmax.f32 %v488_v33, 0.0  ;;  %v480_v36 = vadd.f32 %v3032_v11, %v479_v8 }
 0x13f   : > { %v2253_v31 = vpop.f32.mrf.mxu0 }
 0x140   : > { %v599_v37 = vmul.f32 %v572_v29, %v512_v35  ;;  %v2143_v38 = vpack.c.bf16 %v512_v35, %v512_v35  ;;  %v561_v39 = vmul.f32 %v536_v16, %v512_v35  ;;  %v510_v40 = vmax.f32 %v480_v36, 0.0 }
 0x141   : > { %v491_v42 = vadd.f32 %v2253_v31, %v3032_v11  ;;  %v482_v43 = vpop.f32.mrf.mxu0 }
 0x142   : > { %680 = vst [vmem:[#allocation2 + $0x1c] sm:$0xf] %v2143_v38  ;;  %v2150_v44 = vpack.c.bf16 %v599_v37, %v599_v37  ;;  %v2136_v45 = vpack.c.bf16 %v561_v39, %v561_v39  ;;  %v559_v46 = vmul.f32 %v526_v28, %v510_v40  ;;  %v2141_v47 = vpack.c.bf16 %v510_v40, %v510_v40 }
 0x143   : > { %v513_v49 = vmax.f32 %v491_v42, 0.0  ;;  %v605_v50 = vmul.f32 %v596_v41, %v510_v40  ;;  %v483_v51 = vadd.f32 %v3032_v11, %v482_v43  ;;  %v2256_v52 = vpop.f32.mrf.mxu0  ;;  %v2497_v40 = vld [vmem:[#allocation6 + $0x158] ss:$12 sps:$4 sm:$0xff]   ;;  %v2508_v43 = vld [vmem:[#allocation6 + $0x80] ss:$12 sps:$4 sm:$0xff]  }
 0x144   : > { %719 = vst [vmem:[#allocation2 + $0x14] sm:$0xf] %v2150_v44  ;;  %641 = vst [vmem:[#allocation2 + $0x24] sm:$0xf] %v2136_v45  ;;  %v2134_v53 = vpack.c.bf16 %v559_v46, %v559_v46  ;;  %v504_v54 = vadd.f32 %v2256_v52, %v3032_v11  ;;  %v2499_v42 = vld [vmem:[#allocation6 + $0x98] ss:$12 sps:$4 sm:$0xff]  }
 0x145   : > { %678 = vst [vmem:[#allocation2 + $0x4] sm:$0xf] %v2141_v47  ;;  %v600_v55 = vmul.f32 %v576_v25, %v513_v49  ;;  %v2144_v56 = vpack.c.bf16 %v513_v49, %v513_v49  ;;  %v2156_v57 = vpack.c.bf16 %v605_v50, %v605_v50  ;;  %v511_v58 = vmax.f32 %v483_v51, 0.0  ;;  %v495_v59 = vpop.f32.mrf.mxu0  ;;  %v2509_v46 = vld [vmem:[#allocation6 + $0x128] ss:$12 sps:$4 sm:$0xff]  }
 0x146   : > { %639 = vst [vmem:[#allocation2 + $0xc] sm:$0xf] %v2134_v53  ;;  %v562_v60 = vmul.f32 %v541_v48, %v513_v49  ;;  %v516_v61 = vmax.f32 %v504_v54, 0.0  ;;  %v496_v62 = vadd.f32 %v3032_v11, %v495_v59  ;;  %v2510_v48 = vld [vmem:[#allocation6 + $0x218] ss:$12 sps:$4 sm:$0xff]  }
 0x147   : > { %681 = vst [vmem:[#allocation2 + $0x28] sm:$0xf] %v2144_v56  ;;  %v2151_v0 = vpack.c.bf16 %v600_v55, %v600_v55  ;;  %725 = vst [vmem:[#allocation2 + $0x5c] sm:$0xf] %v2156_v57  ;;  %v560_v1 = vmul.f32 %v531_v30, %v511_v58  ;;  %v598_v2 = vmul.f32 %v568_v27, %v511_v58  ;;  %v2257_v4 = vpop.f32.mrf.mxu0  ;;  %v2511_v50 = vld [vmem:[#allocation6 + $0x68] ss:$12 sps:$4 sm:$0xff]  }
 0x148   : > { %v2142_v3 = vpack.c.bf16 %v511_v58, %v511_v58  ;;  %v2137_v6 = vpack.c.bf16 %v562_v60, %v562_v60  ;;  %v603_v7 = vmul.f32 %v588_v32, %v516_v61  ;;  %v2147_v10 = vpack.c.bf16 %v516_v61, %v516_v61  ;;  %v2513_v51 = vld [vmem:[#allocation6 + $0x110] ss:$12 sps:$4 sm:$0xff]   ;;  %v2514_v52 = vld [vmem:[#allocation6 + $0x200] ss:$12 sps:$4 sm:$0xff]   ;;  %v2519_v55 = vld [vmem:[#allocation6 + $0xf8] ss:$12 sps:$4 sm:$0xff]  }
 0x149   : > { %v514_v12 = vmax.f32 %v496_v62, 0.0  ;;  %720 = vst [vmem:[#allocation2 + $0x20] sm:$0xf] %v2151_v0  ;;  %v2135_v13 = vpack.c.bf16 %v560_v1, %v560_v1  ;;  %v2149_v14 = vpack.c.bf16 %v598_v2, %v598_v2  ;;  %v507_v15 = vadd.f32 %v2257_v4, %v3032_v11  ;;  %v498_v18 = vpop.f32.mrf.mxu0  ;;  %v2518_v54 = vld [vmem:[#allocation6 + $0x50] ss:$12 sps:$4 sm:$0xff]  }
 0x14a   : > { %679 = vst [vmem:[#allocation2 + $0x10] sm:$0xf] %v2142_v3  ;;  %v565_v17 = vmul.f32 %v556_v63, %v516_v61  ;;  %642 = vst [vmem:[#allocation2 + $0x30] sm:$0xf] %v2137_v6  ;;  %v2154_v21 = vpack.c.bf16 %v603_v7, %v603_v7  ;;  %v499_v30 = vadd.f32 %v3032_v11, %v498_v18  ;;  %v2520_v58 = vld [vmem:[#allocation6 + $0x1e8] ss:$12 sps:$4 sm:$0xff]  }
 0x14b   : > { %684 = vst [vmem:[#allocation2 + $0x4c] sm:$0xf] %v2147_v10  ;;  %v601_v24 = vmul.f32 %v3017_v26, %v514_v12  ;;  %v2145_v25 = vpack.c.bf16 %v514_v12, %v514_v12  ;;  %v563_v27 = vmul.f32 %v546_v5, %v514_v12  ;;  %640 = vst [vmem:[#allocation2 + $0x18] sm:$0xf] %v2135_v13  ;;  %v517_v28 = vmax.f32 %v507_v15, 0.0  ;;  %v551_v26 = vpop.permute.xlu1 %550  ;;  %v2535_v6 = vld [vmem:[#allocation8 + $0x38] sm:$0xff]  }
 0x14c   : > { %718 = vst [vmem:[#allocation2 + $0x8] sm:$0xf] %v2149_v14  ;;  %v2140_v29 = vpack.c.bf16 %v565_v17, %v565_v17  ;;  %723 = vst [vmem:[#allocation2 + $0x44] sm:$0xf] %v2154_v21  ;;  %v515_v35 = vmax.f32 %v499_v30, 0.0  ;;  %v2536_v7 = vld [vmem:[#allocation8 + $0x30] sm:$0xff]  }
 0x14d   : > { %682 = vst [vmem:[#allocation2 + $0x34] sm:$0xf] %v2145_v25  ;;  %v2152_v32 = vpack.c.bf16 %v601_v24, %v601_v24  ;;  %v2138_v16 = vpack.c.bf16 %v563_v27, %v563_v27  ;;  %v558_v22 = vmul.f32 %v3027_v23, %v517_v28  ;;  %v604_v33 = vmul.f32 %v3035_v34, %v517_v28  ;;  %v2494_v23 = vld [vmem:[#allocation6 + $0xb0] ss:$12 sps:$4 sm:$0xff]   ;;  %v2523_v59 = vld [vmem:[#allocation6 + $0xe0] ss:$12 sps:$4 sm:$0xff]  }
 0x14e   : > { %v2148_v8 = vpack.c.bf16 %v517_v28, %v517_v28  ;;  %645 = vst [vmem:[#allocation2 + $0x54] sm:$0xf] %v2140_v29  ;;  %v602_v37 = vmul.f32 %v3024_v9, %v515_v35  ;;  %v2146_v11 = vpack.c.bf16 %v515_v35, %v515_v35  ;;  %v564_v38 = vmul.f32 %v551_v26, %v515_v35  ;;  %v2503_v9 = vld [vmem:[#allocation6 + $0x140] ss:$12 sps:$4 sm:$0xff]   ;;  %v3054_v47 = vld [vmem:[#allocation2 + $0x1c] ss:$12 sps:$4 sm:$0xff]  }
 0x14f   : > { %721 = vst [vmem:[#allocation2 + $0x2c] sm:$0xf] %v2152_v32  ;;  %643 = vst [vmem:[#allocation2 + $0x3c] sm:$0xf] %v2138_v16  ;;  %v2133_v36 = vpack.c.bf16 %v558_v22, %v558_v22  ;;  %v2155_v31 = vpack.c.bf16 %v604_v33, %v604_v33  ;;  %v2524_v60 = vld [vmem:[#allocation6 + $0x1d0] ss:$12 sps:$4 sm:$0xff]   ;;  %v3076_v22 = vpop.permute.xlu1 %1582 }
 0x150   : > { %685 = vst [vmem:[#allocation2 + $0x58] sm:$0xf] %v2148_v8  ;;  %683 = vst [vmem:[#allocation2 + $0x40] sm:$0xf] %v2146_v11  ;;  %v2153_v39 = vpack.c.bf16 %v602_v37, %v602_v37  ;;  %v2139_v34 = vpack.c.bf16 %v564_v38, %v564_v38  ;;  %v2528_v62 = vld [vmem:[#allocation6 + $0x20] ss:$12 sps:$4 sm:$0xff]  }
 0x151   : > { %638 = vst [vmem:[#allocation2] sm:$0xf] %v2133_v36  ;;  %724 = vst [vmem:[#allocation2 + $0x50] sm:$0xf] %v2155_v31  ;;  %v2502_v45 = vld [vmem:[#allocation2 + $0x4] ss:$12 sps:$4 sm:$0xff]  }
 0x152   : > { %722 = vst [vmem:[#allocation2 + $0x38] sm:$0xf] %v2153_v39  ;;  %644 = vst [vmem:[#allocation2 + $0x48] sm:$0xf] %v2139_v34  ;;  %1318 = vmatprep.mubr.bf16.mxu1 %v2502_v45  ;;  %v2512_v53 = vld [vmem:[#allocation2 + $0x18] ss:$12 sps:$4 sm:$0xff]  }
 0x153   : > { %v3048_v41 = vld [vmem:[#allocation2 + $0x8] ss:$12 sps:$4 sm:$0xff]   ;;  %v2530_v2 = vld [vmem:[#allocation6 + $0x1b8] ss:$12 sps:$4 sm:$0xff]   ;;  %v2533_v4 = vld [vmem:[#allocation6 + $0x1a0] ss:$12 sps:$4 sm:$0xff]   ;;  %v3086_v37 = vpop.permute.xlu1 %1598 }
 0x154   : > { %1392 = vmatmul.mubr.bf16.vlgmr.msra.gmra.mxu0 %v3048_v41  ;;  %v2529_v1 = vld [vmem:[#allocation6 + $0xc8] ss:$12 sps:$4 sm:$0xff]   ;;  %v2538_v12 = vld [vmem:[#allocation8 + $0x20] sm:$0xff]   ;;  %v2539_v13 = vld [vmem:[#allocation8 + $0x18] sm:$0xff]  }
 0x155   : > { %2171 = vmatpush3.bf16.msra.mxu0 %v2494_v23  ;;  %1401 = vmatprep.mubr.bf16.mxu0 %v2711_v20  ;;  %v2531_v3 = vld [vmem:[#allocation6 + $0x8] ss:$12 sps:$4 sm:$0xff]   ;;  %v2542_v17 = vld [vmem:[#allocation8] sm:$0xff]  }
 0x156   : > { %2172 = vmatprep.subr.bf16.mxu0 %v2497_v40  ;;  %v3056_v49 = vld [vmem:[#allocation2 + $0x20] ss:$12 sps:$4 sm:$0xff]   ;;  %v2522_v61 = vld [vmem:[#allocation2 + $0x30] ss:$12 sps:$4 sm:$0xff]   ;;  %v2534_v5 = vld [vmem:[#allocation6 + $0x188] ss:$12 sps:$4 sm:$0xff]  }
 0x157   : > { %v2515_v56 = vld [vmem:[#allocation2 + $0x34] ss:$12 sps:$4 sm:$0xff]   ;;  %v2525_v63 = vld [vmem:[#allocation2 + $0x4c] ss:$12 sps:$4 sm:$0xff]  }
 0x158   : > { %v3052_v44 = vld [vmem:[#allocation2] ss:$12 sps:$4 sm:$0xff]   ;;  %v2527_v0 = vld [vmem:[#allocation2 + $0x50] ss:$12 sps:$4 sm:$0xff]  }
 0x159   : > { %2173 = vmatpush3.bf16.msra.mxu0 %v2499_v42  ;;  %1319 = vmatmul.mubr.bf16.vlgmr.msra.gmra.mxu1 %v3052_v44  ;;  %v2517_v57 = vld [vmem:[#allocation2 + $0x38] ss:$12 sps:$4 sm:$0xff]   ;;  %v2537_v10 = vld [vmem:[#allocation8 + $0x28] sm:$0xff]   ;;  %v2540_v14 = vld [vmem:[#allocation8 + $0x10] sm:$0xff]  }
 0x15a   : > { %2174 = vmatprep.subr.bf16.mxu0 %v2503_v9  ;;  %1328 = vmatprep.mubr.bf16.mxu1 %v3054_v47  ;;  %v2541_v15 = vld [vmem:[#allocation8 + $0x8] sm:$0xff]  }
 0x15b   : > { %2259 = vmatpush3.bf16.msra.mxu1 %v3004_v19  ;;  %v2521_v19 = vld [vmem:[#allocation6 + $0x38] ss:$12 sps:$4 sm:$0xff]  }
 0x15c   : > { %1402 = vmatmul.mubr.bf16.gmra.mxu0 %v3056_v49  ;;  %2260 = vmatprep.subr.bf16.mxu1 %v2510_v48 }
 0x15d   : > { %2175 = vmatpush3.bf16.msra.mxu0 %v2508_v43  ;;  %1411 = vmatprep.mubr.bf16.mxu0 %v2711_v20 }
 0x15e   : > { %2176 = vmatprep.subr.bf16.mxu0 %v2509_v46  ;;  %v1587_v46 = vpop.permute.xlu0 %1586 }
 0x15f   : > { %2261 = vmatpush3.bf16.msra.mxu1 %v2510_v48 }
 0x160   : > { %2262 = vmatprep.subr.bf16.mxu1 %v2514_v52 }
 0x161   : > { %2177 = vmatpush3.bf16.msra.mxu0 %v2511_v50  ;;  %1329 = vmatmul.mubr.bf16.gmra.mxu1 %v2512_v53  ;;  %v1570_v50 = vlaneseq }
 0x162   : > { %2178 = vmatprep.subr.bf16.mxu0 %v2513_v51  ;;  %1338 = vmatprep.mubr.bf16.mxu1 %v2515_v56 }
 0x163   : > { %2263 = vmatpush3.bf16.msra.mxu1 %v2514_v52 }
 0x164   : > { %1412 = vmatmul.mubr.bf16.gmra.mxu0 %v2517_v57  ;;  %2264 = vmatprep.subr.bf16.mxu1 %v2520_v58 }
 0x165   : > { %2179 = vmatpush3.bf16.msra.mxu0 %v2518_v54  ;;  %1421 = vmatprep.mubr.bf16.mxu0 %v2711_v20  ;;  %v2532_v20 = vld [vmem:[#allocation2 + $0x48] ss:$12 sps:$4 sm:$0xff]  }
 0x166   : > { %2180 = vmatprep.subr.bf16.mxu0 %v2519_v55 }
 0x167   : > { %2265 = vmatpush3.bf16.msra.mxu1 %v2520_v58  ;;  %v3116_v58 = vshrl.u32 %v1570_v50, 7 }
 0x168   : > { %2266 = vmatprep.subr.bf16.mxu1 %v2524_v60 }
 0x169   : > { %2181 = vmatpush3.bf16.msra.mxu0 %v2521_v19  ;;  %1339 = vmatmul.mubr.bf16.gmra.mxu1 %v2522_v61  ;;  %vm1572_vm0 = vcmp.lt.s32.totalorder %v3116_v58, 1  ;;  %vm1637_vm1 = vcmp.lt.s32.totalorder %v3116_v58, 7 }
 0x16a   : > { %2182 = vmatprep.subr.bf16.mxu0 %v2523_v59  ;;  %1348 = vmatprep.mubr.bf16.mxu1 %v2525_v63 }
 0x16b   : > { %2267 = vmatpush3.bf16.msra.mxu1 %v2524_v60  ;;  %v1591_v60 = vpop.permute.xlu0 %1590 }
 0x16c   : > { %1422 = vmatmul.mubr.bf16.gmra.mxu0 %v2527_v0  ;;  %2268 = vmatprep.subr.bf16.mxu1 %v2530_v2 }
 0x16d   : > { %2183 = vmatpush3.bf16.msra.mxu0 %v2528_v62  ;;  %1464 = vmatprep.mubr.bf16.mxu0 %v2502_v45 }
 0x16e   : > { %2184 = vmatprep.subr.bf16.mxu0 %v2529_v1 }
 0x16f   : > { %2269 = vmatpush3.bf16.msra.mxu1 %v2530_v2 }
 0x170   : > { %2270 = vmatprep.subr.bf16.mxu1 %v2533_v4 }
 0x171   : > { %2185 = vmatpush3.bf16.msra.mxu0 %v2531_v3  ;;  %1349 = vmatmul.mubr.bf16.gmra.mxu1 %v2532_v20 }
 0x172   : > { %2274 = vmatprep.mubr.bf16.mxu1 %v3048_v41  ;;  %2282 = vmatprep.subr.bf16.mxu0 %v2535_v6  ;;  %v3096_v41 = vpop.permute.xlu1 %1602 }
 0x173   : > { %2271 = vmatpush3.bf16.msra.mxu1 %v2533_v4 }
 0x174   : > { %1465 = vmatmul.mubr.bf16.vlgmr.msra.gmra.mxu0 %v3052_v44  ;;  %2272 = vmatprep.subr.bf16.mxu1 %v2534_v5 }
 0x175   : > { %1472 = vmatprep.mubr.bf16.mxu0 %v3054_v47  ;;  %2283 = vmatpush3.bf16.msra.mxu0 %v2535_v6 }
 0x176   : > { %2284 = vmatprep.subr.bf16.mxu0 %v2536_v7  ;;  %v3108_v48 = vpop.permute.xlu1 %1594 }
 0x177   : > { %2273 = vmatpush3.bf16.msra.mxu1 %v2534_v5 }
 0x178   : > { %2306 = vmatprep.subr.bf16.mxu1 %v2535_v6 }
 0x179   : > { %2285 = vmatpush3.bf16.msra.mxu0 %v2536_v7 }
 0x17a   : > { %2275 = vmatmul.mubr.bf16.vlgmr.msra.gmra.mxu1 %v3056_v49  ;;  %2286 = vmatprep.subr.bf16.mxu0 %v2537_v10 }
 0x17b   : > { %2278 = vmatprep.mubr.bf16.mxu1 %v2517_v57  ;;  %2314 = vmatpush3.bf16.msra.mxu1 %v2535_v6  ;;  %v3124_v6 = vpop.permute.xlu0 %1606 }
 0x17c   : > { %1473 = vmatmul.mubr.bf16.gmra.mxu0 %v2512_v53  ;;  %2307 = vmatprep.subr.bf16.mxu1 %v2536_v7 }
 0x17d   : > { %1480 = vmatprep.mubr.bf16.mxu0 %v2515_v56  ;;  %2287 = vmatpush3.bf16.msra.mxu0 %v2537_v10  ;;  %v3114_v56 = vpop.permute.xlu1 %1610 }
 0x17e   : > { %2288 = vmatprep.subr.bf16.mxu0 %v2538_v12 }
 0x17f   : > { %2315 = vmatpush3.bf16.msra.mxu1 %v2536_v7 }
 0x180   : > { %2308 = vmatprep.subr.bf16.mxu1 %v2537_v10 }
 0x181   : > { %2289 = vmatpush3.bf16.msra.mxu0 %v2538_v12  ;;  %v1652_v1 = vpop.permute.xlu1 %1651 }
 0x182   : > { %2279 = vmatmul.mubr.bf16.gmra.mxu1 %v2527_v0  ;;  %2290 = vmatprep.subr.bf16.mxu0 %v2539_v13 }
 0x183   : > { %2316 = vmatpush3.bf16.msra.mxu1 %v2537_v10 }
 0x184   : > { %1481 = vmatmul.mubr.bf16.gmra.mxu0 %v2522_v61  ;;  %2309 = vmatprep.subr.bf16.mxu1 %v2538_v12 }
 0x185   : > { %1488 = vmatprep.mubr.bf16.mxu0 %v2525_v63  ;;  %2291 = vmatpush3.bf16.msra.mxu0 %v2539_v13 }
 0x186   : > { %2292 = vmatprep.subr.bf16.mxu0 %v2540_v14 }
 0x187   : > { %2317 = vmatpush3.bf16.msra.mxu1 %v2538_v12 }
 0x188   : > { %2310 = vmatprep.subr.bf16.mxu1 %v2539_v13 }
 0x189   : > { %2293 = vmatpush3.bf16.msra.mxu0 %v2540_v14 }
 0x18a   : > { %2294 = vmatprep.subr.bf16.mxu0 %v2541_v15 }
 0x18b   : > { %2318 = vmatpush3.bf16.msra.mxu1 %v2539_v13 }
 0x18c   : > { %1489 = vmatmul.mubr.bf16.gmra.mxu0 %v2532_v20  ;;  %2311 = vmatprep.subr.bf16.mxu1 %v2540_v14 }
 0x18d   : > { %2295 = vmatpush3.bf16.msra.mxu0 %v2541_v15 }
 0x18e   : > { %2296 = vmatprep.subr.bf16.mxu0 %v2542_v17 }
 0x18f   : > { %2319 = vmatpush3.bf16.msra.mxu1 %v2540_v14 }
 0x190   : > { %2312 = vmatprep.subr.bf16.mxu1 %v2541_v15 }
 0x191   : > { %2297 = vmatpush3.bf16.msra.mxu0 %v2542_v17 }
 0x193   : > { %2320 = vmatpush3.bf16.msra.mxu1 %v2541_v15 }
 0x194   : > { %2313 = vmatprep.subr.bf16.mxu1 %v2542_v17 }
 0x197   : > { %2321 = vmatpush3.bf16.msra.mxu1 %v2542_v17 }
 0x214   : > { %v1393_v18 = vpop.f32.mrf.mxu0 }
 0x216   : > { %v3068_v21 = vpop.f32.mrf.mxu0 }
 0x218   : > { %v1397_v24 = vpop.f32.mrf.mxu0 }
 0x219   : > { %v1320_v27 = vpop.f32.mrf.mxu1 }
 0x21a   : > { %v3070_v25 = vpop.f32.mrf.mxu0  ;;  %v1394_v59 = vadd.f32 %v1393_v18, %v1320_v27 }
 0x21b   : > { %v3072_v29 = vpop.f32.mrf.mxu1 }
 0x21c   : > { %v1403_v28 = vpop.f32.mrf.mxu0  ;;  %v1562_v20 = vrot.slane %v1394_v59, 7 }
 0x21d   : > { %v1324_v32 = vpop.f32.mrf.mxu1 }
 0x21e   : > { %v3074_v30 = vpop.f32.mrf.mxu0  ;;  %v1398_v54 = vadd.f32 %v1397_v24, %v1324_v32 }
 0x21f   : > { %v3078_v33 = vpop.f32.mrf.mxu1 }
 0x220   : > { %v1407_v16 = vpop.f32.mrf.mxu0  ;;  %v1563_v0 = vrot.slane %v1398_v54, 7 }
 0x221   : > { %v1330_v35 = vpop.f32.mrf.mxu1 }
 0x222   : > { %v3080_v8 = vpop.f32.mrf.mxu0  ;;  %v1404_v57 = vadd.f32 %v1403_v28, %v1330_v35  ;;  %v1579_v13 = vsel %vm1572_vm0, %v1562_v20, %v1563_v0 }
 0x223   : > { %v3082_v36 = vpop.f32.mrf.mxu1  ;;  %v1614_v50 = vmul.f32 %v1587_v46, %v1579_v13 }
 0x224   : > { %v1413_v26 = vpop.f32.mrf.mxu0  ;;  %v1564_v2 = vrot.slane %v1404_v57, 7  ;;  %v1396_v57 = vadd.f32 %v3068_v21, %v3072_v29 }
 0x225   : > { %v1334_v11 = vpop.f32.mrf.mxu1 }
 0x226   : > { %v3084_v31 = vpop.f32.mrf.mxu0  ;;  %v1408_v7 = vadd.f32 %v1407_v16, %v1334_v11  ;;  %v1578_v17 = vsel %vm1572_vm0, %v1563_v0, %v1564_v2  ;;  %v1648_v11 = vpop.permute.xlu0 %1647 }
 0x227   : > { %v3090_v39 = vpop.f32.mrf.mxu1  ;;  %v1615_v59 = vmul.f32 %v1591_v60, %v1578_v17 }
 0x228   : > { %v3088_v38 = vpop.f32.mrf.mxu0 }
 0x229   : > { %v1340_v40 = vpop.f32.mrf.mxu1 }
 0x22a   : > { %v3092_v23 = vpop.f32.mrf.mxu0  ;;  %v3130_v18 = vadd.f32 %v1413_v26, %v1340_v40 }
 0x22b   : > { %v3098_v42 = vpop.f32.mrf.mxu1 }
 0x22c   : > { %v3094_v34 = vpop.f32.mrf.mxu0 }
 0x22d   : > { %v3102_v43 = vpop.f32.mrf.mxu1 }
 0x22e   : > { %v3100_v9 = vpop.f32.mrf.mxu0 }
 0x22f   : > { %v3104_v45 = vpop.f32.mrf.mxu1 }
 0x230   : > { %v1427_v44 = vpop.f32.mrf.mxu0 }
 0x231   : > { %v3110_v49 = vpop.f32.mrf.mxu1 }
 0x232   : > { %v3106_v47 = vpop.f32.mrf.mxu0 }
 0x233   : > { %v3112_v52 = vpop.f32.mrf.mxu1 }
 0x234   : > { %v2186_v51 = vpop.f32.mrf.mxu0 }
 0x235   : > { %v1354_v55 = vpop.f32.mrf.mxu1 }
 0x236   : > { %v2187_v53 = vpop.f32.mrf.mxu0  ;;  %v3118_v61 = vadd.f32 %v1427_v44, %v1354_v55  ;;  %v3138_v44 = vpop.permute.xlu1 %1663 }
 0x237   : > { %v3120_v62 = vpop.f32.mrf.mxu1  ;;  %v2188_v14 = vadd.f32 %v2187_v53, %v2186_v51  ;;  %v1565_v51 = vrot.slane %v1408_v7, 7 }
 0x238   : > { %v2189_v19 = vpop.f32.mrf.mxu0  ;;  %v1569_v5 = vrot.slane %v3118_v61, 7 }
 0x239   : > { %v1577_v21 = vsel %vm1572_vm0, %v1564_v2, %v1565_v51 }
 0x23a   : > { %v2190_v63 = vpop.f32.mrf.mxu0  ;;  %v2276_v3 = vpop.f32.mrf.mxu1  ;;  %v1580_v28 = vsel %vm1572_vm0, %v1569_v5, %v1562_v20 }
 0x23b   : > { %v2191_v32 = vadd.f32 %v2190_v63, %v2189_v19  ;;  %v1400_v19 = vadd.f32 %v3070_v25, %v3078_v33  ;;  %v1613_v63 = vmul.f32 %v3076_v22, %v1580_v28  ;;  %v1418_v25 = vadd.f32 %v3088_v38, %v3102_v43 }
 0x23c   : > { %v2192_v4 = vpop.f32.mrf.mxu0  ;;  %v1531_v10 = vpop.f32.mrf.mxu1 }
 0x23d   : > { %v3136_v16 = vadd.f32 %v2188_v14, %v1531_v10  ;;  %v1622_v10 = vadd.f32 %v1614_v50, %v1400_v19  ;;  %v3162_v14 = vpop.permute.xlu0 %1667  ;;  %v1621_v2 = vadd.f32 %v1613_v63, %v1396_v57 }
 0x23e   : > { %v2193_v12 = vpop.f32.mrf.mxu0  ;;  %v2277_v24 = vpop.f32.mrf.mxu1 }
 0x23f   : > { %v2194_v15 = vadd.f32 %v2193_v12, %v2192_v4  ;;  %v1629_v4 = vrot.slane %v3136_v16, 1  ;;  %v1406_v12 = vadd.f32 %v3074_v30, %v3082_v36  ;;  %v1656_v36 = vpop.permute.xlu1 %1655 }
 0x240   : > { %v2195_v27 = vpop.f32.mrf.mxu0  ;;  %v1534_v53 = vpop.f32.mrf.mxu1 }
 0x241   : > { %v1540_v35 = vadd.f32 %v2276_v3, %v2194_v15  ;;  %v1535_v40 = vadd.f32 %v2191_v32, %v1534_v53  ;;  %v1566_v3 = vrot.slane %v3130_v18, 7  ;;  %v1623_v15 = vadd.f32 %v1615_v59, %v1406_v12  ;;  %v3170_v32 = vld [vmem:[%s3299_s5] ss:$0 sm:$0xff] }
 0x242   : > { %v2196_v54 = vpop.f32.mrf.mxu0  ;;  %v3146_v0 = vpop.f32.mrf.mxu1 }
 0x243   : > { %v1631_v26 = vrot.slane %v1540_v35, 1  ;;  %v2197_v55 = vadd.f32 %v2196_v54, %v2195_v27  ;;  %v1630_v20 = vrot.slane %v1535_v40, 1  ;;  %v1576_v27 = vsel %vm1572_vm0, %v1565_v51, %v1566_v3 }
 0x244   : > { %v2198_v46 = vpop.f32.mrf.mxu0  ;;  %v1547_v29 = vpop.f32.mrf.mxu1  ;;  %v1567_v51 = vrot.slane %v1418_v25, 7  ;;  %v1416_v25 = vadd.f32 %v3084_v31, %v3098_v42 }
 0x245   : > { %v1543_v7 = vadd.f32 %v2277_v24, %v2197_v55  ;;  %v1643_v33 = vsel %vm1637_vm1, %v1630_v20, %v1631_v26  ;;  %v1644_v60 = vsel %vm1637_vm1, %v1629_v4, %v1630_v20  ;;  %v1616_v24 = vmul.f32 %v3108_v48, %v1577_v21 }
 0x246   : > { %v2199_v22 = vpop.f32.mrf.mxu0  ;;  %v1678_v17 = vmul.f32 %v1648_v11, %v1644_v60  ;;  %v1679_v18 = vmul.f32 %v1652_v1, %v1643_v33  ;;  %v2281_v38 = vpop.f32.mrf.mxu1  ;;  %v1424_v11 = vadd.f32 %v3094_v34, %v3110_v49  ;;  %v1410_v48 = vadd.f32 %v3080_v8, %v3090_v39 }
 0x247   : > { %v1632_v13 = vrot.slane %v1543_v7, 1  ;;  %v2200_v30 = vadd.f32 %v2199_v22, %v2198_v46  ;;  %v1617_v34 = vmul.f32 %v3086_v37, %v1576_v27  ;;  %v1660_v49 = vpop.permute.xlu0 %1659 }
 0x248   : > { %v2201_v43 = vpop.f32.mrf.mxu0  ;;  %v1686_v53 = vadd.f32 %v1678_v17, %v1621_v2  ;;  %v1687_v54 = vadd.f32 %v1679_v18, %v1622_v10  ;;  %v1550_v19 = vpop.f32.mrf.mxu1  ;;  %v1624_v46 = vadd.f32 %v1616_v24, %v1410_v48  ;;  %v1568_v10 = vrot.slane %v1424_v11, 7 }
 0x249   : > { %v1548_v28 = vadd.f32 %v2200_v30, %v1547_v29  ;;  %v1642_v35 = vsel %vm1637_vm1, %v1631_v26, %v1632_v13  ;;  %v1575_v29 = vsel %vm1572_vm0, %v1566_v3, %v1567_v51 }
 0x24a   : > { %v1680_v1 = vmul.f32 %v1656_v36, %v1642_v35  ;;  %v2202_v50 = vpop.f32.mrf.mxu0  ;;  %v1701_v63 = vadd.f32 %v3170_v32, %v1686_v53  ;;  %v1702_v26 = vadd.f32 %v3170_v32, %v1687_v54  ;;  %v1618_v17 = vmul.f32 %v3096_v41, %v1575_v29 }
 0x24b   : > { %v1633_v40 = vrot.slane %v1548_v28, 1  ;;  %v2203_v55 = vadd.f32 %v2202_v50, %v2201_v43  ;;  %v1574_v31 = vsel %vm1572_vm0, %v1567_v51, %v1568_v10  ;;  %v1573_v43 = vsel %vm1572_vm0, %v1568_v10, %v1569_v5  ;;  %v2543_v10 = vld [vmem:[%s2895_s24 + $0x10] sm:$0xff] }
 0x24c   : > { %v1688_v57 = vadd.f32 %v1680_v1, %v1623_v15  ;;  %v2204_v59 = vpop.f32.mrf.mxu0  ;;  %v1709_v12 = vmax.f32 %v1701_v63, 0.0  ;;  %v1710_v21 = vmax.f32 %v1702_v26, 0.0  ;;  %v1619_v11 = vmul.f32 %v3124_v6, %v1574_v31 }
 0x24d   : > { %v1641_v20 = vsel %vm1637_vm1, %v1632_v13, %v1633_v40  ;;  %v1551_v7 = vadd.f32 %v2203_v55, %v1550_v19  ;;  %v1625_v13 = vadd.f32 %v1617_v34, %v1416_v25  ;;  %v1620_v61 = vmul.f32 %v3114_v56, %v1573_v43 }
 0x24e   : > { %v1681_v8 = vmul.f32 %v1660_v49, %v1641_v20  ;;  %v2205_v39 = vpop.f32.mrf.mxu0  ;;  %v1703_v37 = vadd.f32 %v3170_v32, %v1688_v57  ;;  %v1717_v36 = vpack.c.bf16 %v1710_v21, %v1709_v12  ;;  %v1426_v54 = vadd.f32 %v3100_v9, %v3112_v52  ;;  %v2544_v21 = vld [vmem:[%s2895_s24] sm:$0xff] }
 0x24f   : > { %v1634_v22 = vrot.slane %v1551_v7, 1  ;;  %v2206_v33 = vadd.f32 %v2205_v39, %v2204_v59 }
 0x250   : > { %v1689_v60 = vadd.f32 %v1681_v8, %v1624_v46  ;;  %v2207_v30 = vpop.f32.mrf.mxu0  ;;  %2298 = vmatprep.mubr.bf16.mxu0 %v1717_v36  ;;  %v1711_v41 = vmax.f32 %v1703_v37, 0.0  ;;  %v1627_v51 = vadd.f32 %v1619_v11, %v1426_v54  ;;  %v2545_v37 = vld [vmem:[%s2895_s24 + $0x18] sm:$0xff] }
 0x251   : > { %v1640_v15 = vsel %vm1637_vm1, %v1633_v40, %v1634_v22  ;;  %v1556_v2 = vadd.f32 %v3146_v0, %v2206_v33  ;;  %v1420_v0 = vadd.f32 %v3092_v23, %v3104_v45  ;;  %v1430_v23 = vadd.f32 %v3106_v47, %v3120_v62  ;;  %v1672_v40 = vpop.permute.xlu1 %1671 }
 0x252   : > { %v1704_v42 = vadd.f32 %v3170_v32, %v1689_v60  ;;  %v1682_v3 = vmul.f32 %v3138_v44, %v1640_v15  ;;  %v2208_v18 = vpop.f32.mrf.mxu0 }
 0x253   : > { %v1635_v24 = vrot.slane %v1556_v2, 1  ;;  %v2209_v27 = vadd.f32 %v2208_v18, %v2207_v30  ;;  %v1626_v50 = vadd.f32 %v1618_v17, %v1420_v0  ;;  %v1628_v9 = vadd.f32 %v1620_v61, %v1430_v23  ;;  %v2548_v0 = vld [vmem:[%s2895_s24 + $0x20] sm:$0xff] }
 0x254   : > { %v1712_v28 = vmax.f32 %v1704_v42, 0.0  ;;  %v1690_v35 = vadd.f32 %v1682_v3, %v1625_v13  ;;  %v2546_v13 = vld [vmem:[%s2895_s24 + $0x8] sm:$0xff]  ;;  %v2547_v3 = vld [vmem:[%s2895_s24 + $0x30] sm:$0xff] }
 0x255   : > { %v1639_v44 = vsel %vm1637_vm1, %v1634_v22, %v1635_v24  ;;  %v1559_v1 = vadd.f32 %v2281_v38, %v2209_v27  ;;  %v1676_v38 = vpop.permute.xlu0 %1675 }
 0x256   : > { %v1718_v53 = vpack.c.bf16 %v1712_v28, %v1711_v41  ;;  %v1683_v5 = vmul.f32 %v3162_v14, %v1639_v44  ;;  %v1705_v6 = vadd.f32 %v3170_v32, %v1690_v35  ;;  %v2549_v44 = vld [vmem:[%s2895_s24 + $0x38] sm:$0xff] }
 0x257   : > { %v1636_v48 = vrot.slane %v1559_v1, 1 }
 0x258   : > { %2299 = vmatmul.mubr.bf16.vlgmr.msra.gmra.mxu0 %v1718_v53  ;;  %v1691_v45 = vadd.f32 %v1683_v5, %v1626_v50  ;;  %v1713_v19 = vmax.f32 %v1705_v6, 0.0  ;;  %v2550_v53 = vld [vmem:[%s2895_s24 + $0x28] sm:$0xff] }
 0x259   : > { %v1638_v56 = vsel %vm1637_vm1, %v1635_v24, %v1636_v48  ;;  %v1645_v14 = vsel %vm1637_vm1, %v1636_v48, %v1629_v4  ;;  %v2118_v4 = vld [vmem:[%s3301_s7] ss:$0 sm:$0xff] }
 0x25a   : > { %v1684_v52 = vmul.f32 %v1672_v40, %v1638_v56  ;;  %v1685_v55 = vmul.f32 %v1676_v38, %v1645_v14  ;;  %v1706_v47 = vadd.f32 %v3170_v32, %v1691_v45 }
 0x25c   : > { %v1692_v62 = vadd.f32 %v1684_v52, %v1627_v51  ;;  %v1693_v57 = vadd.f32 %v1685_v55, %v1628_v9  ;;  %v1714_v59 = vmax.f32 %v1706_v47, 0.0 }
 0x25e   : > { %v1707_v63 = vadd.f32 %v3170_v32, %v1692_v62  ;;  %v1708_v26 = vadd.f32 %v3170_v32, %v1693_v57  ;;  %v1719_v46 = vpack.c.bf16 %v1714_v59, %v1713_v19 }
 0x260   : > { %v1715_v16 = vmax.f32 %v1707_v63, 0.0  ;;  %v1716_v34 = vmax.f32 %v1708_v26, 0.0  ;;  %2302 = vmatprep.mubr.bf16.mxu1 %v1719_v46 }
 0x262   : > { %v1720_v58 = vpack.c.bf16 %v1716_v34, %v1715_v16 }
 0x264   : > { %2303 = vmatmul.mubr.bf16.vlgmr.msra.gmra.mxu1 %v1720_v58 }
 0x318   : > { %v2300_v49 = vpop.f32.mrf.mxu0 }
 0x319   : > { %v1835_v20 = vadd.f32 %v2300_v49, %v2118_v4 }
 0x31a   : > { %v1826_v7 = vpop.f32.mrf.mxu0 }
 0x31b   : > { %v1859_v8 = vadd.f32 %v2543_v10, %v1835_v20  ;;  %v1827_v32 = vadd.f32 %v2118_v4, %v1826_v7 }
 0x31c   : > { %v2301_v39 = vpop.f32.mrf.mxu0 }
 0x31d   : > { %v1867_v12 = vmax.f32 %v1859_v8, 0.0  ;;  %v1857_v25 = vadd.f32 %v2544_v21, %v1827_v32  ;;  %v1838_v29 = vadd.f32 %v2301_v39, %v2118_v4 }
 0x31e   : > { %v1829_v22 = vpop.f32.mrf.mxu0 }
 0x31f   : > { %1875 = vst [vmem:[%s3228_s10 + $0x10] sm:$0xff] %v1867_v12  ;;  %v1865_v33 = vmax.f32 %v1857_v25, 0.0  ;;  %v1860_v60 = vadd.f32 %v2545_v37, %v1838_v29  ;;  %v1830_v30 = vadd.f32 %v2118_v4, %v1829_v22 }
 0x321   : > { %1873 = vst [vmem:[%s3228_s10] sm:$0xff] %v1865_v33  ;;  %v1868_v36 = vmax.f32 %v1860_v60, 0.0  ;;  %v1858_v15 = vadd.f32 %v2546_v13, %v1830_v30 }
 0x323   : > { %1876 = vst [vmem:[%s3228_s10 + $0x18] sm:$0xff] %v1868_v36  ;;  %v1866_v2 = vmax.f32 %v1858_v15, 0.0 }
 0x324   : > { %v2304_v17 = vpop.f32.mrf.mxu1 }
 0x325   : > { %1874 = vst [vmem:[%s3228_s10 + $0x8] sm:$0xff] %v1866_v2  ;;  %v1851_v31 = vadd.f32 %v2304_v17, %v2118_v4 }
 0x326   : > { %v1842_v42 = vpop.f32.mrf.mxu1 }
 0x327   : > { %v1863_v18 = vadd.f32 %v2547_v3, %v1851_v31  ;;  %v1843_v43 = vadd.f32 %v2118_v4, %v1842_v42 }
 0x328   : > { %v2305_v24 = vpop.f32.mrf.mxu1 }
 0x329   : > { %v1871_v27 = vmax.f32 %v1863_v18, 0.0  ;;  %v1861_v41 = vadd.f32 %v2548_v0, %v1843_v43  ;;  %v1854_v28 = vadd.f32 %v2305_v24, %v2118_v4 }
 0x32a   : > { %v1845_v35 = vpop.f32.mrf.mxu1 }
 0x32b   : > { %1879 = vst [vmem:[%s3228_s10 + $0x30] sm:$0xff] %v1871_v27  ;;  %v1869_v11 = vmax.f32 %v1861_v41, 0.0  ;;  %v1864_v1 = vadd.f32 %v2549_v44, %v1854_v28  ;;  %v1846_v50 = vadd.f32 %v2118_v4, %v1845_v35 }
 0x32d   : > { %1877 = vst [vmem:[%s3228_s10 + $0x20] sm:$0xff] %v1869_v11  ;;  %v1872_v61 = vmax.f32 %v1864_v1, 0.0  ;;  %v1862_v5 = vadd.f32 %v2550_v53, %v1846_v50 }
 0x32f   : > { %1880 = vst [vmem:[%s3228_s10 + $0x38] sm:$0xff] %v1872_v61  ;;  %v1870_v54 = vmax.f32 %v1862_v5, 0.0 }
 0x331   : > { %1878 = vst [vmem:[%s3228_s10 + $0x28] sm:$0xff] %v1870_v54 }
 0x332   : > { %2644 = shalt.err (!%p2641_p9)
}
 0x333   : > { %s2645_s24 = scalar_lea.hbm %s3249_s26, 1024  ;;  %s2649_s25 = scalar_lea.hbm %s3302_s8, 2048 }
 0x334   : > { %p2646_p13 = scmp.ne.s32.totalorder %s3249_s26, %s2645_s24  ;;  %p2650_p4 = scmp.lt.s32.totalorder %s3249_s26, %s3302_s8 }
 0x335   : > { %p2651_p8 = scmp.lt.s32.totalorder %s2649_s25, %s2645_s24 }
 0x336   : > { %p2647_p5 = pnand %p2646_p13, %p3322_p10 }
 0x337   : > { %p2652_p7 = por %p2651_p8, %p2650_p4 }
 0x338   : > { %p2648_p0 = pneg %p2647_p5 }
 0x33a   : > { %p2653_p11 = pnand %p2652_p7, %p2648_p0 }
 0x33c   : > { %2656 = shalt.err (!%p2653_p11)
}
 0x33d   : > { %s2715_s14 = smov 128   ;;  %s2716_s17 = smov 8  }
 0x33e   : > { %2332 = dma.vmem_to_hbm [thread:$0]  (%p3322_p10), %s3242_s6, 1024, %s3249_s26, %s1882_s16, %s2715_s14, %s2715_s14, %s2716_s17  }
 0x33f PF: > { %s1910_s18 = sand.u32 1, %s2687_s27   ;;  %p3323_p1 = scmp.ne.s32.totalorder %s3310_s12, 0 }
 0x340   : > { %p3324_p2 = scmp.ge.s32.totalorder %s2699_s30, 2  ;;  %s1911_s9 = scalar_lea.sflag [#allocation5], %s1910_s18 }
 0x342   : > { %p2346_p6 = pnand %p3324_p2, %p3323_p1 }
 0x344   : > { %p2347_p12 = pneg %p2346_p6 }
 0x346   : > { %2682 = dma.done.wait (%p2347_p12), %s1911_s9, 1024  }
 0x347   : > { %2684 = vsyncadd (%p2347_p12), %s1911_s9, 4294966272  ;;  %p22_p3 = scmp.ge.s32.totalorder %s2834_s15, 4   ;;  %s3325_s27 = smov %s2691_s28 }
 0x348   : > { %s3326_s28 = smov %s2695_s29  ;;  %s3327_s29 = smov %s2843_s20 }
 0x349   : > { %s3328_s30 = smov %s2834_s15  ;;  %24 = sbr.rel (!%p22_p3) target bundleno = 9 (0x9), region = 105 }
 0x34e   :  { %1916 = vsyncpa [#allocation4], 1 }
 0x34f   :  { %1918 = vsyncpa [#allocation4 + $0x1], 1 }
 0x350   :  { %1919 = vsyncpa [#allocation7], 1 }
 0x351   :  { %1920 = vsyncpa [#allocation5], 1 }
 0x352   :  { %1922 = vsyncpa [#allocation5 + $0x1], 1 }

</bundles_post_ra>
